<compile_context>
chip_gen: v7x
topology: tpu7x:2x2x1
jax: 0.10.0
libtpu: 0.0.40
codegen_flags: <defaults>
</compile_context>

<pallas_src>
import functools

import jax
import jax.numpy as jnp
from jax.experimental import pallas as pl
from jax.experimental.pallas import tpu as pltpu

NUM_CLASSES = 22
LATENT = 128
HIDDEN = 64
CONV_CH = 128
KSIZE = 5
K1_PAD = 32  # conv1 im2col K (=25) zero-padded to a sublane-friendly 32


def _vmem():
    return pl.BlockSpec(memory_space=pltpu.MemorySpace.VMEM)


# ---------------------------------------------------------------------------
# Kernel 1: fused per-view head (one grid step per view).
#   conv1(5x5,1->128) -> maxpool2 -> BN -> ReLU
#   -> conv2(5x5,128->128) -> maxpool2 -> BN -> ReLU -> flatten -> fc -> ReLU
# TODO(synk): `res_blocks(self.arch)` is referenced but not defined in the
# provided source (only the inception arch tuple ships); it is omitted here.
# ---------------------------------------------------------------------------
def _head_kernel(p1_ref, w1_ref, s1_ref, t1_ref, w2_ref, s2_ref, t2_ref,
                 fcw_ref, fcb_ref, out_ref, pooled_ref, *, b, pw):
    m4 = pooled_ref.shape[0]  # = pw*pw*b rows of pooled conv1 activations

    # ---- conv1 (MXU) + maxpool 2x2: one matmul per pool offset, then max ----
    pooled = None
    for blk in range(4):
        c = jnp.dot(p1_ref[0, pl.ds(blk * m4, m4), :], w1_ref[0],
                    preferred_element_type=jnp.float32)          # (m4, 128) f32
        pooled = c if pooled is None else jnp.maximum(pooled, c)
    # BN affine (conv1 bias pre-folded into shift; bias commutes with max) + ReLU
    pooled = jnp.maximum(pooled * s1_ref[0] + t1_ref[0], 0.0)
    pooled_ref[...] = pooled.astype(pooled_ref.dtype)            # bf16 MXU feed

    # ---- conv2 as 25 shifted matmuls (2 per tap), f32 accumulation ----
    # pooled rows are ordered (spatial_row, spatial_col, batch); conv2 output is
    # 2x2, so the two outputs of one output-row share a contiguous 2*b row slab.
    acc_top = jnp.zeros((2 * b, CONV_CH), jnp.float32)   # outputs (0,0),(0,1)
    acc_bot = jnp.zeros((2 * b, CONV_CH), jnp.float32)   # outputs (1,0),(1,1)
    for ki in range(KSIZE):
        for kj in range(KSIZE):
            w_tap = w2_ref[0, pl.ds((ki * KSIZE + kj) * CONV_CH, CONV_CH), :]
            top = pooled_ref[pl.ds((ki * pw + kj) * b, 2 * b), :]
            bot = pooled_ref[pl.ds(((ki + 1) * pw + kj) * b, 2 * b), :]
            acc_top = acc_top + jnp.dot(top, w_tap,
                                        preferred_element_type=jnp.float32)
            acc_bot = acc_bot + jnp.dot(bot, w_tap,
                                        preferred_element_type=jnp.float32)

    # ---- maxpool 2x2 over the four conv2 outputs + BN (bias folded) + ReLU ----
    p2 = jnp.maximum(jnp.maximum(acc_top[0:b], acc_top[b:2 * b]),
                     jnp.maximum(acc_bot[0:b], acc_bot[b:2 * b]))  # (b, 128)
    h = jnp.maximum(p2 * s2_ref[0] + t2_ref[0], 0.0)

    # ---- flatten (spatial is 1x1, so NCHW flatten order is trivial), fc, ReLU
    # (nn.Dropout before the fc is identity in eval mode.)
    lat = jnp.dot(h.astype(jnp.bfloat16), fcw_ref[0],
                  preferred_element_type=jnp.float32)
    out_ref[0] = jnp.maximum(lat + fcb_ref[0], 0.0).astype(out_ref.dtype)


# ---------------------------------------------------------------------------
# Kernel 2: fused attention pooling + 3-layer classifier.
# ---------------------------------------------------------------------------
def _attn_cls_kernel(multi_ref, aw1_ref, ab1_ref, aw2_ref,
                     cw1_ref, cb1_ref, cw2_ref, cb2_ref, cw3_ref, cb3_ref,
                     out_ref):
    # TODO(synk): `AttentionModule` source is not provided; implemented as the
    # standard attention pooling Linear(L->H) -> tanh -> Linear(H->1) ->
    # softmax over the 4 views -> weighted sum of view features.
    nviews = multi_ref.shape[0]
    feats, scores = [], []
    for v in range(nviews):
        f = multi_ref[v]                                          # (B, L) f32
        feats.append(f)
        hid = jnp.dot(f.astype(jnp.bfloat16), aw1_ref[...],
                      preferred_element_type=jnp.float32)         # (B, H)
        hid = jnp.tanh(hid + ab1_ref[...])
        # second Linear's bias is constant across views -> cancels in softmax
        scores.append(jnp.sum(hid * aw2_ref[...], axis=-1, keepdims=True))

    m = scores[0]
    for v in range(1, nviews):
        m = jnp.maximum(m, scores[v])
    exps = [jnp.exp(s - m) for s in scores]
    denom = exps[0]
    for v in range(1, nviews):
        denom = denom + exps[v]
    inv = 1.0 / denom                                             # (B, 1)
    pooled = exps[0] * inv * feats[0]
    for v in range(1, nviews):
        pooled = pooled + exps[v] * inv * feats[v]                # (B, L)

    # classifier: Linear(128->256) ReLU -> Linear(256->256) ReLU -> Linear(->22)
    # (Dropouts are identity in eval mode.)  Final weights are padded to 128
    # output lanes so the store is lane-dense; sliced to 22 outside the kernel.
    h = jnp.dot(pooled.astype(jnp.bfloat16), cw1_ref[...],
                preferred_element_type=jnp.float32)
    h = jnp.maximum(h + cb1_ref[...], 0.0)
    h = jnp.dot(h.astype(jnp.bfloat16), cw2_ref[...],
                preferred_element_type=jnp.float32)
    h = jnp.maximum(h + cb2_ref[...], 0.0)
    h = jnp.dot(h.astype(jnp.bfloat16), cw3_ref[...],
                preferred_element_type=jnp.float32)
    out_ref[...] = (h + cb3_ref[...]).astype(out_ref.dtype)


# ---------------------------------------------------------------------------
# JAX-side glue
# ---------------------------------------------------------------------------
def _conv1_patches(x):
    """Pool-block-ordered im2col for conv1.

    x: (B, V, H, W) -> (V, 4*(H-4)//2*(W-4)//2*B, K1_PAD) bf16, with rows ordered
    (pool_offset, pooled_row, pooled_col, batch) so the in-kernel maxpool is a
    max over 4 contiguous row blocks and conv2's shifted loads are contiguous.
    """
    B, V, H, W = x.shape
    oh, ow = H - KSIZE + 1, W - KSIZE + 1
    taps = [x[:, :, i:i + oh, j:j + ow] for i in range(KSIZE) for j in range(KSIZE)]
    p = jnp.stack(taps, axis=-1)                                   # (B,V,oh,ow,25)
    blocks = [p[:, :, dy::2, dx::2, :] for dy in (0, 1) for dx in (0, 1)]
    p = jnp.stack(blocks, axis=0)                                  # (4,B,V,oh/2,ow/2,25)
    p = jnp.transpose(p, (2, 0, 3, 4, 1, 5))                       # (V,4,oh/2,ow/2,B,25)
    p = p.reshape(V, 4 * (oh // 2) * (ow // 2) * B, KSIZE * KSIZE)
    p = jnp.pad(p, ((0, 0), (0, 0), (0, K1_PAD - KSIZE * KSIZE)))
    return p.astype(jnp.bfloat16)


def model_forward(x, p):
    B, V, H, W = x.shape
    pw = (H - KSIZE + 1) // 2
    assert pw == (W - KSIZE + 1) // 2 and pw - KSIZE + 1 == 2, \
        "fused head kernel assumes 16x16 inputs (same as the Lazy modules)"

    patches = _conv1_patches(x)                                    # (V, 4*pw*pw*B, 32)
    m1 = patches.shape[1]

    head = functools.partial(_head_kernel, b=B, pw=pw)
    multi = pl.pallas_call(
        head,
        out_shape=jax.ShapeDtypeStruct((V, B, LATENT), jnp.float32),
        grid=(V,),
        in_specs=[
            pl.BlockSpec((1, m1, K1_PAD), lambda v: (v, 0, 0)),            # patches
            pl.BlockSpec((1, K1_PAD, CONV_CH), lambda v: (v, 0, 0)),       # conv1 W
            pl.BlockSpec((1, 1, CONV_CH), lambda v: (v, 0, 0)),            # bn1 scale
            pl.BlockSpec((1, 1, CONV_CH), lambda v: (v, 0, 0)),            # bn1 shift'
            pl.BlockSpec((1, KSIZE * KSIZE * CONV_CH, CONV_CH),
                         lambda v: (v, 0, 0)),                             # conv2 W
            pl.BlockSpec((1, 1, CONV_CH), lambda v: (v, 0, 0)),            # bn2 scale
            pl.BlockSpec((1, 1, CONV_CH), lambda v: (v, 0, 0)),            # bn2 shift'
            pl.BlockSpec((1, CONV_CH, LATENT), lambda v: (v, 0, 0)),       # fc W
            pl.BlockSpec((1, 1, LATENT), lambda v: (v, 0, 0)),             # fc b
        ],
        out_specs=pl.BlockSpec((1, B, LATENT), lambda v: (v, 0, 0)),
        scratch_shapes=[pltpu.VMEM((pw * pw * B, CONV_CH), jnp.bfloat16)],
        compiler_params=pltpu.CompilerParams(
            dimension_semantics=("parallel",)),   # views split across v7x's 2 TCs
    )(patches, p["w1"], p["s1"], p["t1"], p["w2"], p["s2"], p["t2"],
      p["fcw"], p["fcb"])

    logits_pad = pl.pallas_call(
        _attn_cls_kernel,
        out_shape=jax.ShapeDtypeStruct((B, CONV_CH), jnp.float32),
        in_specs=[_vmem() for _ in range(10)],
        out_specs=_vmem(),
    )(multi, p["aw1"], p["ab1"], p["aw2"],
      p["cw1"], p["cb1"], p["cw2"], p["cb2"], p["cw3"], p["cb3"])

    return logits_pad[:, :NUM_CLASSES]


# ---------------------------------------------------------------------------
# Deterministic parameters
# ---------------------------------------------------------------------------
def init_raw_params(key, latent=LATENT, hidden=HIDDEN, num_classes=NUM_CLASSES):
    ks = iter(jax.random.split(key, 40))

    def dense(shape, scale=0.05):
        return jax.random.normal(next(ks), shape, jnp.float32) * scale

    eps = 1e-5
    # BatchNorm2d in eval mode with default stats (gamma=1, beta=0, mean=0, var=1)
    bn_scale = jnp.ones((CONV_CH,), jnp.float32) / jnp.sqrt(1.0 + eps)
    bn_shift = jnp.zeros((CONV_CH,), jnp.float32)

    heads = []
    for _ in range(4):
        heads.append(dict(
            conv1_w=dense((KSIZE * KSIZE, CONV_CH)),            # (25, 128), cin=1
            conv1_b=dense((CONV_CH,)),
            bn1_scale=bn_scale, bn1_shift=bn_shift,
            conv2_w=dense((KSIZE * KSIZE, CONV_CH, CONV_CH)),   # (25, cin, cout)
            conv2_b=dense((CONV_CH,)),
            bn2_scale=bn_scale, bn2_shift=bn_shift,
            fc_w=dense((CONV_CH, latent)),                      # flat_dim = 128 (1x1)
            fc_b=dense((latent,)),
        ))
    # attention second bias (Linear(hidden,1).bias) cancels in the softmax.
    attn = dict(w1=dense((latent, hidden)), b1=dense((hidden,)), w2=dense((hidden,)))
    cls = dict(w1=dense((latent, 256)), b1=dense((256,)),
               w2=dense((256, 256)), b2=dense((256,)),
               w3=dense((256, num_classes)), b3=dense((num_classes,)))
    return dict(heads=heads, attn=attn, cls=cls)


def prepare_params(raw):
    """Stack per-head weights, fold biases into BN shifts, pad, cast to bf16."""
    heads = raw["heads"]

    def stack(name):
        return jnp.stack([h[name] for h in heads], axis=0)

    w1 = jnp.pad(stack("conv1_w"), ((0, 0), (0, K1_PAD - KSIZE * KSIZE), (0, 0)))
    s1 = stack("bn1_scale")
    t1 = stack("conv1_b") * s1 + stack("bn1_shift")   # bias folded: acc*s + (b*s+t)
    s2 = stack("bn2_scale")
    t2 = stack("conv2_b") * s2 + stack("bn2_shift")

    a, c = raw["attn"], raw["cls"]
    # pad the 22-wide classifier output to a lane-dense 128-wide slab
    w3p = jnp.zeros((c["w3"].shape[0], CONV_CH), jnp.float32)
    w3p = w3p.at[:, :NUM_CLASSES].set(c["w3"])
    b3p = jnp.zeros((CONV_CH,), jnp.float32).at[:NUM_CLASSES].set(c["b3"])

    return dict(
        w1=w1.astype(jnp.bfloat16),                                   # (4, 32, 128)
        s1=s1[:, None, :], t1=t1[:, None, :],                         # (4, 1, 128)
        w2=stack("conv2_w").reshape(4, -1, CONV_CH).astype(jnp.bfloat16),  # (4,3200,128)
        s2=s2[:, None, :], t2=t2[:, None, :],
        fcw=stack("fc_w").astype(jnp.bfloat16),                       # (4, 128, 128)
        fcb=stack("fc_b")[:, None, :],                                # (4, 1, 128)
        aw1=a["w1"].astype(jnp.bfloat16),                             # (128, 64)
        ab1=a["b1"][None, :], aw2=a["w2"][None, :],                   # (1, 64)
        cw1=c["w1"].astype(jnp.bfloat16), cb1=c["b1"][None, :],
        cw2=c["w2"].astype(jnp.bfloat16), cb2=c["b2"][None, :],
        cw3=w3p.astype(jnp.bfloat16), cb3=b3p[None, :],
    )


if __name__ == "__main__":
    key = jax.random.PRNGKey(0)
    pkey, xkey = jax.random.split(key)
    raw = init_raw_params(pkey)
    prep = prepare_params(raw)
    x = jax.random.normal(xkey, (2, 4, 16, 16), jnp.float32)

    fwd = jax.jit(model_forward)
    logits = jax.block_until_ready(fwd(x, prep))
    assert logits.shape == (2, NUM_CLASSES), logits.shape
    assert bool(jnp.all(jnp.isfinite(logits)))
    print("KERNEL_OK")
</pallas_src>

<mosaic_0001>
module attributes {stable_mosaic.version = 11 : i64} {
  func.func @_head_kernel(%arg0: i32, %arg1: memref<1x288x32xbf16, #tpu.memory_space<vmem>>, %arg2: memref<1x32x128xbf16, #tpu.memory_space<vmem>>, %arg3: memref<1x1x128xf32, #tpu.memory_space<vmem>>, %arg4: memref<1x1x128xf32, #tpu.memory_space<vmem>>, %arg5: memref<1x3200x128xbf16, #tpu.memory_space<vmem>>, %arg6: memref<1x1x128xf32, #tpu.memory_space<vmem>>, %arg7: memref<1x1x128xf32, #tpu.memory_space<vmem>>, %arg8: memref<1x128x128xbf16, #tpu.memory_space<vmem>>, %arg9: memref<1x1x128xf32, #tpu.memory_space<vmem>>, %arg10: memref<1x2x128xf32, #tpu.memory_space<vmem>>, %arg11: memref<72x128xbf16, #tpu.memory_space<vmem>>) attributes {dimension_semantics = [#tpu.dimension_semantics<parallel>], iteration_bounds = array<i64: 4>, scalar_prefetch = 0 : i64, scratch_operands = 1 : i64, tpu.core_type = #tpu.core_type<tc>, window_params = [{transform_indices = @transform_0, window_bounds = array<i64: 1, 288, 32>}, {transform_indices = @transform_1, window_bounds = array<i64: 1, 32, 128>}, {transform_indices = @transform_2, window_bounds = array<i64: 1, 1, 128>}, {transform_indices = @transform_3, window_bounds = array<i64: 1, 1, 128>}, {transform_indices = @transform_4, window_bounds = array<i64: 1, 3200, 128>}, {transform_indices = @transform_5, window_bounds = array<i64: 1, 1, 128>}, {transform_indices = @transform_6, window_bounds = array<i64: 1, 1, 128>}, {transform_indices = @transform_7, window_bounds = array<i64: 1, 128, 128>}, {transform_indices = @transform_8, window_bounds = array<i64: 1, 1, 128>}, {transform_indices = @transform_9, window_bounds = array<i64: 1, 2, 128>}]} {
    %c0 = arith.constant 0 : index
    %c0_0 = arith.constant 0 : index
    %c0_1 = arith.constant 0 : index
    %0 = vector.load %arg1[%c0, %c0_0, %c0_1] : memref<1x288x32xbf16, #tpu.memory_space<vmem>>, vector<1x72x32xbf16>
    %1 = vector.shape_cast %0 : vector<1x72x32xbf16> to vector<72x32xbf16>
    %c0_2 = arith.constant 0 : index
    %c0_3 = arith.constant 0 : index
    %c0_4 = arith.constant 0 : index
    %2 = vector.load %arg2[%c0_2, %c0_3, %c0_4] : memref<1x32x128xbf16, #tpu.memory_space<vmem>>, vector<1x32x128xbf16>
    %3 = vector.shape_cast %2 : vector<1x32x128xbf16> to vector<32x128xbf16>
    %cst = arith.constant dense<0.000000e+00> : vector<72x128xf32>
    %4 = tpu.matmul %1, %3, %cst {dimension_numbers = #tpu.dot_dimension_numbers<[1], [0], [0], [1], [0, 0, 1, 1], [], []>} : vector<72x32xbf16>, vector<32x128xbf16>, vector<72x128xf32> -> vector<72x128xf32>
    %c0_5 = arith.constant 0 : index
    %c72 = arith.constant 72 : index
    %c0_6 = arith.constant 0 : index
    %5 = vector.load %arg1[%c0_5, %c72, %c0_6] : memref<1x288x32xbf16, #tpu.memory_space<vmem>>, vector<1x72x32xbf16>
    %6 = vector.shape_cast %5 : vector<1x72x32xbf16> to vector<72x32xbf16>
    %c0_7 = arith.constant 0 : index
    %c0_8 = arith.constant 0 : index
    %c0_9 = arith.constant 0 : index
    %7 = vector.load %arg2[%c0_7, %c0_8, %c0_9] : memref<1x32x128xbf16, #tpu.memory_space<vmem>>, vector<1x32x128xbf16>
    %8 = vector.shape_cast %7 : vector<1x32x128xbf16> to vector<32x128xbf16>
    %cst_10 = arith.constant dense<0.000000e+00> : vector<72x128xf32>
    %9 = tpu.matmul %6, %8, %cst_10 {dimension_numbers = #tpu.dot_dimension_numbers<[1], [0], [0], [1], [0, 0, 1, 1], [], []>} : vector<72x32xbf16>, vector<32x128xbf16>, vector<72x128xf32> -> vector<72x128xf32>
    %10 = arith.maximumf %4, %9 : vector<72x128xf32>
    %c0_11 = arith.constant 0 : index
    %c144 = arith.constant 144 : index
    %c0_12 = arith.constant 0 : index
    %11 = vector.load %arg1[%c0_11, %c144, %c0_12] : memref<1x288x32xbf16, #tpu.memory_space<vmem>>, vector<1x72x32xbf16>
    %12 = vector.shape_cast %11 : vector<1x72x32xbf16> to vector<72x32xbf16>
    %c0_13 = arith.constant 0 : index
    %c0_14 = arith.constant 0 : index
    %c0_15 = arith.constant 0 : index
    %13 = vector.load %arg2[%c0_13, %c0_14, %c0_15] : memref<1x32x128xbf16, #tpu.memory_space<vmem>>, vector<1x32x128xbf16>
    %14 = vector.shape_cast %13 : vector<1x32x128xbf16> to vector<32x128xbf16>
    %cst_16 = arith.constant dense<0.000000e+00> : vector<72x128xf32>
    %15 = tpu.matmul %12, %14, %cst_16 {dimension_numbers = #tpu.dot_dimension_numbers<[1], [0], [0], [1], [0, 0, 1, 1], [], []>} : vector<72x32xbf16>, vector<32x128xbf16>, vector<72x128xf32> -> vector<72x128xf32>
    %16 = arith.maximumf %10, %15 : vector<72x128xf32>
    %c0_17 = arith.constant 0 : index
    %c216 = arith.constant 216 : index
    %c0_18 = arith.constant 0 : index
    %17 = vector.load %arg1[%c0_17, %c216, %c0_18] : memref<1x288x32xbf16, #tpu.memory_space<vmem>>, vector<1x72x32xbf16>
    %18 = vector.shape_cast %17 : vector<1x72x32xbf16> to vector<72x32xbf16>
    %c0_19 = arith.constant 0 : index
    %c0_20 = arith.constant 0 : index
    %c0_21 = arith.constant 0 : index
    %19 = vector.load %arg2[%c0_19, %c0_20, %c0_21] : memref<1x32x128xbf16, #tpu.memory_space<vmem>>, vector<1x32x128xbf16>
    %20 = vector.shape_cast %19 : vector<1x32x128xbf16> to vector<32x128xbf16>
    %cst_22 = arith.constant dense<0.000000e+00> : vector<72x128xf32>
    %21 = tpu.matmul %18, %20, %cst_22 {dimension_numbers = #tpu.dot_dimension_numbers<[1], [0], [0], [1], [0, 0, 1, 1], [], []>} : vector<72x32xbf16>, vector<32x128xbf16>, vector<72x128xf32> -> vector<72x128xf32>
    %22 = arith.maximumf %16, %21 : vector<72x128xf32>
    %c0_23 = arith.constant 0 : index
    %c0_24 = arith.constant 0 : index
    %c0_25 = arith.constant 0 : index
    %23 = vector.load %arg3[%c0_23, %c0_24, %c0_25] : memref<1x1x128xf32, #tpu.memory_space<vmem>>, vector<1x1x128xf32>
    %24 = vector.shape_cast %23 : vector<1x1x128xf32> to vector<1x128xf32>
    %25 = vector.broadcast %24 : vector<1x128xf32> to vector<72x128xf32>
    %26 = arith.mulf %22, %25 : vector<72x128xf32>
    %c0_26 = arith.constant 0 : index
    %c0_27 = arith.constant 0 : index
    %c0_28 = arith.constant 0 : index
    %27 = vector.load %arg4[%c0_26, %c0_27, %c0_28] : memref<1x1x128xf32, #tpu.memory_space<vmem>>, vector<1x1x128xf32>
    %28 = vector.shape_cast %27 : vector<1x1x128xf32> to vector<1x128xf32>
    %29 = vector.broadcast %28 : vector<1x128xf32> to vector<72x128xf32>
    %30 = arith.addf %26, %29 : vector<72x128xf32>
    %cst_29 = arith.constant 0.000000e+00 : f32
    %31 = vector.broadcast %cst_29 : f32 to vector<72x128xf32>
    %32 = arith.maximumf %30, %31 : vector<72x128xf32>
    %33 = arith.truncf %32 : vector<72x128xf32> to vector<72x128xbf16>
    %c0_30 = arith.constant 0 : index
    %c0_31 = arith.constant 0 : index
    %34 = vector.load %arg11[%c0_30, %c0_31] : memref<72x128xbf16, #tpu.memory_space<vmem>>, vector<72x128xbf16>
    tpu.vector_store %arg11[%c0_30, %c0_31], %33 {strides = array<i32>} : memref<72x128xbf16, #tpu.memory_space<vmem>>, vector<72x128xbf16>,
    %cst_32 = arith.constant 0.000000e+00 : f32
    %35 = vector.broadcast %cst_32 : f32 to vector<4x128xf32>
    %cst_33 = arith.constant 0.000000e+00 : f32
    %36 = vector.broadcast %cst_33 : f32 to vector<4x128xf32>
    %c0_34 = arith.constant 0 : index
    %c0_35 = arith.constant 0 : index
    %c0_36 = arith.constant 0 : index
    %37 = vector.load %arg5[%c0_34, %c0_35, %c0_36] : memref<1x3200x128xbf16, #tpu.memory_space<vmem>>, vector<1x128x128xbf16>
    %38 = vector.shape_cast %37 : vector<1x128x128xbf16> to vector<128x128xbf16>
    %c0_37 = arith.constant 0 : index
    %c0_38 = arith.constant 0 : index
    %39 = vector.load %arg11[%c0_37, %c0_38] : memref<72x128xbf16, #tpu.memory_space<vmem>>, vector<4x128xbf16>
    %c12 = arith.constant 12 : index
    %c0_39 = arith.constant 0 : index
    %40 = vector.load %arg11[%c12, %c0_39] : memref<72x128xbf16, #tpu.memory_space<vmem>>, vector<4x128xbf16>
    %cst_40 = arith.constant dense<0.000000e+00> : vector<4x128xf32>
    %41 = tpu.matmul %39, %38, %cst_40 {dimension_numbers = #tpu.dot_dimension_numbers<[1], [0], [0], [1], [0, 0, 1, 1], [], []>} : vector<4x128xbf16>, vector<128x128xbf16>, vector<4x128xf32> -> vector<4x128xf32>
    %42 = arith.addf %35, %41 : vector<4x128xf32>
    %cst_41 = arith.constant dense<0.000000e+00> : vector<4x128xf32>
    %43 = tpu.matmul %40, %38, %cst_41 {dimension_numbers = #tpu.dot_dimension_numbers<[1], [0], [0], [1], [0, 0, 1, 1], [], []>} : vector<4x128xbf16>, vector<128x128xbf16>, vector<4x128xf32> -> vector<4x128xf32>
    %44 = arith.addf %36, %43 : vector<4x128xf32>
    %c0_42 = arith.constant 0 : index
    %c128 = arith.constant 128 : index
    %c0_43 = arith.constant 0 : index
    %45 = vector.load %arg5[%c0_42, %c128, %c0_43] : memref<1x3200x128xbf16, #tpu.memory_space<vmem>>, vector<1x128x128xbf16>
    %46 = vector.shape_cast %45 : vector<1x128x128xbf16> to vector<128x128xbf16>
    %c2 = arith.constant 2 : index
    %c0_44 = arith.constant 0 : index
    %47 = vector.load %arg11[%c2, %c0_44] : memref<72x128xbf16, #tpu.memory_space<vmem>>, vector<4x128xbf16>
    %c14 = arith.constant 14 : index
    %c0_45 = arith.constant 0 : index
    %48 = vector.load %arg11[%c14, %c0_45] : memref<72x128xbf16, #tpu.memory_space<vmem>>, vector<4x128xbf16>
    %cst_46 = arith.constant dense<0.000000e+00> : vector<4x128xf32>
    %49 = tpu.matmul %47, %46, %cst_46 {dimension_numbers = #tpu.dot_dimension_numbers<[1], [0], [0], [1], [0, 0, 1, 1], [], []>} : vector<4x128xbf16>, vector<128x128xbf16>, vector<4x128xf32> -> vector<4x128xf32>
    %50 = arith.addf %42, %49 : vector<4x128xf32>
    %cst_47 = arith.constant dense<0.000000e+00> : vector<4x128xf32>
    %51 = tpu.matmul %48, %46, %cst_47 {dimension_numbers = #tpu.dot_dimension_numbers<[1], [0], [0], [1], [0, 0, 1, 1], [], []>} : vector<4x128xbf16>, vector<128x128xbf16>, vector<4x128xf32> -> vector<4x128xf32>
    %52 = arith.addf %44, %51 : vector<4x128xf32>
    %c0_48 = arith.constant 0 : index
    %c256 = arith.constant 256 : index
    %c0_49 = arith.constant 0 : index
    %53 = vector.load %arg5[%c0_48, %c256, %c0_49] : memref<1x3200x128xbf16, #tpu.memory_space<vmem>>, vector<1x128x128xbf16>
    %54 = vector.shape_cast %53 : vector<1x128x128xbf16> to vector<128x128xbf16>
    %c4 = arith.constant 4 : index
    %c0_50 = arith.constant 0 : index
    %55 = vector.load %arg11[%c4, %c0_50] : memref<72x128xbf16, #tpu.memory_space<vmem>>, vector<4x128xbf16>
    %c16 = arith.constant 16 : index
    %c0_51 = arith.constant 0 : index
    %56 = vector.load %arg11[%c16, %c0_51] : memref<72x128xbf16, #tpu.memory_space<vmem>>, vector<4x128xbf16>
    %cst_52 = arith.constant dense<0.000000e+00> : vector<4x128xf32>
    %57 = tpu.matmul %55, %54, %cst_52 {dimension_numbers = #tpu.dot_dimension_numbers<[1], [0], [0], [1], [0, 0, 1, 1], [], []>} : vector<4x128xbf16>, vector<128x128xbf16>, vector<4x128xf32> -> vector<4x128xf32>
    %58 = arith.addf %50, %57 : vector<4x128xf32>
    %cst_53 = arith.constant dense<0.000000e+00> : vector<4x128xf32>
    %59 = tpu.matmul %56, %54, %cst_53 {dimension_numbers = #tpu.dot_dimension_numbers<[1], [0], [0], [1], [0, 0, 1, 1], [], []>} : vector<4x128xbf16>, vector<128x128xbf16>, vector<4x128xf32> -> vector<4x128xf32>
    %60 = arith.addf %52, %59 : vector<4x128xf32>
    %c0_54 = arith.constant 0 : index
    %c384 = arith.constant 384 : index
    %c0_55 = arith.constant 0 : index
    %61 = vector.load %arg5[%c0_54, %c384, %c0_55] : memref<1x3200x128xbf16, #tpu.memory_space<vmem>>, vector<1x128x128xbf16>
    %62 = vector.shape_cast %61 : vector<1x128x128xbf16> to vector<128x128xbf16>
    %c6 = arith.constant 6 : index
    %c0_56 = arith.constant 0 : index
    %63 = vector.load %arg11[%c6, %c0_56] : memref<72x128xbf16, #tpu.memory_space<vmem>>, vector<4x128xbf16>
    %c18 = arith.constant 18 : index
    %c0_57 = arith.constant 0 : index
    %64 = vector.load %arg11[%c18, %c0_57] : memref<72x128xbf16, #tpu.memory_space<vmem>>, vector<4x128xbf16>
    %cst_58 = arith.constant dense<0.000000e+00> : vector<4x128xf32>
    %65 = tpu.matmul %63, %62, %cst_58 {dimension_numbers = #tpu.dot_dimension_numbers<[1], [0], [0], [1], [0, 0, 1, 1], [], []>} : vector<4x128xbf16>, vector<128x128xbf16>, vector<4x128xf32> -> vector<4x128xf32>
    %66 = arith.addf %58, %65 : vector<4x128xf32>
    %cst_59 = arith.constant dense<0.000000e+00> : vector<4x128xf32>
    %67 = tpu.matmul %64, %62, %cst_59 {dimension_numbers = #tpu.dot_dimension_numbers<[1], [0], [0], [1], [0, 0, 1, 1], [], []>} : vector<4x128xbf16>, vector<128x128xbf16>, vector<4x128xf32> -> vector<4x128xf32>
    %68 = arith.addf %60, %67 : vector<4x128xf32>
    %c0_60 = arith.constant 0 : index
    %c512 = arith.constant 512 : index
    %c0_61 = arith.constant 0 : index
    %69 = vector.load %arg5[%c0_60, %c512, %c0_61] : memref<1x3200x128xbf16, #tpu.memory_space<vmem>>, vector<1x128x128xbf16>
    %70 = vector.shape_cast %69 : vector<1x128x128xbf16> to vector<128x128xbf16>
    %c8 = arith.constant 8 : index
    %c0_62 = arith.constant 0 : index
    %71 = vector.load %arg11[%c8, %c0_62] : memref<72x128xbf16, #tpu.memory_space<vmem>>, vector<4x128xbf16>
    %c20 = arith.constant 20 : index
    %c0_63 = arith.constant 0 : index
    %72 = vector.load %arg11[%c20, %c0_63] : memref<72x128xbf16, #tpu.memory_space<vmem>>, vector<4x128xbf16>
    %cst_64 = arith.constant dense<0.000000e+00> : vector<4x128xf32>
    %73 = tpu.matmul %71, %70, %cst_64 {dimension_numbers = #tpu.dot_dimension_numbers<[1], [0], [0], [1], [0, 0, 1, 1], [], []>} : vector<4x128xbf16>, vector<128x128xbf16>, vector<4x128xf32> -> vector<4x128xf32>
    %74 = arith.addf %66, %73 : vector<4x128xf32>
    %cst_65 = arith.constant dense<0.000000e+00> : vector<4x128xf32>
    %75 = tpu.matmul %72, %70, %cst_65 {dimension_numbers = #tpu.dot_dimension_numbers<[1], [0], [0], [1], [0, 0, 1, 1], [], []>} : vector<4x128xbf16>, vector<128x128xbf16>, vector<4x128xf32> -> vector<4x128xf32>
    %76 = arith.addf %68, %75 : vector<4x128xf32>
    %c0_66 = arith.constant 0 : index
    %c640 = arith.constant 640 : index
    %c0_67 = arith.constant 0 : index
    %77 = vector.load %arg5[%c0_66, %c640, %c0_67] : memref<1x3200x128xbf16, #tpu.memory_space<vmem>>, vector<1x128x128xbf16>
    %78 = vector.shape_cast %77 : vector<1x128x128xbf16> to vector<128x128xbf16>
    %c12_68 = arith.constant 12 : index
    %c0_69 = arith.constant 0 : index
    %79 = vector.load %arg11[%c12_68, %c0_69] : memref<72x128xbf16, #tpu.memory_space<vmem>>, vector<4x128xbf16>
    %c24 = arith.constant 24 : index
    %c0_70 = arith.constant 0 : index
    %80 = vector.load %arg11[%c24, %c0_70] : memref<72x128xbf16, #tpu.memory_space<vmem>>, vector<4x128xbf16>
    %cst_71 = arith.constant dense<0.000000e+00> : vector<4x128xf32>
    %81 = tpu.matmul %79, %78, %cst_71 {dimension_numbers = #tpu.dot_dimension_numbers<[1], [0], [0], [1], [0, 0, 1, 1], [], []>} : vector<4x128xbf16>, vector<128x128xbf16>, vector<4x128xf32> -> vector<4x128xf32>
    %82 = arith.addf %74, %81 : vector<4x128xf32>
    %cst_72 = arith.constant dense<0.000000e+00> : vector<4x128xf32>
    %83 = tpu.matmul %80, %78, %cst_72 {dimension_numbers = #tpu.dot_dimension_numbers<[1], [0], [0], [1], [0, 0, 1, 1], [], []>} : vector<4x128xbf16>, vector<128x128xbf16>, vector<4x128xf32> -> vector<4x128xf32>
    %84 = arith.addf %76, %83 : vector<4x128xf32>
    %c0_73 = arith.constant 0 : index
    %c768 = arith.constant 768 : index
    %c0_74 = arith.constant 0 : index
    %85 = vector.load %arg5[%c0_73, %c768, %c0_74] : memref<1x3200x128xbf16, #tpu.memory_space<vmem>>, vector<1x128x128xbf16>
    %86 = vector.shape_cast %85 : vector<1x128x128xbf16> to vector<128x128xbf16>
    %c14_75 = arith.constant 14 : index
    %c0_76 = arith.constant 0 : index
    %87 = vector.load %arg11[%c14_75, %c0_76] : memref<72x128xbf16, #tpu.memory_space<vmem>>, vector<4x128xbf16>
    %c26 = arith.constant 26 : index
    %c0_77 = arith.constant 0 : index
    %88 = vector.load %arg11[%c26, %c0_77] : memref<72x128xbf16, #tpu.memory_space<vmem>>, vector<4x128xbf16>
    %cst_78 = arith.constant dense<0.000000e+00> : vector<4x128xf32>
    %89 = tpu.matmul %87, %86, %cst_78 {dimension_numbers = #tpu.dot_dimension_numbers<[1], [0], [0], [1], [0, 0, 1, 1], [], []>} : vector<4x128xbf16>, vector<128x128xbf16>, vector<4x128xf32> -> vector<4x128xf32>
    %90 = arith.addf %82, %89 : vector<4x128xf32>
    %cst_79 = arith.constant dense<0.000000e+00> : vector<4x128xf32>
    %91 = tpu.matmul %88, %86, %cst_79 {dimension_numbers = #tpu.dot_dimension_numbers<[1], [0], [0], [1], [0, 0, 1, 1], [], []>} : vector<4x128xbf16>, vector<128x128xbf16>, vector<4x128xf32> -> vector<4x128xf32>
    %92 = arith.addf %84, %91 : vector<4x128xf32>
    %c0_80 = arith.constant 0 : index
    %c896 = arith.constant 896 : index
    %c0_81 = arith.constant 0 : index
    %93 = vector.load %arg5[%c0_80, %c896, %c0_81] : memref<1x3200x128xbf16, #tpu.memory_space<vmem>>, vector<1x128x128xbf16>
    %94 = vector.shape_cast %93 : vector<1x128x128xbf16> to vector<128x128xbf16>
    %c16_82 = arith.constant 16 : index
    %c0_83 = arith.constant 0 : index
    %95 = vector.load %arg11[%c16_82, %c0_83] : memref<72x128xbf16, #tpu.memory_space<vmem>>, vector<4x128xbf16>
    %c28 = arith.constant 28 : index
    %c0_84 = arith.constant 0 : index
    %96 = vector.load %arg11[%c28, %c0_84] : memref<72x128xbf16, #tpu.memory_space<vmem>>, vector<4x128xbf16>
    %cst_85 = arith.constant dense<0.000000e+00> : vector<4x128xf32>
    %97 = tpu.matmul %95, %94, %cst_85 {dimension_numbers = #tpu.dot_dimension_numbers<[1], [0], [0], [1], [0, 0, 1, 1], [], []>} : vector<4x128xbf16>, vector<128x128xbf16>, vector<4x128xf32> -> vector<4x128xf32>
    %98 = arith.addf %90, %97 : vector<4x128xf32>
    %cst_86 = arith.constant dense<0.000000e+00> : vector<4x128xf32>
    %99 = tpu.matmul %96, %94, %cst_86 {dimension_numbers = #tpu.dot_dimension_numbers<[1], [0], [0], [1], [0, 0, 1, 1], [], []>} : vector<4x128xbf16>, vector<128x128xbf16>, vector<4x128xf32> -> vector<4x128xf32>
    %100 = arith.addf %92, %99 : vector<4x128xf32>
    %c0_87 = arith.constant 0 : index
    %c1024 = arith.constant 1024 : index
    %c0_88 = arith.constant 0 : index
    %101 = vector.load %arg5[%c0_87, %c1024, %c0_88] : memref<1x3200x128xbf16, #tpu.memory_space<vmem>>, vector<1x128x128xbf16>
    %102 = vector.shape_cast %101 : vector<1x128x128xbf16> to vector<128x128xbf16>
    %c18_89 = arith.constant 18 : index
    %c0_90 = arith.constant 0 : index
    %103 = vector.load %arg11[%c18_89, %c0_90] : memref<72x128xbf16, #tpu.memory_space<vmem>>, vector<4x128xbf16>
    %c30 = arith.constant 30 : index
    %c0_91 = arith.constant 0 : index
    %104 = vector.load %arg11[%c30, %c0_91] : memref<72x128xbf16, #tpu.memory_space<vmem>>, vector<4x128xbf16>
    %cst_92 = arith.constant dense<0.000000e+00> : vector<4x128xf32>
    %105 = tpu.matmul %103, %102, %cst_92 {dimension_numbers = #tpu.dot_dimension_numbers<[1], [0], [0], [1], [0, 0, 1, 1], [], []>} : vector<4x128xbf16>, vector<128x128xbf16>, vector<4x128xf32> -> vector<4x128xf32>
    %106 = arith.addf %98, %105 : vector<4x128xf32>
    %cst_93 = arith.constant dense<0.000000e+00> : vector<4x128xf32>
    %107 = tpu.matmul %104, %102, %cst_93 {dimension_numbers = #tpu.dot_dimension_numbers<[1], [0], [0], [1], [0, 0, 1, 1], [], []>} : vector<4x128xbf16>, vector<128x128xbf16>, vector<4x128xf32> -> vector<4x128xf32>
    %108 = arith.addf %100, %107 : vector<4x128xf32>
    %c0_94 = arith.constant 0 : index
    %c1152 = arith.constant 1152 : index
    %c0_95 = arith.constant 0 : index
    %109 = vector.load %arg5[%c0_94, %c1152, %c0_95] : memref<1x3200x128xbf16, #tpu.memory_space<vmem>>, vector<1x128x128xbf16>
    %110 = vector.shape_cast %109 : vector<1x128x128xbf16> to vector<128x128xbf16>
    %c20_96 = arith.constant 20 : index
    %c0_97 = arith.constant 0 : index
    %111 = vector.load %arg11[%c20_96, %c0_97] : memref<72x128xbf16, #tpu.memory_space<vmem>>, vector<4x128xbf16>
    %c32 = arith.constant 32 : index
    %c0_98 = arith.constant 0 : index
    %112 = vector.load %arg11[%c32, %c0_98] : memref<72x128xbf16, #tpu.memory_space<vmem>>, vector<4x128xbf16>
    %cst_99 = arith.constant dense<0.000000e+00> : vector<4x128xf32>
    %113 = tpu.matmul %111, %110, %cst_99 {dimension_numbers = #tpu.dot_dimension_numbers<[1], [0], [0], [1], [0, 0, 1, 1], [], []>} : vector<4x128xbf16>, vector<128x128xbf16>, vector<4x128xf32> -> vector<4x128xf32>
    %114 = arith.addf %106, %113 : vector<4x128xf32>
    %cst_100 = arith.constant dense<0.000000e+00> : vector<4x128xf32>
    %115 = tpu.matmul %112, %110, %cst_100 {dimension_numbers = #tpu.dot_dimension_numbers<[1], [0], [0], [1], [0, 0, 1, 1], [], []>} : vector<4x128xbf16>, vector<128x128xbf16>, vector<4x128xf32> -> vector<4x128xf32>
    %116 = arith.addf %108, %115 : vector<4x128xf32>
    %c0_101 = arith.constant 0 : index
    %c1280 = arith.constant 1280 : index
    %c0_102 = arith.constant 0 : index
    %117 = vector.load %arg5[%c0_101, %c1280, %c0_102] : memref<1x3200x128xbf16, #tpu.memory_space<vmem>>, vector<1x128x128xbf16>
    %118 = vector.shape_cast %117 : vector<1x128x128xbf16> to vector<128x128xbf16>
    %c24_103 = arith.constant 24 : index
    %c0_104 = arith.constant 0 : index
    %119 = vector.load %arg11[%c24_103, %c0_104] : memref<72x128xbf16, #tpu.memory_space<vmem>>, vector<4x128xbf16>
    %c36 = arith.constant 36 : index
    %c0_105 = arith.constant 0 : index
    %120 = vector.load %arg11[%c36, %c0_105] : memref<72x128xbf16, #tpu.memory_space<vmem>>, vector<4x128xbf16>
    %cst_106 = arith.constant dense<0.000000e+00> : vector<4x128xf32>
    %121 = tpu.matmul %119, %118, %cst_106 {dimension_numbers = #tpu.dot_dimension_numbers<[1], [0], [0], [1], [0, 0, 1, 1], [], []>} : vector<4x128xbf16>, vector<128x128xbf16>, vector<4x128xf32> -> vector<4x128xf32>
    %122 = arith.addf %114, %121 : vector<4x128xf32>
    %cst_107 = arith.constant dense<0.000000e+00> : vector<4x128xf32>
    %123 = tpu.matmul %120, %118, %cst_107 {dimension_numbers = #tpu.dot_dimension_numbers<[1], [0], [0], [1], [0, 0, 1, 1], [], []>} : vector<4x128xbf16>, vector<128x128xbf16>, vector<4x128xf32> -> vector<4x128xf32>
    %124 = arith.addf %116, %123 : vector<4x128xf32>
    %c0_108 = arith.constant 0 : index
    %c1408 = arith.constant 1408 : index
    %c0_109 = arith.constant 0 : index
    %125 = vector.load %arg5[%c0_108, %c1408, %c0_109] : memref<1x3200x128xbf16, #tpu.memory_space<vmem>>, vector<1x128x128xbf16>
    %126 = vector.shape_cast %125 : vector<1x128x128xbf16> to vector<128x128xbf16>
    %c26_110 = arith.constant 26 : index
    %c0_111 = arith.constant 0 : index
    %127 = vector.load %arg11[%c26_110, %c0_111] : memref<72x128xbf16, #tpu.memory_space<vmem>>, vector<4x128xbf16>
    %c38 = arith.constant 38 : index
    %c0_112 = arith.constant 0 : index
    %128 = vector.load %arg11[%c38, %c0_112] : memref<72x128xbf16, #tpu.memory_space<vmem>>, vector<4x128xbf16>
    %cst_113 = arith.constant dense<0.000000e+00> : vector<4x128xf32>
    %129 = tpu.matmul %127, %126, %cst_113 {dimension_numbers = #tpu.dot_dimension_numbers<[1], [0], [0], [1], [0, 0, 1, 1], [], []>} : vector<4x128xbf16>, vector<128x128xbf16>, vector<4x128xf32> -> vector<4x128xf32>
    %130 = arith.addf %122, %129 : vector<4x128xf32>
    %cst_114 = arith.constant dense<0.000000e+00> : vector<4x128xf32>
    %131 = tpu.matmul %128, %126, %cst_114 {dimension_numbers = #tpu.dot_dimension_numbers<[1], [0], [0], [1], [0, 0, 1, 1], [], []>} : vector<4x128xbf16>, vector<128x128xbf16>, vector<4x128xf32> -> vector<4x128xf32>
    %132 = arith.addf %124, %131 : vector<4x128xf32>
    %c0_115 = arith.constant 0 : index
    %c1536 = arith.constant 1536 : index
    %c0_116 = arith.constant 0 : index
    %133 = vector.load %arg5[%c0_115, %c1536, %c0_116] : memref<1x3200x128xbf16, #tpu.memory_space<vmem>>, vector<1x128x128xbf16>
    %134 = vector.shape_cast %133 : vector<1x128x128xbf16> to vector<128x128xbf16>
    %c28_117 = arith.constant 28 : index
    %c0_118 = arith.constant 0 : index
    %135 = vector.load %arg11[%c28_117, %c0_118] : memref<72x128xbf16, #tpu.memory_space<vmem>>, vector<4x128xbf16>
    %c40 = arith.constant 40 : index
    %c0_119 = arith.constant 0 : index
    %136 = vector.load %arg11[%c40, %c0_119] : memref<72x128xbf16, #tpu.memory_space<vmem>>, vector<4x128xbf16>
    %cst_120 = arith.constant dense<0.000000e+00> : vector<4x128xf32>
    %137 = tpu.matmul %135, %134, %cst_120 {dimension_numbers = #tpu.dot_dimension_numbers<[1], [0], [0], [1], [0, 0, 1, 1], [], []>} : vector<4x128xbf16>, vector<128x128xbf16>, vector<4x128xf32> -> vector<4x128xf32>
    %138 = arith.addf %130, %137 : vector<4x128xf32>
    %cst_121 = arith.constant dense<0.000000e+00> : vector<4x128xf32>
    %139 = tpu.matmul %136, %134, %cst_121 {dimension_numbers = #tpu.dot_dimension_numbers<[1], [0], [0], [1], [0, 0, 1, 1], [], []>} : vector<4x128xbf16>, vector<128x128xbf16>, vector<4x128xf32> -> vector<4x128xf32>
    %140 = arith.addf %132, %139 : vector<4x128xf32>
    %c0_122 = arith.constant 0 : index
    %c1664 = arith.constant 1664 : index
    %c0_123 = arith.constant 0 : index
    %141 = vector.load %arg5[%c0_122, %c1664, %c0_123] : memref<1x3200x128xbf16, #tpu.memory_space<vmem>>, vector<1x128x128xbf16>
    %142 = vector.shape_cast %141 : vector<1x128x128xbf16> to vector<128x128xbf16>
    %c30_124 = arith.constant 30 : index
    %c0_125 = arith.constant 0 : index
    %143 = vector.load %arg11[%c30_124, %c0_125] : memref<72x128xbf16, #tpu.memory_space<vmem>>, vector<4x128xbf16>
    %c42 = arith.constant 42 : index
    %c0_126 = arith.constant 0 : index
    %144 = vector.load %arg11[%c42, %c0_126] : memref<72x128xbf16, #tpu.memory_space<vmem>>, vector<4x128xbf16>
    %cst_127 = arith.constant dense<0.000000e+00> : vector<4x128xf32>
    %145 = tpu.matmul %143, %142, %cst_127 {dimension_numbers = #tpu.dot_dimension_numbers<[1], [0], [0], [1], [0, 0, 1, 1], [], []>} : vector<4x128xbf16>, vector<128x128xbf16>, vector<4x128xf32> -> vector<4x128xf32>
    %146 = arith.addf %138, %145 : vector<4x128xf32>
    %cst_128 = arith.constant dense<0.000000e+00> : vector<4x128xf32>
    %147 = tpu.matmul %144, %142, %cst_128 {dimension_numbers = #tpu.dot_dimension_numbers<[1], [0], [0], [1], [0, 0, 1, 1], [], []>} : vector<4x128xbf16>, vector<128x128xbf16>, vector<4x128xf32> -> vector<4x128xf32>
    %148 = arith.addf %140, %147 : vector<4x128xf32>
    %c0_129 = arith.constant 0 : index
    %c1792 = arith.constant 1792 : index
    %c0_130 = arith.constant 0 : index
    %149 = vector.load %arg5[%c0_129, %c1792, %c0_130] : memref<1x3200x128xbf16, #tpu.memory_space<vmem>>, vector<1x128x128xbf16>
    %150 = vector.shape_cast %149 : vector<1x128x128xbf16> to vector<128x128xbf16>
    %c32_131 = arith.constant 32 : index
    %c0_132 = arith.constant 0 : index
    %151 = vector.load %arg11[%c32_131, %c0_132] : memref<72x128xbf16, #tpu.memory_space<vmem>>, vector<4x128xbf16>
    %c44 = arith.constant 44 : index
    %c0_133 = arith.constant 0 : index
    %152 = vector.load %arg11[%c44, %c0_133] : memref<72x128xbf16, #tpu.memory_space<vmem>>, vector<4x128xbf16>
    %cst_134 = arith.constant dense<0.000000e+00> : vector<4x128xf32>
    %153 = tpu.matmul %151, %150, %cst_134 {dimension_numbers = #tpu.dot_dimension_numbers<[1], [0], [0], [1], [0, 0, 1, 1], [], []>} : vector<4x128xbf16>, vector<128x128xbf16>, vector<4x128xf32> -> vector<4x128xf32>
    %154 = arith.addf %146, %153 : vector<4x128xf32>
    %cst_135 = arith.constant dense<0.000000e+00> : vector<4x128xf32>
    %155 = tpu.matmul %152, %150, %cst_135 {dimension_numbers = #tpu.dot_dimension_numbers<[1], [0], [0], [1], [0, 0, 1, 1], [], []>} : vector<4x128xbf16>, vector<128x128xbf16>, vector<4x128xf32> -> vector<4x128xf32>
    %156 = arith.addf %148, %155 : vector<4x128xf32>
    %c0_136 = arith.constant 0 : index
    %c1920 = arith.constant 1920 : index
    %c0_137 = arith.constant 0 : index
    %157 = vector.load %arg5[%c0_136, %c1920, %c0_137] : memref<1x3200x128xbf16, #tpu.memory_space<vmem>>, vector<1x128x128xbf16>
    %158 = vector.shape_cast %157 : vector<1x128x128xbf16> to vector<128x128xbf16>
    %c36_138 = arith.constant 36 : index
    %c0_139 = arith.constant 0 : index
    %159 = vector.load %arg11[%c36_138, %c0_139] : memref<72x128xbf16, #tpu.memory_space<vmem>>, vector<4x128xbf16>
    %c48 = arith.constant 48 : index
    %c0_140 = arith.constant 0 : index
    %160 = vector.load %arg11[%c48, %c0_140] : memref<72x128xbf16, #tpu.memory_space<vmem>>, vector<4x128xbf16>
    %cst_141 = arith.constant dense<0.000000e+00> : vector<4x128xf32>
    %161 = tpu.matmul %159, %158, %cst_141 {dimension_numbers = #tpu.dot_dimension_numbers<[1], [0], [0], [1], [0, 0, 1, 1], [], []>} : vector<4x128xbf16>, vector<128x128xbf16>, vector<4x128xf32> -> vector<4x128xf32>
    %162 = arith.addf %154, %161 : vector<4x128xf32>
    %cst_142 = arith.constant dense<0.000000e+00> : vector<4x128xf32>
    %163 = tpu.matmul %160, %158, %cst_142 {dimension_numbers = #tpu.dot_dimension_numbers<[1], [0], [0], [1], [0, 0, 1, 1], [], []>} : vector<4x128xbf16>, vector<128x128xbf16>, vector<4x128xf32> -> vector<4x128xf32>
    %164 = arith.addf %156, %163 : vector<4x128xf32>
    %c0_143 = arith.constant 0 : index
    %c2048 = arith.constant 2048 : index
    %c0_144 = arith.constant 0 : index
    %165 = vector.load %arg5[%c0_143, %c2048, %c0_144] : memref<1x3200x128xbf16, #tpu.memory_space<vmem>>, vector<1x128x128xbf16>
    %166 = vector.shape_cast %165 : vector<1x128x128xbf16> to vector<128x128xbf16>
    %c38_145 = arith.constant 38 : index
    %c0_146 = arith.constant 0 : index
    %167 = vector.load %arg11[%c38_145, %c0_146] : memref<72x128xbf16, #tpu.memory_space<vmem>>, vector<4x128xbf16>
    %c50 = arith.constant 50 : index
    %c0_147 = arith.constant 0 : index
    %168 = vector.load %arg11[%c50, %c0_147] : memref<72x128xbf16, #tpu.memory_space<vmem>>, vector<4x128xbf16>
    %cst_148 = arith.constant dense<0.000000e+00> : vector<4x128xf32>
    %169 = tpu.matmul %167, %166, %cst_148 {dimension_numbers = #tpu.dot_dimension_numbers<[1], [0], [0], [1], [0, 0, 1, 1], [], []>} : vector<4x128xbf16>, vector<128x128xbf16>, vector<4x128xf32> -> vector<4x128xf32>
    %170 = arith.addf %162, %169 : vector<4x128xf32>
    %cst_149 = arith.constant dense<0.000000e+00> : vector<4x128xf32>
    %171 = tpu.matmul %168, %166, %cst_149 {dimension_numbers = #tpu.dot_dimension_numbers<[1], [0], [0], [1], [0, 0, 1, 1], [], []>} : vector<4x128xbf16>, vector<128x128xbf16>, vector<4x128xf32> -> vector<4x128xf32>
    %172 = arith.addf %164, %171 : vector<4x128xf32>
    %c0_150 = arith.constant 0 : index
    %c2176 = arith.constant 2176 : index
    %c0_151 = arith.constant 0 : index
    %173 = vector.load %arg5[%c0_150, %c2176, %c0_151] : memref<1x3200x128xbf16, #tpu.memory_space<vmem>>, vector<1x128x128xbf16>
    %174 = vector.shape_cast %173 : vector<1x128x128xbf16> to vector<128x128xbf16>
    %c40_152 = arith.constant 40 : index
    %c0_153 = arith.constant 0 : index
    %175 = vector.load %arg11[%c40_152, %c0_153] : memref<72x128xbf16, #tpu.memory_space<vmem>>, vector<4x128xbf16>
    %c52 = arith.constant 52 : index
    %c0_154 = arith.constant 0 : index
    %176 = vector.load %arg11[%c52, %c0_154] : memref<72x128xbf16, #tpu.memory_space<vmem>>, vector<4x128xbf16>
    %cst_155 = arith.constant dense<0.000000e+00> : vector<4x128xf32>
    %177 = tpu.matmul %175, %174, %cst_155 {dimension_numbers = #tpu.dot_dimension_numbers<[1], [0], [0], [1], [0, 0, 1, 1], [], []>} : vector<4x128xbf16>, vector<128x128xbf16>, vector<4x128xf32> -> vector<4x128xf32>
    %178 = arith.addf %170, %177 : vector<4x128xf32>
    %cst_156 = arith.constant dense<0.000000e+00> : vector<4x128xf32>
    %179 = tpu.matmul %176, %174, %cst_156 {dimension_numbers = #tpu.dot_dimension_numbers<[1], [0], [0], [1], [0, 0, 1, 1], [], []>} : vector<4x128xbf16>, vector<128x128xbf16>, vector<4x128xf32> -> vector<4x128xf32>
    %180 = arith.addf %172, %179 : vector<4x128xf32>
    %c0_157 = arith.constant 0 : index
    %c2304 = arith.constant 2304 : index
    %c0_158 = arith.constant 0 : index
    %181 = vector.load %arg5[%c0_157, %c2304, %c0_158] : memref<1x3200x128xbf16, #tpu.memory_space<vmem>>, vector<1x128x128xbf16>
    %182 = vector.shape_cast %181 : vector<1x128x128xbf16> to vector<128x128xbf16>
    %c42_159 = arith.constant 42 : index
    %c0_160 = arith.constant 0 : index
    %183 = vector.load %arg11[%c42_159, %c0_160] : memref<72x128xbf16, #tpu.memory_space<vmem>>, vector<4x128xbf16>
    %c54 = arith.constant 54 : index
    %c0_161 = arith.constant 0 : index
    %184 = vector.load %arg11[%c54, %c0_161] : memref<72x128xbf16, #tpu.memory_space<vmem>>, vector<4x128xbf16>
    %cst_162 = arith.constant dense<0.000000e+00> : vector<4x128xf32>
    %185 = tpu.matmul %183, %182, %cst_162 {dimension_numbers = #tpu.dot_dimension_numbers<[1], [0], [0], [1], [0, 0, 1, 1], [], []>} : vector<4x128xbf16>, vector<128x128xbf16>, vector<4x128xf32> -> vector<4x128xf32>
    %186 = arith.addf %178, %185 : vector<4x128xf32>
    %cst_163 = arith.constant dense<0.000000e+00> : vector<4x128xf32>
    %187 = tpu.matmul %184, %182, %cst_163 {dimension_numbers = #tpu.dot_dimension_numbers<[1], [0], [0], [1], [0, 0, 1, 1], [], []>} : vector<4x128xbf16>, vector<128x128xbf16>, vector<4x128xf32> -> vector<4x128xf32>
    %188 = arith.addf %180, %187 : vector<4x128xf32>
    %c0_164 = arith.constant 0 : index
    %c2432 = arith.constant 2432 : index
    %c0_165 = arith.constant 0 : index
    %189 = vector.load %arg5[%c0_164, %c2432, %c0_165] : memref<1x3200x128xbf16, #tpu.memory_space<vmem>>, vector<1x128x128xbf16>
    %190 = vector.shape_cast %189 : vector<1x128x128xbf16> to vector<128x128xbf16>
    %c44_166 = arith.constant 44 : index
    %c0_167 = arith.constant 0 : index
    %191 = vector.load %arg11[%c44_166, %c0_167] : memref<72x128xbf16, #tpu.memory_space<vmem>>, vector<4x128xbf16>
    %c56 = arith.constant 56 : index
    %c0_168 = arith.constant 0 : index
    %192 = vector.load %arg11[%c56, %c0_168] : memref<72x128xbf16, #tpu.memory_space<vmem>>, vector<4x128xbf16>
    %cst_169 = arith.constant dense<0.000000e+00> : vector<4x128xf32>
    %193 = tpu.matmul %191, %190, %cst_169 {dimension_numbers = #tpu.dot_dimension_numbers<[1], [0], [0], [1], [0, 0, 1, 1], [], []>} : vector<4x128xbf16>, vector<128x128xbf16>, vector<4x128xf32> -> vector<4x128xf32>
    %194 = arith.addf %186, %193 : vector<4x128xf32>
    %cst_170 = arith.constant dense<0.000000e+00> : vector<4x128xf32>
    %195 = tpu.matmul %192, %190, %cst_170 {dimension_numbers = #tpu.dot_dimension_numbers<[1], [0], [0], [1], [0, 0, 1, 1], [], []>} : vector<4x128xbf16>, vector<128x128xbf16>, vector<4x128xf32> -> vector<4x128xf32>
    %196 = arith.addf %188, %195 : vector<4x128xf32>
    %c0_171 = arith.constant 0 : index
    %c2560 = arith.constant 2560 : index
    %c0_172 = arith.constant 0 : index
    %197 = vector.load %arg5[%c0_171, %c2560, %c0_172] : memref<1x3200x128xbf16, #tpu.memory_space<vmem>>, vector<1x128x128xbf16>
    %198 = vector.shape_cast %197 : vector<1x128x128xbf16> to vector<128x128xbf16>
    %c48_173 = arith.constant 48 : index
    %c0_174 = arith.constant 0 : index
    %199 = vector.load %arg11[%c48_173, %c0_174] : memref<72x128xbf16, #tpu.memory_space<vmem>>, vector<4x128xbf16>
    %c60 = arith.constant 60 : index
    %c0_175 = arith.constant 0 : index
    %200 = vector.load %arg11[%c60, %c0_175] : memref<72x128xbf16, #tpu.memory_space<vmem>>, vector<4x128xbf16>
    %cst_176 = arith.constant dense<0.000000e+00> : vector<4x128xf32>
    %201 = tpu.matmul %199, %198, %cst_176 {dimension_numbers = #tpu.dot_dimension_numbers<[1], [0], [0], [1], [0, 0, 1, 1], [], []>} : vector<4x128xbf16>, vector<128x128xbf16>, vector<4x128xf32> -> vector<4x128xf32>
    %202 = arith.addf %194, %201 : vector<4x128xf32>
    %cst_177 = arith.constant dense<0.000000e+00> : vector<4x128xf32>
    %203 = tpu.matmul %200, %198, %cst_177 {dimension_numbers = #tpu.dot_dimension_numbers<[1], [0], [0], [1], [0, 0, 1, 1], [], []>} : vector<4x128xbf16>, vector<128x128xbf16>, vector<4x128xf32> -> vector<4x128xf32>
    %204 = arith.addf %196, %203 : vector<4x128xf32>
    %c0_178 = arith.constant 0 : index
    %c2688 = arith.constant 2688 : index
    %c0_179 = arith.constant 0 : index
    %205 = vector.load %arg5[%c0_178, %c2688, %c0_179] : memref<1x3200x128xbf16, #tpu.memory_space<vmem>>, vector<1x128x128xbf16>
    %206 = vector.shape_cast %205 : vector<1x128x128xbf16> to vector<128x128xbf16>
    %c50_180 = arith.constant 50 : index
    %c0_181 = arith.constant 0 : index
    %207 = vector.load %arg11[%c50_180, %c0_181] : memref<72x128xbf16, #tpu.memory_space<vmem>>, vector<4x128xbf16>
    %c62 = arith.constant 62 : index
    %c0_182 = arith.constant 0 : index
    %208 = vector.load %arg11[%c62, %c0_182] : memref<72x128xbf16, #tpu.memory_space<vmem>>, vector<4x128xbf16>
    %cst_183 = arith.constant dense<0.000000e+00> : vector<4x128xf32>
    %209 = tpu.matmul %207, %206, %cst_183 {dimension_numbers = #tpu.dot_dimension_numbers<[1], [0], [0], [1], [0, 0, 1, 1], [], []>} : vector<4x128xbf16>, vector<128x128xbf16>, vector<4x128xf32> -> vector<4x128xf32>
    %210 = arith.addf %202, %209 : vector<4x128xf32>
    %cst_184 = arith.constant dense<0.000000e+00> : vector<4x128xf32>
    %211 = tpu.matmul %208, %206, %cst_184 {dimension_numbers = #tpu.dot_dimension_numbers<[1], [0], [0], [1], [0, 0, 1, 1], [], []>} : vector<4x128xbf16>, vector<128x128xbf16>, vector<4x128xf32> -> vector<4x128xf32>
    %212 = arith.addf %204, %211 : vector<4x128xf32>
    %c0_185 = arith.constant 0 : index
    %c2816 = arith.constant 2816 : index
    %c0_186 = arith.constant 0 : index
    %213 = vector.load %arg5[%c0_185, %c2816, %c0_186] : memref<1x3200x128xbf16, #tpu.memory_space<vmem>>, vector<1x128x128xbf16>
    %214 = vector.shape_cast %213 : vector<1x128x128xbf16> to vector<128x128xbf16>
    %c52_187 = arith.constant 52 : index
    %c0_188 = arith.constant 0 : index
    %215 = vector.load %arg11[%c52_187, %c0_188] : memref<72x128xbf16, #tpu.memory_space<vmem>>, vector<4x128xbf16>
    %c64 = arith.constant 64 : index
    %c0_189 = arith.constant 0 : index
    %216 = vector.load %arg11[%c64, %c0_189] : memref<72x128xbf16, #tpu.memory_space<vmem>>, vector<4x128xbf16>
    %cst_190 = arith.constant dense<0.000000e+00> : vector<4x128xf32>
    %217 = tpu.matmul %215, %214, %cst_190 {dimension_numbers = #tpu.dot_dimension_numbers<[1], [0], [0], [1], [0, 0, 1, 1], [], []>} : vector<4x128xbf16>, vector<128x128xbf16>, vector<4x128xf32> -> vector<4x128xf32>
    %218 = arith.addf %210, %217 : vector<4x128xf32>
    %cst_191 = arith.constant dense<0.000000e+00> : vector<4x128xf32>
    %219 = tpu.matmul %216, %214, %cst_191 {dimension_numbers = #tpu.dot_dimension_numbers<[1], [0], [0], [1], [0, 0, 1, 1], [], []>} : vector<4x128xbf16>, vector<128x128xbf16>, vector<4x128xf32> -> vector<4x128xf32>
    %220 = arith.addf %212, %219 : vector<4x128xf32>
    %c0_192 = arith.constant 0 : index
    %c2944 = arith.constant 2944 : index
    %c0_193 = arith.constant 0 : index
    %221 = vector.load %arg5[%c0_192, %c2944, %c0_193] : memref<1x3200x128xbf16, #tpu.memory_space<vmem>>, vector<1x128x128xbf16>
    %222 = vector.shape_cast %221 : vector<1x128x128xbf16> to vector<128x128xbf16>
    %c54_194 = arith.constant 54 : index
    %c0_195 = arith.constant 0 : index
    %223 = vector.load %arg11[%c54_194, %c0_195] : memref<72x128xbf16, #tpu.memory_space<vmem>>, vector<4x128xbf16>
    %c66 = arith.constant 66 : index
    %c0_196 = arith.constant 0 : index
    %224 = vector.load %arg11[%c66, %c0_196] : memref<72x128xbf16, #tpu.memory_space<vmem>>, vector<4x128xbf16>
    %cst_197 = arith.constant dense<0.000000e+00> : vector<4x128xf32>
    %225 = tpu.matmul %223, %222, %cst_197 {dimension_numbers = #tpu.dot_dimension_numbers<[1], [0], [0], [1], [0, 0, 1, 1], [], []>} : vector<4x128xbf16>, vector<128x128xbf16>, vector<4x128xf32> -> vector<4x128xf32>
    %226 = arith.addf %218, %225 : vector<4x128xf32>
    %cst_198 = arith.constant dense<0.000000e+00> : vector<4x128xf32>
    %227 = tpu.matmul %224, %222, %cst_198 {dimension_numbers = #tpu.dot_dimension_numbers<[1], [0], [0], [1], [0, 0, 1, 1], [], []>} : vector<4x128xbf16>, vector<128x128xbf16>, vector<4x128xf32> -> vector<4x128xf32>
    %228 = arith.addf %220, %227 : vector<4x128xf32>
    %c0_199 = arith.constant 0 : index
    %c3072 = arith.constant 3072 : index
    %c0_200 = arith.constant 0 : index
    %229 = vector.load %arg5[%c0_199, %c3072, %c0_200] : memref<1x3200x128xbf16, #tpu.memory_space<vmem>>, vector<1x128x128xbf16>
    %230 = vector.shape_cast %229 : vector<1x128x128xbf16> to vector<128x128xbf16>
    %c56_201 = arith.constant 56 : index
    %c0_202 = arith.constant 0 : index
    %231 = vector.load %arg11[%c56_201, %c0_202] : memref<72x128xbf16, #tpu.memory_space<vmem>>, vector<4x128xbf16>
    %c68 = arith.constant 68 : index
    %c0_203 = arith.constant 0 : index
    %232 = vector.load %arg11[%c68, %c0_203] : memref<72x128xbf16, #tpu.memory_space<vmem>>, vector<4x128xbf16>
    %cst_204 = arith.constant dense<0.000000e+00> : vector<4x128xf32>
    %233 = tpu.matmul %231, %230, %cst_204 {dimension_numbers = #tpu.dot_dimension_numbers<[1], [0], [0], [1], [0, 0, 1, 1], [], []>} : vector<4x128xbf16>, vector<128x128xbf16>, vector<4x128xf32> -> vector<4x128xf32>
    %234 = arith.addf %226, %233 : vector<4x128xf32>
    %cst_205 = arith.constant dense<0.000000e+00> : vector<4x128xf32>
    %235 = tpu.matmul %232, %230, %cst_205 {dimension_numbers = #tpu.dot_dimension_numbers<[1], [0], [0], [1], [0, 0, 1, 1], [], []>} : vector<4x128xbf16>, vector<128x128xbf16>, vector<4x128xf32> -> vector<4x128xf32>
    %236 = arith.addf %228, %235 : vector<4x128xf32>
    %237 = vector.extract_strided_slice %234 {offsets = [0, 0], sizes = [2, 128], strides = [1, 1]} : vector<4x128xf32> to vector<2x128xf32>
    %238 = vector.extract_strided_slice %234 {offsets = [2, 0], sizes = [2, 128], strides = [1, 1]} : vector<4x128xf32> to vector<2x128xf32>
    %239 = arith.maximumf %237, %238 : vector<2x128xf32>
    %240 = vector.extract_strided_slice %236 {offsets = [0, 0], sizes = [2, 128], strides = [1, 1]} : vector<4x128xf32> to vector<2x128xf32>
    %241 = vector.extract_strided_slice %236 {offsets = [2, 0], sizes = [2, 128], strides = [1, 1]} : vector<4x128xf32> to vector<2x128xf32>
    %242 = arith.maximumf %240, %241 : vector<2x128xf32>
    %243 = arith.maximumf %239, %242 : vector<2x128xf32>
    %c0_206 = arith.constant 0 : index
    %c0_207 = arith.constant 0 : index
    %c0_208 = arith.constant 0 : index
    %244 = vector.load %arg6[%c0_206, %c0_207, %c0_208] : memref<1x1x128xf32, #tpu.memory_space<vmem>>, vector<1x1x128xf32>
    %245 = vector.shape_cast %244 : vector<1x1x128xf32> to vector<1x128xf32>
    %246 = vector.broadcast %245 : vector<1x128xf32> to vector<2x128xf32>
    %247 = arith.mulf %243, %246 : vector<2x128xf32>
    %c0_209 = arith.constant 0 : index
    %c0_210 = arith.constant 0 : index
    %c0_211 = arith.constant 0 : index
    %248 = vector.load %arg7[%c0_209, %c0_210, %c0_211] : memref<1x1x128xf32, #tpu.memory_space<vmem>>, vector<1x1x128xf32>
    %249 = vector.shape_cast %248 : vector<1x1x128xf32> to vector<1x128xf32>
    %250 = vector.broadcast %249 : vector<1x128xf32> to vector<2x128xf32>
    %251 = arith.addf %247, %250 : vector<2x128xf32>
    %cst_212 = arith.constant 0.000000e+00 : f32
    %252 = vector.broadcast %cst_212 : f32 to vector<2x128xf32>
    %253 = arith.maximumf %251, %252 : vector<2x128xf32>
    %254 = arith.truncf %253 : vector<2x128xf32> to vector<2x128xbf16>
    %c0_213 = arith.constant 0 : index
    %c0_214 = arith.constant 0 : index
    %c0_215 = arith.constant 0 : index
    %255 = vector.load %arg8[%c0_213, %c0_214, %c0_215] : memref<1x128x128xbf16, #tpu.memory_space<vmem>>, vector<1x128x128xbf16>
    %256 = vector.shape_cast %255 : vector<1x128x128xbf16> to vector<128x128xbf16>
    %cst_216 = arith.constant dense<0.000000e+00> : vector<2x128xf32>
    %257 = tpu.matmul %254, %256, %cst_216 {dimension_numbers = #tpu.dot_dimension_numbers<[1], [0], [0], [1], [0, 0, 1, 1], [], []>} : vector<2x128xbf16>, vector<128x128xbf16>, vector<2x128xf32> -> vector<2x128xf32>
    %c0_217 = arith.constant 0 : index
    %c0_218 = arith.constant 0 : index
    %c0_219 = arith.constant 0 : index
    %258 = vector.load %arg9[%c0_217, %c0_218, %c0_219] : memref<1x1x128xf32, #tpu.memory_space<vmem>>, vector<1x1x128xf32>
    %259 = vector.shape_cast %258 : vector<1x1x128xf32> to vector<1x128xf32>
    %260 = vector.broadcast %259 : vector<1x128xf32> to vector<2x128xf32>
    %261 = arith.addf %257, %260 : vector<2x128xf32>
    %cst_220 = arith.constant 0.000000e+00 : f32
    %262 = vector.broadcast %cst_220 : f32 to vector<2x128xf32>
    %263 = arith.maximumf %261, %262 : vector<2x128xf32>
    %c0_221 = arith.constant 0 : index
    %c0_222 = arith.constant 0 : index
    %c0_223 = arith.constant 0 : index
    %264 = vector.load %arg10[%c0_221, %c0_222, %c0_223] : memref<1x2x128xf32, #tpu.memory_space<vmem>>, vector<1x2x128xf32>
    %265 = vector.shape_cast %264 : vector<1x2x128xf32> to vector<2x128xf32>
    %266 = vector.shape_cast %263 : vector<2x128xf32> to vector<1x2x128xf32>
    tpu.vector_store %arg10[%c0_221, %c0_222, %c0_223], %266 {strides = array<i32>} : memref<1x2x128xf32, #tpu.memory_space<vmem>>, vector<1x2x128xf32>,
    return
  }
  func.func @transform_0(%arg0: i32) -> (i32, i32, i32) {
    %c0_i32 = arith.constant 0 : i32
    %c0_i32_0 = arith.constant 0 : i32
    %c0_i32_1 = arith.constant 0 : i32
    return %arg0, %c0_i32, %c0_i32_0 : i32, i32, i32
  }
  func.func @transform_1(%arg0: i32) -> (i32, i32, i32) {
    %c0_i32 = arith.constant 0 : i32
    %c0_i32_0 = arith.constant 0 : i32
    %c0_i32_1 = arith.constant 0 : i32
    return %arg0, %c0_i32, %c0_i32_0 : i32, i32, i32
  }
  func.func @transform_2(%arg0: i32) -> (i32, i32, i32) {
    %c0_i32 = arith.constant 0 : i32
    %c0_i32_0 = arith.constant 0 : i32
    %c0_i32_1 = arith.constant 0 : i32
    return %arg0, %c0_i32, %c0_i32_0 : i32, i32, i32
  }
  func.func @transform_3(%arg0: i32) -> (i32, i32, i32) {
    %c0_i32 = arith.constant 0 : i32
    %c0_i32_0 = arith.constant 0 : i32
    %c0_i32_1 = arith.constant 0 : i32
    return %arg0, %c0_i32, %c0_i32_0 : i32, i32, i32
  }
  func.func @transform_4(%arg0: i32) -> (i32, i32, i32) {
    %c0_i32 = arith.constant 0 : i32
    %c0_i32_0 = arith.constant 0 : i32
    %c0_i32_1 = arith.constant 0 : i32
    return %arg0, %c0_i32, %c0_i32_0 : i32, i32, i32
  }
  func.func @transform_5(%arg0: i32) -> (i32, i32, i32) {
    %c0_i32 = arith.constant 0 : i32
    %c0_i32_0 = arith.constant 0 : i32
    %c0_i32_1 = arith.constant 0 : i32
    return %arg0, %c0_i32, %c0_i32_0 : i32, i32, i32
  }
  func.func @transform_6(%arg0: i32) -> (i32, i32, i32) {
    %c0_i32 = arith.constant 0 : i32
    %c0_i32_0 = arith.constant 0 : i32
    %c0_i32_1 = arith.constant 0 : i32
    return %arg0, %c0_i32, %c0_i32_0 : i32, i32, i32
  }
  func.func @transform_7(%arg0: i32) -> (i32, i32, i32) {
    %c0_i32 = arith.constant 0 : i32
    %c0_i32_0 = arith.constant 0 : i32
    %c0_i32_1 = arith.constant 0 : i32
    return %arg0, %c0_i32, %c0_i32_0 : i32, i32, i32
  }
  func.func @transform_8(%arg0: i32) -> (i32, i32, i32) {
    %c0_i32 = arith.constant 0 : i32
    %c0_i32_0 = arith.constant 0 : i32
    %c0_i32_1 = arith.constant 0 : i32
    return %arg0, %c0_i32, %c0_i32_0 : i32, i32, i32
  }
  func.func @transform_9(%arg0: i32) -> (i32, i32, i32) {
    %c0_i32 = arith.constant 0 : i32
    %c0_i32_0 = arith.constant 0 : i32
    %c0_i32_1 = arith.constant 0 : i32
    return %arg0, %c0_i32, %c0_i32_0 : i32, i32, i32
  }
}

module attributes {stable_mosaic.version = 11 : i64} {
  func.func @_attn_cls_kernel(%arg0: memref<4x2x128xf32, #tpu.memory_space<vmem>>, %arg1: memref<128x64xbf16, #tpu.memory_space<vmem>>, %arg2: memref<1x64xf32, #tpu.memory_space<vmem>>, %arg3: memref<1x64xf32, #tpu.memory_space<vmem>>, %arg4: memref<128x256xbf16, #tpu.memory_space<vmem>>, %arg5: memref<1x256xf32, #tpu.memory_space<vmem>>, %arg6: memref<256x256xbf16, #tpu.memory_space<vmem>>, %arg7: memref<1x256xf32, #tpu.memory_space<vmem>>, %arg8: memref<256x128xbf16, #tpu.memory_space<vmem>>, %arg9: memref<1x128xf32, #tpu.memory_space<vmem>>, %arg10: memref<2x128xf32, #tpu.memory_space<vmem>>) attributes {dimension_semantics = [], scalar_prefetch = 0 : i64, scratch_operands = 0 : i64, tpu.core_type = #tpu.core_type<tc>} {
    %c0 = arith.constant 0 : index
    %c0_0 = arith.constant 0 : index
    %c0_1 = arith.constant 0 : index
    %0 = vector.load %arg0[%c0, %c0_0, %c0_1] : memref<4x2x128xf32, #tpu.memory_space<vmem>>, vector<1x2x128xf32>
    %1 = vector.shape_cast %0 : vector<1x2x128xf32> to vector<2x128xf32>
    %2 = arith.truncf %1 : vector<2x128xf32> to vector<2x128xbf16>
    %c0_2 = arith.constant 0 : index
    %c0_3 = arith.constant 0 : index
    %3 = vector.load %arg1[%c0_2, %c0_3] : memref<128x64xbf16, #tpu.memory_space<vmem>>, vector<128x64xbf16>
    %cst = arith.constant dense<0.000000e+00> : vector<2x64xf32>
    %4 = tpu.matmul %2, %3, %cst {dimension_numbers = #tpu.dot_dimension_numbers<[1], [0], [0], [1], [0, 0, 1, 1], [], []>} : vector<2x128xbf16>, vector<128x64xbf16>, vector<2x64xf32> -> vector<2x64xf32>
    %c0_4 = arith.constant 0 : index
    %c0_5 = arith.constant 0 : index
    %5 = vector.load %arg2[%c0_4, %c0_5] : memref<1x64xf32, #tpu.memory_space<vmem>>, vector<1x64xf32>
    %6 = vector.broadcast %5 : vector<1x64xf32> to vector<2x64xf32>
    %7 = arith.addf %4, %6 : vector<2x64xf32>
    %8 = math.tanh %7 : vector<2x64xf32>
    %c0_6 = arith.constant 0 : index
    %c0_7 = arith.constant 0 : index
    %9 = vector.load %arg3[%c0_6, %c0_7] : memref<1x64xf32, #tpu.memory_space<vmem>>, vector<1x64xf32>
    %10 = vector.broadcast %9 : vector<1x64xf32> to vector<2x64xf32>
    %11 = arith.mulf %8, %10 : vector<2x64xf32>
    %cst_8 = arith.constant dense<0.000000e+00> : vector<2xf32>
    %12 = vector.multi_reduction <add>, %11, %cst_8 [1] : vector<2x64xf32> to vector<2xf32>
    %13 = vector.shape_cast %12 : vector<2xf32> to vector<2x1xf32>
    %c1 = arith.constant 1 : index
    %c0_9 = arith.constant 0 : index
    %c0_10 = arith.constant 0 : index
    %14 = vector.load %arg0[%c1, %c0_9, %c0_10] : memref<4x2x128xf32, #tpu.memory_space<vmem>>, vector<1x2x128xf32>
    %15 = vector.shape_cast %14 : vector<1x2x128xf32> to vector<2x128xf32>
    %16 = arith.truncf %15 : vector<2x128xf32> to vector<2x128xbf16>
    %c0_11 = arith.constant 0 : index
    %c0_12 = arith.constant 0 : index
    %17 = vector.load %arg1[%c0_11, %c0_12] : memref<128x64xbf16, #tpu.memory_space<vmem>>, vector<128x64xbf16>
    %cst_13 = arith.constant dense<0.000000e+00> : vector<2x64xf32>
    %18 = tpu.matmul %16, %17, %cst_13 {dimension_numbers = #tpu.dot_dimension_numbers<[1], [0], [0], [1], [0, 0, 1, 1], [], []>} : vector<2x128xbf16>, vector<128x64xbf16>, vector<2x64xf32> -> vector<2x64xf32>
    %c0_14 = arith.constant 0 : index
    %c0_15 = arith.constant 0 : index
    %19 = vector.load %arg2[%c0_14, %c0_15] : memref<1x64xf32, #tpu.memory_space<vmem>>, vector<1x64xf32>
    %20 = vector.broadcast %19 : vector<1x64xf32> to vector<2x64xf32>
    %21 = arith.addf %18, %20 : vector<2x64xf32>
    %22 = math.tanh %21 : vector<2x64xf32>
    %c0_16 = arith.constant 0 : index
    %c0_17 = arith.constant 0 : index
    %23 = vector.load %arg3[%c0_16, %c0_17] : memref<1x64xf32, #tpu.memory_space<vmem>>, vector<1x64xf32>
    %24 = vector.broadcast %23 : vector<1x64xf32> to vector<2x64xf32>
    %25 = arith.mulf %22, %24 : vector<2x64xf32>
    %cst_18 = arith.constant dense<0.000000e+00> : vector<2xf32>
    %26 = vector.multi_reduction <add>, %25, %cst_18 [1] : vector<2x64xf32> to vector<2xf32>
    %27 = vector.shape_cast %26 : vector<2xf32> to vector<2x1xf32>
    %c2 = arith.constant 2 : index
    %c0_19 = arith.constant 0 : index
    %c0_20 = arith.constant 0 : index
    %28 = vector.load %arg0[%c2, %c0_19, %c0_20] : memref<4x2x128xf32, #tpu.memory_space<vmem>>, vector<1x2x128xf32>
    %29 = vector.shape_cast %28 : vector<1x2x128xf32> to vector<2x128xf32>
    %30 = arith.truncf %29 : vector<2x128xf32> to vector<2x128xbf16>
    %c0_21 = arith.constant 0 : index
    %c0_22 = arith.constant 0 : index
    %31 = vector.load %arg1[%c0_21, %c0_22] : memref<128x64xbf16, #tpu.memory_space<vmem>>, vector<128x64xbf16>
    %cst_23 = arith.constant dense<0.000000e+00> : vector<2x64xf32>
    %32 = tpu.matmul %30, %31, %cst_23 {dimension_numbers = #tpu.dot_dimension_numbers<[1], [0], [0], [1], [0, 0, 1, 1], [], []>} : vector<2x128xbf16>, vector<128x64xbf16>, vector<2x64xf32> -> vector<2x64xf32>
    %c0_24 = arith.constant 0 : index
    %c0_25 = arith.constant 0 : index
    %33 = vector.load %arg2[%c0_24, %c0_25] : memref<1x64xf32, #tpu.memory_space<vmem>>, vector<1x64xf32>
    %34 = vector.broadcast %33 : vector<1x64xf32> to vector<2x64xf32>
    %35 = arith.addf %32, %34 : vector<2x64xf32>
    %36 = math.tanh %35 : vector<2x64xf32>
    %c0_26 = arith.constant 0 : index
    %c0_27 = arith.constant 0 : index
    %37 = vector.load %arg3[%c0_26, %c0_27] : memref<1x64xf32, #tpu.memory_space<vmem>>, vector<1x64xf32>
    %38 = vector.broadcast %37 : vector<1x64xf32> to vector<2x64xf32>
    %39 = arith.mulf %36, %38 : vector<2x64xf32>
    %cst_28 = arith.constant dense<0.000000e+00> : vector<2xf32>
    %40 = vector.multi_reduction <add>, %39, %cst_28 [1] : vector<2x64xf32> to vector<2xf32>
    %41 = vector.shape_cast %40 : vector<2xf32> to vector<2x1xf32>
    %c3 = arith.constant 3 : index
    %c0_29 = arith.constant 0 : index
    %c0_30 = arith.constant 0 : index
    %42 = vector.load %arg0[%c3, %c0_29, %c0_30] : memref<4x2x128xf32, #tpu.memory_space<vmem>>, vector<1x2x128xf32>
    %43 = vector.shape_cast %42 : vector<1x2x128xf32> to vector<2x128xf32>
    %44 = arith.truncf %43 : vector<2x128xf32> to vector<2x128xbf16>
    %c0_31 = arith.constant 0 : index
    %c0_32 = arith.constant 0 : index
    %45 = vector.load %arg1[%c0_31, %c0_32] : memref<128x64xbf16, #tpu.memory_space<vmem>>, vector<128x64xbf16>
    %cst_33 = arith.constant dense<0.000000e+00> : vector<2x64xf32>
    %46 = tpu.matmul %44, %45, %cst_33 {dimension_numbers = #tpu.dot_dimension_numbers<[1], [0], [0], [1], [0, 0, 1, 1], [], []>} : vector<2x128xbf16>, vector<128x64xbf16>, vector<2x64xf32> -> vector<2x64xf32>
    %c0_34 = arith.constant 0 : index
    %c0_35 = arith.constant 0 : index
    %47 = vector.load %arg2[%c0_34, %c0_35] : memref<1x64xf32, #tpu.memory_space<vmem>>, vector<1x64xf32>
    %48 = vector.broadcast %47 : vector<1x64xf32> to vector<2x64xf32>
    %49 = arith.addf %46, %48 : vector<2x64xf32>
    %50 = math.tanh %49 : vector<2x64xf32>
    %c0_36 = arith.constant 0 : index
    %c0_37 = arith.constant 0 : index
    %51 = vector.load %arg3[%c0_36, %c0_37] : memref<1x64xf32, #tpu.memory_space<vmem>>, vector<1x64xf32>
    %52 = vector.broadcast %51 : vector<1x64xf32> to vector<2x64xf32>
    %53 = arith.mulf %50, %52 : vector<2x64xf32>
    %cst_38 = arith.constant dense<0.000000e+00> : vector<2xf32>
    %54 = vector.multi_reduction <add>, %53, %cst_38 [1] : vector<2x64xf32> to vector<2xf32>
    %55 = vector.shape_cast %54 : vector<2xf32> to vector<2x1xf32>
    %56 = arith.maximumf %13, %27 : vector<2x1xf32>
    %57 = arith.maximumf %56, %41 : vector<2x1xf32>
    %58 = arith.maximumf %57, %55 : vector<2x1xf32>
    %59 = arith.subf %13, %58 : vector<2x1xf32>
    %60 = math.exp %59 : vector<2x1xf32>
    %61 = arith.subf %27, %58 : vector<2x1xf32>
    %62 = math.exp %61 : vector<2x1xf32>
    %63 = arith.subf %41, %58 : vector<2x1xf32>
    %64 = math.exp %63 : vector<2x1xf32>
    %65 = arith.subf %55, %58 : vector<2x1xf32>
    %66 = math.exp %65 : vector<2x1xf32>
    %67 = arith.addf %60, %62 : vector<2x1xf32>
    %68 = arith.addf %67, %64 : vector<2x1xf32>
    %69 = arith.addf %68, %66 : vector<2x1xf32>
    %cst_39 = arith.constant 1.000000e+00 : f32
    %70 = vector.broadcast %cst_39 : f32 to vector<2x1xf32>
    %71 = arith.divf %70, %69 : vector<2x1xf32>
    %72 = arith.mulf %60, %71 : vector<2x1xf32>
    %73 = vector.broadcast %72 : vector<2x1xf32> to vector<2x128xf32>
    %74 = arith.mulf %73, %1 : vector<2x128xf32>
    %75 = arith.mulf %62, %71 : vector<2x1xf32>
    %76 = vector.broadcast %75 : vector<2x1xf32> to vector<2x128xf32>
    %77 = arith.mulf %76, %15 : vector<2x128xf32>
    %78 = arith.addf %74, %77 : vector<2x128xf32>
    %79 = arith.mulf %64, %71 : vector<2x1xf32>
    %80 = vector.broadcast %79 : vector<2x1xf32> to vector<2x128xf32>
    %81 = arith.mulf %80, %29 : vector<2x128xf32>
    %82 = arith.addf %78, %81 : vector<2x128xf32>
    %83 = arith.mulf %66, %71 : vector<2x1xf32>
    %84 = vector.broadcast %83 : vector<2x1xf32> to vector<2x128xf32>
    %85 = arith.mulf %84, %43 : vector<2x128xf32>
    %86 = arith.addf %82, %85 : vector<2x128xf32>
    %87 = arith.truncf %86 : vector<2x128xf32> to vector<2x128xbf16>
    %c0_40 = arith.constant 0 : index
    %c0_41 = arith.constant 0 : index
    %88 = vector.load %arg4[%c0_40, %c0_41] : memref<128x256xbf16, #tpu.memory_space<vmem>>, vector<128x256xbf16>
    %cst_42 = arith.constant dense<0.000000e+00> : vector<2x256xf32>
    %89 = tpu.matmul %87, %88, %cst_42 {dimension_numbers = #tpu.dot_dimension_numbers<[1], [0], [0], [1], [0, 0, 1, 1], [], []>} : vector<2x128xbf16>, vector<128x256xbf16>, vector<2x256xf32> -> vector<2x256xf32>
    %c0_43 = arith.constant 0 : index
    %c0_44 = arith.constant 0 : index
    %90 = vector.load %arg5[%c0_43, %c0_44] : memref<1x256xf32, #tpu.memory_space<vmem>>, vector<1x256xf32>
    %91 = vector.broadcast %90 : vector<1x256xf32> to vector<2x256xf32>
    %92 = arith.addf %89, %91 : vector<2x256xf32>
    %cst_45 = arith.constant 0.000000e+00 : f32
    %93 = vector.broadcast %cst_45 : f32 to vector<2x256xf32>
    %94 = arith.maximumf %92, %93 : vector<2x256xf32>
    %95 = arith.truncf %94 : vector<2x256xf32> to vector<2x256xbf16>
    %c0_46 = arith.constant 0 : index
    %c0_47 = arith.constant 0 : index
    %96 = vector.load %arg6[%c0_46, %c0_47] : memref<256x256xbf16, #tpu.memory_space<vmem>>, vector<256x256xbf16>
    %cst_48 = arith.constant dense<0.000000e+00> : vector<2x256xf32>
    %97 = tpu.matmul %95, %96, %cst_48 {dimension_numbers = #tpu.dot_dimension_numbers<[1], [0], [0], [1], [0, 0, 1, 1], [], []>} : vector<2x256xbf16>, vector<256x256xbf16>, vector<2x256xf32> -> vector<2x256xf32>
    %c0_49 = arith.constant 0 : index
    %c0_50 = arith.constant 0 : index
    %98 = vector.load %arg7[%c0_49, %c0_50] : memref<1x256xf32, #tpu.memory_space<vmem>>, vector<1x256xf32>
    %99 = vector.broadcast %98 : vector<1x256xf32> to vector<2x256xf32>
    %100 = arith.addf %97, %99 : vector<2x256xf32>
    %cst_51 = arith.constant 0.000000e+00 : f32
    %101 = vector.broadcast %cst_51 : f32 to vector<2x256xf32>
    %102 = arith.maximumf %100, %101 : vector<2x256xf32>
    %103 = arith.truncf %102 : vector<2x256xf32> to vector<2x256xbf16>
    %c0_52 = arith.constant 0 : index
    %c0_53 = arith.constant 0 : index
    %104 = vector.load %arg8[%c0_52, %c0_53] : memref<256x128xbf16, #tpu.memory_space<vmem>>, vector<256x128xbf16>
    %cst_54 = arith.constant dense<0.000000e+00> : vector<2x128xf32>
    %105 = tpu.matmul %103, %104, %cst_54 {dimension_numbers = #tpu.dot_dimension_numbers<[1], [0], [0], [1], [0, 0, 1, 1], [], []>} : vector<2x256xbf16>, vector<256x128xbf16>, vector<2x128xf32> -> vector<2x128xf32>
    %c0_55 = arith.constant 0 : index
    %c0_56 = arith.constant 0 : index
    %106 = vector.load %arg9[%c0_55, %c0_56] : memref<1x128xf32, #tpu.memory_space<vmem>>, vector<1x128xf32>
    %107 = vector.broadcast %106 : vector<1x128xf32> to vector<2x128xf32>
    %108 = arith.addf %105, %107 : vector<2x128xf32>
    %c0_57 = arith.constant 0 : index
    %c0_58 = arith.constant 0 : index
    %109 = vector.load %arg10[%c0_57, %c0_58] : memref<2x128xf32, #tpu.memory_space<vmem>>, vector<2x128xf32>
    tpu.vector_store %arg10[%c0_57, %c0_58], %108 {strides = array<i32>} : memref<2x128xf32, #tpu.memory_space<vmem>>, vector<2x128xf32>,
    return
  }
}

</mosaic_0001>

<bundles_post_ra>
// kernel: model_forward.3
= control target key start
LH: loop header
LB: loop body
LE: loop exit
PB: predicated region body
PF: predicated region fallthrough
CT: control target
= control target key end

     0   :  { %v1289_v1 = vmov 0.0   ;;  %vm1290_vm0 = vmmov 0   ;;  %s1667_s0 = inlined_call_operand.vmem [shape: f32[4,2,128], index: 0, kind: input, shape index: {}]   ;;  %s1668_s1 = inlined_call_operand.vmem [shape: bf16[128,64], index: 1, kind: input, shape index: {}]   ;;  %s1669_s2 = inlined_call_operand.vmem [shape: f32[1,64], index: 2, kind: input, shape index: {}]   ;;  %s1670_s3 = inlined_call_operand.vmem [shape: f32[1,64], index: 3, kind: input, shape index: {}]   ;;  %s1671_s4 = inlined_call_operand.vmem [shape: bf16[128,256], index: 4, kind: input, shape index: {}]   ;;  %s1672_s5 = inlined_call_operand.vmem [shape: f32[1,256], index: 5, kind: input, shape index: {}]   ;;  %s1673_s6 = inlined_call_operand.vmem [shape: bf16[256,256], index: 6, kind: input, shape index: {}]   ;;  %s1674_s7 = inlined_call_operand.vmem [shape: f32[1,256], index: 7, kind: input, shape index: {}]   ;;  %s1675_s8 = inlined_call_operand.vmem [shape: bf16[256,128], index: 8, kind: input, shape index: {}]   ;;  %s1676_s9 = inlined_call_operand.vmem [shape: f32[1,128], index: 9, kind: input, shape index: {}]   ;;  %s1677_s10 = inlined_call_operand.hbm [shape: f32[2,128], index: 10, kind: output, shape index: {}]  }
   0x1   :  { %v1151_v0 = vld [vmem:[%s1668_s1] sm:$0xff]   ;;  %1067 = vmatprep.subr.bf16.mxu0 %v1289_v1  ;;  %1087 = vmatprep.subr.bf16.mxu1 %v1289_v1  ;;  %v1152_v2 = vld [vmem:[%s1668_s1 + $0x8] sm:$0xff]   ;;  %v1153_v3 = vld [vmem:[%s1668_s1 + $0x10] sm:$0xff]  }
   0x2   :  { %1068 = vmatpush3.bf16.msra.mxu0 %v1151_v0  ;;  %1088 = vmatpush3.bf16.msra.mxu1 %v1151_v0  ;;  %v1154_v4 = vld [vmem:[%s1668_s1 + $0x18] sm:$0xff]   ;;  %v1155_v5 = vld [vmem:[%s1668_s1 + $0x20] sm:$0xff]   ;;  %v1156_v6 = vld [vmem:[%s1668_s1 + $0x28] sm:$0xff]  }
   0x3   :  { %1069 = vmatprep.subr.bf16.mxu0 %v1289_v1  ;;  %1089 = vmatprep.subr.bf16.mxu1 %v1289_v1  ;;  %v1157_v7 = vld [vmem:[%s1668_s1 + $0x30] sm:$0xff]   ;;  %v1158_v8 = vld [vmem:[%s1668_s1 + $0x38] sm:$0xff]   ;;  %v1393_v9 = vld [vmem:[%s1667_s0] sm:$0x3] }
   0x4   :  { %1083 = vmatprep.mubr.msk.bf16.mxu0 %vm1290_vm0, %v1289_v1  ;;  %1103 = vmatprep.mubr.msk.bf16.mxu1 %vm1290_vm0, %v1289_v1  ;;  %v1398_v10 = vld [vmem:[%s1667_s0 + $0x2] sm:$0x3]  ;;  %v38_v11 = vpack.c.bf16 %v1393_v9, %v1393_v9 }
   0x5   :  { %v165_v12 = vpack.c.bf16 %v1398_v10, %v1398_v10 }
   0x6   :  { %1070 = vmatpush3.bf16.msra.mxu0 %v1152_v2  ;;  %1090 = vmatpush3.bf16.msra.mxu1 %v1152_v2 }
   0x7   :  { %1071 = vmatprep.subr.bf16.mxu0 %v1289_v1  ;;  %1091 = vmatprep.subr.bf16.mxu1 %v1289_v1 }
   0xa   :  { %1072 = vmatpush3.bf16.msra.mxu0 %v1153_v3  ;;  %1092 = vmatpush3.bf16.msra.mxu1 %v1153_v3 }
   0xb   :  { %1073 = vmatprep.subr.bf16.mxu0 %v1289_v1  ;;  %1093 = vmatprep.subr.bf16.mxu1 %v1289_v1 }
   0xe   :  { %1074 = vmatpush3.bf16.msra.mxu0 %v1154_v4  ;;  %1094 = vmatpush3.bf16.msra.mxu1 %v1154_v4 }
   0xf   :  { %1075 = vmatprep.subr.bf16.mxu0 %v1289_v1  ;;  %1095 = vmatprep.subr.bf16.mxu1 %v1289_v1 }
  0x12   :  { %1076 = vmatpush3.bf16.msra.mxu0 %v1155_v5  ;;  %1096 = vmatpush3.bf16.msra.mxu1 %v1155_v5 }
  0x13   :  { %1077 = vmatprep.subr.bf16.mxu0 %v1289_v1  ;;  %1097 = vmatprep.subr.bf16.mxu1 %v1289_v1 }
  0x16   :  { %1078 = vmatpush3.bf16.msra.mxu0 %v1156_v6  ;;  %1098 = vmatpush3.bf16.msra.mxu1 %v1156_v6 }
  0x17   :  { %1079 = vmatprep.subr.bf16.mxu0 %v1289_v1  ;;  %1099 = vmatprep.subr.bf16.mxu1 %v1289_v1 }
  0x1a   :  { %1080 = vmatpush3.bf16.msra.mxu0 %v1157_v7  ;;  %1100 = vmatpush3.bf16.msra.mxu1 %v1157_v7 }
  0x1b   :  { %1081 = vmatprep.subr.bf16.mxu0 %v1289_v1  ;;  %1101 = vmatprep.subr.bf16.mxu1 %v1289_v1 }
  0x1e   :  { %1082 = vmatpush3.bf16.msra.mxu0 %v1158_v8  ;;  %1102 = vmatpush3.bf16.msra.mxu1 %v1158_v8 }
  0x1f   :  { %1107 = vmatprep.subr.bf16.mxu0 %v1289_v1  ;;  %1127 = vmatprep.subr.bf16.mxu1 %v1289_v1 }
  0x21   :  { %1084 = vmatmul.mubr.bf16.vlgmr.msra.gmra.mrb[0].mxu0 %v38_v11  ;;  %1104 = vmatmul.mubr.bf16.vlgmr.msra.gmra.mrb[0].mxu1 %v165_v12 }
  0x22   :  { %1108 = vmatpush3.bf16.msra.mxu0 %v1151_v0  ;;  %1128 = vmatpush3.bf16.msra.mxu1 %v1151_v0 }
  0x23   :  { %1109 = vmatprep.subr.bf16.mxu0 %v1289_v1  ;;  %1129 = vmatprep.subr.bf16.mxu1 %v1289_v1 }
  0x24   :  { %1123 = vmatprep.mubr.msk.bf16.mxu0 %vm1290_vm0, %v1289_v1  ;;  %1143 = vmatprep.mubr.msk.bf16.mxu1 %vm1290_vm0, %v1289_v1 }
  0x25   :  { %15 = vsyncpa [#allocation3], 0  ;;  %v1427_v13 = vld [vmem:[%s1667_s0 + $0x4] sm:$0x3]  ;;  %v1432_v14 = vld [vmem:[%s1667_s0 + $0x6] sm:$0x3] }
  0x26   :  { %1110 = vmatpush3.bf16.msra.mxu0 %v1152_v2  ;;  %1130 = vmatpush3.bf16.msra.mxu1 %v1152_v2  ;;  %v213_v15 = vpack.c.bf16 %v1427_v13, %v1427_v13  ;;  %v261_v16 = vpack.c.bf16 %v1432_v14, %v1432_v14  ;;  %v931_v17 = vld [vmem:[%s1669_s2] ss:$0 sm:$0xff]  ;;  %vm159_vm1 = vcmask 517120   ;;  %v1161_v51 = vld [vmem:[%s1671_s4 + $0x4] ss:$8 sps:$4 sm:$0xff]   ;;  %v1291_v60 = vmov 0  }
  0x27   :  { %1111 = vmatprep.subr.bf16.mxu0 %v1289_v1  ;;  %1131 = vmatprep.subr.bf16.mxu1 %v1289_v1  ;;  %v940_v28 = vld [vmem:[%s1670_s3] ss:$0 sm:$0xff]  ;;  %v1164_v53 = vld [vmem:[%s1671_s4 + $0x14] ss:$8 sps:$4 sm:$0xff]   ;;  %v1162_v54 = vld [vmem:[%s1671_s4 + $0x10] ss:$8 sps:$4 sm:$0xff]  }
  0x28   :  { %v1159_v52 = vld [vmem:[%s1671_s4] ss:$8 sps:$4 sm:$0xff]   ;;  %v1167_v55 = vld [vmem:[%s1671_s4 + $0x24] ss:$8 sps:$4 sm:$0xff]   ;;  %v1170_v57 = vld [vmem:[%s1671_s4 + $0x34] ss:$8 sps:$4 sm:$0xff]  }
  0x29   :  { %v1165_v56 = vld [vmem:[%s1671_s4 + $0x20] ss:$8 sps:$4 sm:$0xff]   ;;  %v1168_v58 = vld [vmem:[%s1671_s4 + $0x30] ss:$8 sps:$4 sm:$0xff]   ;;  %v1173_v59 = vld [vmem:[%s1671_s4 + $0x44] ss:$8 sps:$4 sm:$0xff]  }
  0x2a   :  { %1112 = vmatpush3.bf16.msra.mxu0 %v1153_v3  ;;  %1132 = vmatpush3.bf16.msra.mxu1 %v1153_v3  ;;  %v1171_v61 = vld [vmem:[%s1671_s4 + $0x40] ss:$8 sps:$4 sm:$0xff]   ;;  %v1176_v62 = vld [vmem:[%s1671_s4 + $0x54] ss:$8 sps:$4 sm:$0xff]   ;;  %v1174_v63 = vld [vmem:[%s1671_s4 + $0x50] ss:$8 sps:$4 sm:$0xff]  }
  0x2b   :  { %1113 = vmatprep.subr.bf16.mxu0 %v1289_v1  ;;  %1133 = vmatprep.subr.bf16.mxu1 %v1289_v1  ;;  %v1179_v0 = vld [vmem:[%s1671_s4 + $0x64] ss:$8 sps:$4 sm:$0xff]   ;;  %v1182_v2 = vld [vmem:[%s1671_s4 + $0x74] ss:$8 sps:$4 sm:$0xff]   ;;  %v1180_v3 = vld [vmem:[%s1671_s4 + $0x70] ss:$8 sps:$4 sm:$0xff]  }
  0x2c   :  { %v1189_v11 = vld [vmem:[%s1673_s6 + $0x20] ss:$8 sps:$4 sm:$0xff]   ;;  %v1194_v12 = vld [vmem:[%s1673_s6 + $0x34] ss:$8 sps:$4 sm:$0xff]  }
  0x2e   :  { %1114 = vmatpush3.bf16.msra.mxu0 %v1154_v4  ;;  %1134 = vmatpush3.bf16.msra.mxu1 %v1154_v4  ;;  %v1183_v4 = vld [vmem:[%s1673_s6] ss:$8 sps:$4 sm:$0xff]  }
  0x2f   :  { %1115 = vmatprep.subr.bf16.mxu0 %v1289_v1  ;;  %1135 = vmatprep.subr.bf16.mxu1 %v1289_v1 }
  0x32   :  { %1116 = vmatpush3.bf16.msra.mxu0 %v1155_v5  ;;  %1136 = vmatpush3.bf16.msra.mxu1 %v1155_v5  ;;  %v1185_v5 = vld [vmem:[%s1673_s6 + $0x4] ss:$8 sps:$4 sm:$0xff]  }
  0x33   :  { %1117 = vmatprep.subr.bf16.mxu0 %v1289_v1  ;;  %1137 = vmatprep.subr.bf16.mxu1 %v1289_v1 }
  0x36   :  { %1118 = vmatpush3.bf16.msra.mxu0 %v1156_v6  ;;  %1138 = vmatpush3.bf16.msra.mxu1 %v1156_v6  ;;  %v1188_v6 = vld [vmem:[%s1673_s6 + $0x14] ss:$8 sps:$4 sm:$0xff]  }
  0x37   :  { %1119 = vmatprep.subr.bf16.mxu0 %v1289_v1  ;;  %1139 = vmatprep.subr.bf16.mxu1 %v1289_v1 }
  0x3a   :  { %1120 = vmatpush3.bf16.msra.mxu0 %v1157_v7  ;;  %1140 = vmatpush3.bf16.msra.mxu1 %v1157_v7  ;;  %v1186_v7 = vld [vmem:[%s1673_s6 + $0x10] ss:$8 sps:$4 sm:$0xff]  }
  0x3b   :  { %1121 = vmatprep.subr.bf16.mxu0 %v1289_v1  ;;  %1141 = vmatprep.subr.bf16.mxu1 %v1289_v1  ;;  %v1177_v1 = vld [vmem:[%s1671_s4 + $0x60] ss:$8 sps:$4 sm:$0xff]  }
  0x3e   :  { %1122 = vmatpush3.bf16.msra.mxu0 %v1158_v8  ;;  %1142 = vmatpush3.bf16.msra.mxu1 %v1158_v8  ;;  %v1191_v8 = vld [vmem:[%s1673_s6 + $0x24] ss:$8 sps:$4 sm:$0xff]  }
  0x3f   :  { %447 = vmatprep.subr.bf16.mxu0 %v1161_v51  ;;  %696 = vmatprep.subr.bf16.mxu1 %v1185_v5 }
  0x41   :  { %1124 = vmatmul.mubr.bf16.vlgmr.msra.gmra.mrb[4].mxu0 %v213_v15  ;;  %1144 = vmatmul.mubr.bf16.vlgmr.msra.gmra.mrb[4].mxu1 %v261_v16  ;;  %v1192_v15 = vld [vmem:[%s1673_s6 + $0x30] ss:$8 sps:$4 sm:$0xff]   ;;  %v1197_v16 = vld [vmem:[%s1673_s6 + $0x44] ss:$8 sps:$4 sm:$0xff]  }
  0x42   :  { %448 = vmatpush1.bf16.msra.mxu0 %v1159_v52  ;;  %479 = vmatprep.mubr.bf16.mxu0 %v1291_v60 }
  0x43   :  { %449 = vmatprep.subr.bf16.mxu0 %v1164_v53  ;;  %697 = vmatpush1.bf16.msra.mxu1 %v1183_v4 }
  0x44   :  { %698 = vmatprep.subr.bf16.mxu1 %v1188_v6 }
  0x46   :  { %450 = vmatpush1.bf16.msra.mxu0 %v1162_v54 }
  0x47   :  { %451 = vmatprep.subr.bf16.mxu0 %v1167_v55  ;;  %699 = vmatpush1.bf16.msra.mxu1 %v1186_v7  ;;  %v1227_v7 = vld [vmem:[%s1673_s6 + $0xe4] ss:$8 sps:$4 sm:$0xff]  }
  0x48   :  { %700 = vmatprep.subr.bf16.mxu1 %v1191_v8  ;;  %v1232_v8 = vld [vmem:[%s1675_s8] sm:$0xff]  }
  0x4a   :  { %452 = vmatpush1.bf16.msra.mxu0 %v1165_v56 }
  0x4b   :  { %453 = vmatprep.subr.bf16.mxu0 %v1170_v57  ;;  %701 = vmatpush1.bf16.msra.mxu1 %v1189_v11  ;;  %v1233_v11 = vld [vmem:[%s1675_s8 + $0x48] sm:$0xff]  }
  0x4c   :  { %702 = vmatprep.subr.bf16.mxu1 %v1194_v12  ;;  %v1234_v12 = vld [vmem:[%s1675_s8 + $0x8] sm:$0xff]  }
  0x4e   :  { %454 = vmatpush1.bf16.msra.mxu0 %v1168_v58 }
  0x4f   :  { %455 = vmatprep.subr.bf16.mxu0 %v1173_v59  ;;  %703 = vmatpush1.bf16.msra.mxu1 %v1192_v15  ;;  %v1235_v15 = vld [vmem:[%s1675_s8 + $0x50] sm:$0xff]  }
  0x50   :  { %704 = vmatprep.subr.bf16.mxu1 %v1197_v16  ;;  %v1236_v16 = vld [vmem:[%s1675_s8 + $0x10] sm:$0xff]  }
  0x52   :  { %456 = vmatpush1.bf16.msra.mxu0 %v1171_v61 }
  0x53   :  { %457 = vmatprep.subr.bf16.mxu0 %v1176_v62 }
  0x56   :  { %458 = vmatpush1.bf16.msra.mxu0 %v1174_v63 }
  0x57   :  { %459 = vmatprep.subr.bf16.mxu0 %v1179_v0 }
  0x5a   :  { %460 = vmatpush1.bf16.msra.mxu0 %v1177_v1 }
  0x5b   :  { %461 = vmatprep.subr.bf16.mxu0 %v1182_v2 }
  0x5e   :  { %462 = vmatpush1.bf16.msra.mxu0 %v1180_v3 }
  0xf4   :  { %v144_v18 = vpop.f32.mrb[0].mxu0  ;;  %v200_v19 = vpop.f32.mrb[0].mxu1 }
  0xf5   :  { %v145_v20 = vadd.f32 %v931_v17, %v144_v18  ;;  %v1085_v21 = vpop.f32.mrb[1].mxu0  ;;  %v201_v22 = vadd.f32 %v931_v17, %v200_v19  ;;  %v1105_v23 = vpop.f32.mrb[1].mxu1  ;;  %v1200_v18 = vld [vmem:[%s1673_s6 + $0x54] ss:$8 sps:$4 sm:$0xff]   ;;  %v1198_v19 = vld [vmem:[%s1673_s6 + $0x50] ss:$8 sps:$4 sm:$0xff]  }
  0xf6   :  { %v147_v24 = vpop.f32.mrb[2].mxu0  ;;  %v203_v25 = vpop.f32.mrb[2].mxu1  ;;  %v1201_v21 = vld [vmem:[%s1673_s6 + $0x60] ss:$8 sps:$4 sm:$0xff]   ;;  %v1204_v23 = vld [vmem:[%s1673_s6 + $0x70] ss:$8 sps:$4 sm:$0xff]  }
  0xf7   :  { %1247 = vtanh.f32 %v145_v20  ;;  %v1086_v26 = vpop.f32.mrb[3].mxu0  ;;  %v1106_v27 = vpop.f32.mrb[3].mxu1  ;;  %v1203_v20 = vld [vmem:[%s1673_s6 + $0x64] ss:$8 sps:$4 sm:$0xff]   ;;  %v1207_v25 = vld [vmem:[%s1673_s6 + $0x80] ss:$8 sps:$4 sm:$0xff]  }
  0xf8   :  { %1249 = vtanh.f32 %v201_v22  ;;  %v1206_v22 = vld [vmem:[%s1673_s6 + $0x74] ss:$8 sps:$4 sm:$0xff]   ;;  %v1209_v24 = vld [vmem:[%s1673_s6 + $0x84] ss:$8 sps:$4 sm:$0xff]   ;;  %v1210_v27 = vld [vmem:[%s1673_s6 + $0x90] ss:$8 sps:$4 sm:$0xff]  }
  0xf9   :  { %v1212_v26 = vld [vmem:[%s1673_s6 + $0x94] ss:$8 sps:$4 sm:$0xff]  }
 0x101   :  { %v1248_v29 = vpop.eup %1247 }
 0x102   :  { %v1250_v30 = vpop.eup %1249  ;;  %v158_v31 = vmul.f32 %v1248_v29, %v940_v28  ;;  %v1213_v29 = vld [vmem:[%s1673_s6 + $0xa0] ss:$8 sps:$4 sm:$0xff]  }
 0x103   :  { %v207_v32 = vmul.f32 %v1250_v30, %v940_v28  ;;  %v1218_v30 = vld [vmem:[%s1673_s6 + $0xb4] ss:$8 sps:$4 sm:$0xff]  }
 0x104   :  { %v160_v33 = vsel %vm159_vm1, %v158_v31, 0.0  ;;  %v1216_v31 = vld [vmem:[%s1673_s6 + $0xb0] ss:$8 sps:$4 sm:$0xff]  }
 0x105   :  { %161 = vadd.xlane.f32.xlu0 %v160_v33  ;;  %v208_v34 = vsel %vm159_vm1, %v207_v32, 0.0  ;;  %v1221_v32 = vld [vmem:[%s1673_s6 + $0xc4] ss:$8 sps:$4 sm:$0xff]   ;;  %v1219_v33 = vld [vmem:[%s1673_s6 + $0xc0] ss:$8 sps:$4 sm:$0xff]  }
 0x109   :  { %209 = vadd.xlane.f32.xlu0 %v208_v34  ;;  %v1224_v34 = vld [vmem:[%s1673_s6 + $0xd4] ss:$8 sps:$4 sm:$0xff]  }
 0x114   :  { %v248_v35 = vpop.f32.mrb[4].mxu0  ;;  %v296_v36 = vpop.f32.mrb[4].mxu1 }
 0x115   :  { %v249_v37 = vadd.f32 %v931_v17, %v248_v35  ;;  %v1125_v38 = vpop.f32.mrb[5].mxu0  ;;  %v297_v39 = vadd.f32 %v931_v17, %v296_v36  ;;  %v1145_v40 = vpop.f32.mrb[5].mxu1  ;;  %v1195_v17 = vld [vmem:[%s1673_s6 + $0x40] ss:$8 sps:$4 sm:$0xff]   ;;  %v1222_v35 = vld [vmem:[%s1673_s6 + $0xd0] ss:$8 sps:$4 sm:$0xff]  }
 0x116   :  { %v251_v41 = vpop.f32.mrb[6].mxu0  ;;  %v299_v42 = vpop.f32.mrb[6].mxu1  ;;  %705 = vmatpush1.bf16.msra.mxu1 %v1195_v17  ;;  %v1237_v17 = vld [vmem:[%s1675_s8 + $0x58] sm:$0xff]  }
 0x117   :  { %1251 = vtanh.f32 %v249_v37  ;;  %v1126_v43 = vpop.f32.mrb[7].mxu0  ;;  %v1146_v44 = vpop.f32.mrb[7].mxu1  ;;  %706 = vmatprep.subr.bf16.mxu1 %v1200_v18  ;;  %v1238_v18 = vld [vmem:[%s1675_s8 + $0x18] sm:$0xff]  }
 0x118   :  { %1253 = vtanh.f32 %v297_v39 }
 0x11a   :  { %707 = vmatpush1.bf16.msra.mxu1 %v1198_v19  ;;  %v1239_v19 = vld [vmem:[%s1675_s8 + $0x60] sm:$0xff]  }
 0x11b   :  { %708 = vmatprep.subr.bf16.mxu1 %v1203_v20  ;;  %v1240_v20 = vld [vmem:[%s1675_s8 + $0x20] sm:$0xff]  }
 0x11e   :  { %709 = vmatpush1.bf16.msra.mxu1 %v1201_v21  ;;  %v1241_v21 = vld [vmem:[%s1675_s8 + $0x68] sm:$0xff]  }
 0x11f   :  { %710 = vmatprep.subr.bf16.mxu1 %v1206_v22  ;;  %v1242_v22 = vld [vmem:[%s1675_s8 + $0x28] sm:$0xff]  }
 0x121   :  { %v1252_v45 = vpop.eup %1251 }
 0x122   :  { %v1254_v46 = vpop.eup %1253  ;;  %v255_v47 = vmul.f32 %v1252_v45, %v940_v28  ;;  %711 = vmatpush1.bf16.msra.mxu1 %v1204_v23  ;;  %v357_v23 = vlaneseq }
 0x123   :  { %v303_v48 = vmul.f32 %v1254_v46, %v940_v28  ;;  %712 = vmatprep.subr.bf16.mxu1 %v1209_v24  ;;  %v1215_v28 = vld [vmem:[%s1673_s6 + $0xa4] ss:$8 sps:$4 sm:$0xff]  }
 0x124   :  { %v256_v49 = vsel %vm159_vm1, %v255_v47, 0.0  ;;  %v358_v24 = vshrl.u32 %v357_v23, 7 }
 0x125   :  { %257 = vadd.xlane.f32.xlu1 %v256_v49  ;;  %v304_v50 = vsel %vm159_vm1, %v303_v48, 0.0 }
 0x126   :  { %713 = vmatpush1.bf16.msra.mxu1 %v1207_v25  ;;  %v359_v25 = vsub.s32 0, %v358_v24 }
 0x127   :  { %714 = vmatprep.subr.bf16.mxu1 %v1212_v26  ;;  %v355_v26 = vld [vmem:[%s1672_s5] sm:$0x3] }
 0x129   :  { %305 = vadd.xlane.f32.xlu1 %v304_v50 }
 0x12a   :  { %715 = vmatpush1.bf16.msra.mxu1 %v1210_v27  ;;  %v363_v27 = vsub.s32 1, %v358_v24 }
 0x12b   :  { %716 = vmatprep.subr.bf16.mxu1 %v1215_v28  ;;  %v360_v28 = vrot.slane %v355_v26, %v359_v25 }
 0x12e   :  { %717 = vmatpush1.bf16.msra.mxu1 %v1213_v29  ;;  %v364_v29 = vrot.slane %v355_v26, %v363_v27 }
 0x12f   :  { %718 = vmatprep.subr.bf16.mxu1 %v1218_v30 }
 0x132   :  { %719 = vmatpush1.bf16.msra.mxu1 %v1216_v31 }
 0x133   :  { %720 = vmatprep.subr.bf16.mxu1 %v1221_v32 }
 0x136   :  { %721 = vmatpush1.bf16.msra.mxu1 %v1219_v33 }
 0x137   :  { %722 = vmatprep.subr.bf16.mxu1 %v1224_v34 }
 0x13a   :  { %723 = vmatpush1.bf16.msra.mxu1 %v1222_v35 }
 0x13b   :  { %724 = vmatprep.subr.bf16.mxu1 %v1227_v7 }
 0x192   :  { %v162_v36 = vpop.xlane.xlu0 %161 }
 0x196   :  { %v210_v37 = vpop.xlane.xlu0 %209 }
 0x197   :  { %v307_v39 = vmax.f32 %v162_v36, %v210_v37 }
 0x1b2   :  { %v258_v38 = vpop.xlane.xlu1 %257 }
 0x1b3   :  { %v308_v40 = vmax.f32 %v307_v39, %v258_v38 }
 0x1b6   :  { %v306_v41 = vpop.xlane.xlu1 %305 }
 0x1b7   :  { %v309_v42 = vmax.f32 %v308_v40, %v306_v41  ;;  %v1243_v40 = vld [vmem:[%s1675_s8 + $0x70] sm:$0xff]  }
 0x1b9   :  { %v310_v43 = vsub.f32 %v162_v36, %v309_v42  ;;  %v313_v44 = vsub.f32 %v210_v37, %v309_v42  ;;  %v316_v45 = vsub.f32 %v258_v38, %v309_v42  ;;  %v319_v46 = vsub.f32 %v306_v41, %v309_v42  ;;  %v1244_v41 = vld [vmem:[%s1675_s8 + $0x30] sm:$0xff]   ;;  %v1245_v42 = vld [vmem:[%s1675_s8 + $0x78] sm:$0xff]  }
 0x1bb   :  { %v311_v47 = vmul.f32 1.442695, %v310_v43  ;;  %v314_v48 = vmul.f32 1.442695, %v313_v44  ;;  %v317_v49 = vmul.f32 1.442695, %v316_v45 }
 0x1bc   :  { %v320_v50 = vmul.f32 1.442695, %v319_v46  ;;  %v1246_v43 = vld [vmem:[%s1675_s8 + $0x38] sm:$0xff]   ;;  %v524_v44 = vld [vmem:[%s1674_s7] sm:$0x3]  ;;  %s1292_s7 = smov [#allocation2]  }
 0x1bd   :  { %1255 = vpow2.f32 %v311_v47  ;;  %v529_v45 = vrot.slane %v524_v44, %v359_v25  ;;  %v533_v46 = vrot.slane %v524_v44, %v363_v27  ;;  %s923_s23 = sshll.u32 %s1292_s7, 4  ;;  %s924_s23 = int_to_ptr.vmem [resolvable:$true] %s923_s23 }
 0x1be   :  { %1257 = vpow2.f32 %v314_v48  ;;  %s1265_s24 = scalar_lea.vmem %s924_s23, 32  ;;  %p1270_p1 = scmp.lt.s32.totalorder %s924_s23, %s924_s23 }
 0x1bf   :  { %1259 = vpow2.f32 %v317_v49  ;;  %p1266_p0 = scmp.ne.s32.totalorder %s924_s23, %s1265_s24  ;;  %p1271_p2 = scmp.lt.s32.totalorder %s1265_s24, %s1265_s24 }
 0x1c0   :  { %1261 = vpow2.f32 %v320_v50 }
 0x1c1   :  { %p1272_p3 = por %p1271_p2, %p1270_p1 }
 0x1c3   :  { %p1273_p4 = pnand %p1272_p3, %p1266_p0 }
 0x1c7   :  { %v1256_v51 = vpop.eup %1255 }
 0x1c8   :  { %v1258_v52 = vpop.eup %1257 }
 0x1c9   :  { %v322_v53 = vadd.f32 %v1258_v52, %v1256_v51  ;;  %v1260_v54 = vpop.eup %1259 }
 0x1ca   :  { %v1262_v56 = vpop.eup %1261 }
 0x1cb   :  { %v323_v55 = vadd.f32 %v1260_v54, %v322_v53 }
 0x1cd   :  { %v324_v57 = vadd.f32 %v1262_v56, %v323_v55 }
 0x1cf   :  { %1263 = vrcp.f32 %v324_v57 }
 0x1d9   :  { %v1264_v58 = vpop.eup %1263 }
 0x1da   :  { %v327_v59 = vmul.f32 %v1264_v58, %v1256_v51  ;;  %v329_v60 = vmul.f32 %v1264_v58, %v1258_v52  ;;  %v332_v61 = vmul.f32 %v1264_v58, %v1260_v54  ;;  %v335_v0 = vmul.f32 %v1264_v58, %v1262_v56 }
 0x1dc   :  { %v328_v62 = vmul.f32 %v327_v59, %v1393_v9  ;;  %v330_v63 = vmul.f32 %v1398_v10, %v329_v60  ;;  %v333_v2 = vmul.f32 %v1427_v13, %v332_v61  ;;  %v336_v4 = vmul.f32 %v1432_v14, %v335_v0  ;;  %v1225_v9 = vld [vmem:[%s1673_s6 + $0xe0] ss:$8 sps:$4 sm:$0xff]   ;;  %v1230_v10 = vld [vmem:[%s1673_s6 + $0xf4] ss:$8 sps:$4 sm:$0xff]   ;;  %v1228_v13 = vld [vmem:[%s1673_s6 + $0xf0] ss:$8 sps:$4 sm:$0xff]  }
 0x1dd   :  { %725 = vmatpush1.bf16.msra.mxu1 %v1225_v9  ;;  %v1231_v14 = vld [vmem:[%s1675_s8 + $0x40] sm:$0xff]  }
 0x1de   :  { %v331_v1 = vadd.f32 %v330_v63, %v328_v62  ;;  %726 = vmatprep.subr.bf16.mxu1 %v1230_v10  ;;  %1045 = vmatprep.subr.bf16.mxu0 %v1231_v14  ;;  %v992_v59 = vld [vmem:[%s1676_s9] ss:$0 sm:$0xff] }
 0x1e0   :  { %v334_v3 = vadd.f32 %v333_v2, %v331_v1 }
 0x1e1   :  { %727 = vmatpush1.bf16.msra.mxu1 %v1228_v13 }
 0x1e2   :  { %v337_v5 = vadd.f32 %v336_v4, %v334_v3 }
 0x1e4   :  { %v338_v6 = vpack.c.bf16 %v337_v5, %v337_v5 }
 0x1e6   :  { %480 = vmatmul.mubr.bf16.vlgmr.msra.gmra.mrb[8].mxu0 %v338_v6 }
 0x1e7   :  { %1046 = vmatpush3.bf16.msra.mxu0 %v1232_v8 }
 0x1e8   :  { %1047 = vmatprep.subr.bf16.mxu0 %v1233_v11 }
 0x1eb   :  { %1048 = vmatpush3.bf16.msra.mxu0 %v1234_v12 }
 0x1ec   :  { %1049 = vmatprep.subr.bf16.mxu0 %v1235_v15 }
 0x1ef   :  { %1050 = vmatpush3.bf16.msra.mxu0 %v1236_v16 }
 0x1f0   :  { %1051 = vmatprep.subr.bf16.mxu0 %v1237_v17 }
 0x1f3   :  { %1052 = vmatpush3.bf16.msra.mxu0 %v1238_v18 }
 0x1f4   :  { %1053 = vmatprep.subr.bf16.mxu0 %v1239_v19 }
 0x1f7   :  { %1054 = vmatpush3.bf16.msra.mxu0 %v1240_v20 }
 0x1f8   :  { %1055 = vmatprep.subr.bf16.mxu0 %v1241_v21 }
 0x1fb   :  { %1056 = vmatpush3.bf16.msra.mxu0 %v1242_v22 }
 0x1fc   :  { %1057 = vmatprep.subr.bf16.mxu0 %v1243_v40 }
 0x1ff   :  { %1058 = vmatpush3.bf16.msra.mxu0 %v1244_v41 }
 0x200   :  { %1059 = vmatprep.subr.bf16.mxu0 %v1245_v42 }
 0x203   :  { %1060 = vmatpush3.bf16.msra.mxu0 %v1246_v43 }
 0x2b9   :  { %v481_v30 = vpop.f32.mrb[8].mxu0 }
 0x2ba   :  { %v482_v31 = vadd.f32 %v481_v30, %v360_v28  ;;  %v483_v32 = vpop.f32.mrb[9].mxu0 }
 0x2bb   :  { %v484_v33 = vadd.f32 %v483_v32, %v364_v29  ;;  %v485_v34 = vpop.f32.mrb[10].mxu0 }
 0x2bc   :  { %v488_v35 = vmax.f32 %v482_v31, 0.0  ;;  %v486_v36 = vpop.f32.mrb[11].mxu0 }
 0x2bd   :  { %v489_v37 = vmax.f32 %v484_v33, 0.0 }
 0x2be   :  { %v490_v39 = vpack.c.bf16 %v488_v35, %v488_v35 }
 0x2bf   :  { %v491_v38 = vpack.c.bf16 %v489_v37, %v489_v37 }
 0x2c1   :  { %728 = vmatprep.mubr.bf16.mxu1 %v491_v38 }
 0x2c2   :  { %729 = vmatmul.mubr.bf16.vlgmr.msra.gmra.mrb[8].mxu1 %v490_v39 }
 0x395   :  { %v730_v47 = vpop.f32.mrb[8].mxu1 }
 0x396   :  { %v731_v48 = vadd.f32 %v730_v47, %v529_v45  ;;  %v732_v49 = vpop.f32.mrb[9].mxu1 }
 0x397   :  { %v733_v50 = vadd.f32 %v732_v49, %v533_v46  ;;  %v734_v51 = vpop.f32.mrb[10].mxu1 }
 0x398   :  { %v737_v52 = vmax.f32 %v731_v48, 0.0  ;;  %v735_v53 = vpop.f32.mrb[11].mxu1 }
 0x399   :  { %v738_v54 = vmax.f32 %v733_v50, 0.0 }
 0x39a   :  { %v739_v56 = vpack.c.bf16 %v737_v52, %v737_v52 }
 0x39b   :  { %v740_v55 = vpack.c.bf16 %v738_v54, %v738_v54 }
 0x39d   :  { %908 = vmatprep.mubr.bf16.mxu0 %v740_v55 }
 0x39e   :  { %909 = vmatmul.mubr.bf16.vlgmr.msra.gmra.mrb[12].mxu0 %v739_v56 }
 0x471   :  { %v1061_v57 = vpop.f32.mrb[12].mxu0 }
 0x472   :  { %v1062_v58 = vpop.f32.mrb[13].mxu0 }
 0x473   :  { %v1063_v60 = vadd.f32 %v1062_v58, %v1061_v57  ;;  %v1064_v61 = vpop.f32.mrb[14].mxu0 }
 0x474   :  { %v1065_v62 = vpop.f32.mrb[15].mxu0 }
 0x475   :  { %v911_v63 = vadd.f32 %v1063_v60, %v992_v59 }
 0x477   :  { %916 = vst [vmem:[#allocation2] sm:$0x3] %v911_v63 }
 0x478   :  { %1276 = shalt.err (!%p1273_p4)
}
 0x479   :  { %s1277_s27 = scalar_lea.hbm %s1677_s10, 32 }
 0x47a   :  { %p1278_p5 = scmp.ne.s32.totalorder %s1677_s10, %s1277_s27  ;;  %p1281_p6 = scmp.lt.u32.totalorder %s1277_s27, %s1677_s10 }
 0x47c   :  { %p1283_p7 = pnand %p1281_p6, %p1278_p5 }
 0x47e   :  { %1286 = shalt.err (!%p1283_p7)
}
 0x47f   :  { %926 = dma.vmem_to_hbm [thread:$0]  %s924_s23, 32, %s1677_s10, [#allocation3]  }
 0x480   :  { %1287 = dma.done.wait [#allocation3], 32  }
 0x481   :  { %1288 = vsyncadd [#allocation3], 4294967264 }
 0x482   :  { %930 = vsyncpa [#allocation3], 1 }

// kernel: model_forward.2
= control target key start
LH: loop header
LB: loop body
LE: loop exit
PB: predicated region body
PF: predicated region fallthrough
CT: control target
= control target key end

     0   :  { %s7597_s30 = smov 0   ;;  %s8626_s0 = inlined_call_operand.vmem [shape: bf16[4,288,32], index: 0, kind: input, shape index: {}]   ;;  %s8627_s1 = inlined_call_operand.vmem [shape: bf16[4,32,128], index: 1, kind: input, shape index: {}]   ;;  %s8628_s2 = inlined_call_operand.vmem [shape: f32[4,1,128], index: 2, kind: input, shape index: {}]   ;;  %s8629_s3 = inlined_call_operand.vmem [shape: f32[4,1,128], index: 3, kind: input, shape index: {}]   ;;  %s8630_s4 = inlined_call_operand.vmem [shape: bf16[4,3200,128], index: 4, kind: input, shape index: {}]   ;;  %s8631_s5 = inlined_call_operand.vmem [shape: f32[4,1,128], index: 5, kind: input, shape index: {}]   ;;  %s8632_s6 = inlined_call_operand.vmem [shape: f32[4,1,128], index: 6, kind: input, shape index: {}]   ;;  %s8633_s7 = inlined_call_operand.vmem [shape: bf16[4,128,128], index: 7, kind: input, shape index: {}]   ;;  %s8634_s8 = inlined_call_operand.vmem [shape: f32[4,1,128], index: 8, kind: input, shape index: {}]   ;;  %s8635_s9 = inlined_call_operand.vmem [shape: f32[4,2,128], index: 9, kind: output, shape index: {}]  }
   0x1 LB: > { %s5142_s10 = sadd.s32 4294967295, %s7543_s30   ;;  %p5146_p0 = scmp.ge.s32.totalorder %s7543_s30, 1  ;;  %s7543_s30 = sphi %s7597_s30, %s19_s30  }
   0x2   : > { %p357_p1 = scmp.lt.s32.totalorder %s7543_s30, 5 }
   0x4   : > { %p358_p2 = pnand %p5146_p0, %p357_p1 }
   0x5   : > { %p422_p3 = scmp.lt.s32.totalorder (!%p358_p2), %s5142_s10, 3  ;;  %v7545_v0 = vmov (!%p358_p2), 0.0   ;;  %vm7546_vm0 = vmmov (!%p358_p2), 0   ;;  %vm510_vm1 = vcmask (!%p358_p2), 261120  }
   0x6   : > { %361 = sbr.rel (%p358_p2) target bundleno = 1533 (0x5fd), region = 56  ;;  %5962 = vmatprep.subr.bf16.mxu0 (!%p358_p2), %v7545_v0  ;;  %7078 = vmatprep.subr.bf16.mxu1 (!%p358_p2), %v7545_v0 }
   0x7   : > { %5966 = vmatprep.mubr.msk.bf16.mxu0 (!%p358_p2), %vm7546_vm0, %v7545_v0  ;;  %5978 = vmatprep.mubr.msk.bf16.mxu1 (!%p358_p2), %vm7546_vm0, %v7545_v0 }
   0xd   : > { %s8637_s10 = smov (!%p422_p3, %s5142_s10), 3 }
   0xe   : > { %s7274_s11 = smul.u32 144, %s8637_s10  ;;  %s5441_s12 = sshll.u32 %s8637_s10, 4 }
   0xf   : > { %s431_s15 = scalar_lea.vmem %s8627_s1, %s5441_s12  ;;  %s7275_s19 = smul.u32 1600, %s8637_s10 }
  0x10   : > { %v7286_v1 = vld [vmem:[%s431_s15] sm:$0xff]   ;;  %s7621_s18 = scalar_lea.vmem %s8626_s0, %s7274_s11  ;;  %v7287_v2 = vld [vmem:[%s431_s15 + $0x8] sm:$0xff]   ;;  %s434_s25 = scalar_lea.vmem %s8628_s2, %s8637_s10 }
  0x11   : > { %5963 = vmatpush3.bf16.msra.mxu0 %v7286_v1  ;;  %7080 = vmatpush3.bf16.msra.mxu1 %v7286_v1  ;;  %v7288_v3 = vld [vmem:[%s7621_s18] sm:$0xff]   ;;  %v7289_v4 = vld [vmem:[%s7621_s18 + $0x18] sm:$0xff]   ;;  %v7290_v5 = vld [vmem:[%s7621_s18 + $0x8] sm:$0xff]   ;;  %s7650_s22 = scalar_lea.vmem %s8630_s4, %s7275_s19  ;;  %s437_s28 = scalar_lea.vmem %s8629_s3, %s8637_s10 }
  0x12   : > { %5964 = vmatprep.subr.bf16.mxu0 %v7545_v0  ;;  %7079 = vmatprep.subr.bf16.mxu1 %v7545_v0  ;;  %v7291_v6 = vld [vmem:[%s7621_s18 + $0x20] ss:$0 sps:$4 sm:$0xff]   ;;  %v7292_v7 = vld [vmem:[%s7621_s18 + $0x10] sm:$0xff]   ;;  %v7293_v8 = vld [vmem:[%s7621_s18 + $0x24] sm:$0xff]   ;;  %s5442_s29 = sshll.u32 %s8637_s10, 6  ;;  %s445_s16 = scalar_lea.vmem %s8631_s5, %s8637_s10 }
  0x13   : > { %v7294_v9 = vld [vmem:[%s7621_s18 + $0x2c] sm:$0xff]   ;;  %v7296_v11 = vld [vmem:[%s7621_s18 + $0x34] sm:$0xff]   ;;  %v7298_v13 = vld [vmem:[%s7621_s18 + $0x3c] sm:$0xff]   ;;  %s8478_s13 = scalar_lea.vmem %s8633_s7, %s5442_s29  ;;  %s448_s19 = scalar_lea.vmem %s8632_s6, %s8637_s10 }
  0x14   : > { %v7295_v10 = vld [vmem:[%s7621_s18 + $0x48] sm:$0xff]   ;;  %v7297_v12 = vld [vmem:[%s7621_s18 + $0x50] sm:$0xff]   ;;  %v7299_v14 = vld [vmem:[%s7621_s18 + $0x58] sm:$0xff]   ;;  %s5153_s23 = sshll.u32 %s8637_s10, 1 }
  0x15   : > { %5965 = vmatpush3.bf16.msra.mxu0 %v7287_v2  ;;  %7081 = vmatpush3.bf16.msra.mxu1 %v7287_v2  ;;  %v7300_v15 = vld [vmem:[%s7621_s18 + $0x44] ss:$0 sps:$4 sm:$0xff]   ;;  %v7302_v17 = vld [vmem:[%s7621_s18 + $0x68] ss:$0 sps:$4 sm:$0xff]   ;;  %v7303_v18 = vld [vmem:[%s7621_s18 + $0x6c] sm:$0xff]   ;;  %s460_s26 = scalar_lea.vmem %s8635_s9, %s5153_s23 }
  0x16   : > { %5986 = vmatprep.subr.bf16.mxu1 %v7545_v0  ;;  %6010 = vmatprep.subr.bf16.mxu0 %v7545_v0  ;;  %v7301_v16 = vld [vmem:[%s7621_s18 + $0x60] sm:$0xff]   ;;  %v7304_v19 = vld [vmem:[%s7621_s18 + $0x74] sm:$0xff]   ;;  %v7307_v22 = vld [vmem:[%s7621_s18 + $0x8c] ss:$0 sps:$4 sm:$0xff]  }
  0x17   : > { %v7305_v20 = vld [vmem:[%s7621_s18 + $0x7c] sm:$0xff]   ;;  %v7306_v21 = vld [vmem:[%s7621_s18 + $0x84] sm:$0xff]   ;;  %v7310_v25 = vld [vmem:[%s7650_s22 + $0x50] sm:$0xff]  }
  0x18   : > { %5967 = vmatmul.mubr.msk.bf16.vlgmr.msra.gmra.mrb[0].mxu0 %vm510_vm1, %v7288_v3  ;;  %5979 = vmatmul.mubr.msk.bf16.vlgmr.msra.gmra.mrb[0].mxu1 %vm510_vm1, %v7289_v4  ;;  %v7308_v23 = vld [vmem:[%s7650_s22 + $0x40] sm:$0xff]   ;;  %v7309_v24 = vld [vmem:[%s7650_s22 + $0x48] sm:$0xff]   ;;  %v7311_v26 = vld [vmem:[%s7650_s22 + $0x58] sm:$0xff]  }
  0x19   : > { %5987 = vmatpush3.bf16.msra.mxu1 %v7286_v1  ;;  %5970 = vmatprep.mubr.msk.bf16.mxu0 %vm7546_vm0, %v7545_v0  ;;  %v7312_v27 = vld [vmem:[%s7650_s22 + $0x60] sm:$0xff]   ;;  %v7313_v28 = vld [vmem:[%s7650_s22 + $0x68] sm:$0xff]   ;;  %v7314_v29 = vld [vmem:[%s7650_s22 + $0x70] sm:$0xff]  }
  0x1a   : > { %5982 = vmatprep.mubr.msk.bf16.mxu1 %vm7546_vm0, %v7545_v0  ;;  %5988 = vmatprep.subr.bf16.mxu1 %v7545_v0  ;;  %v7315_v30 = vld [vmem:[%s7650_s22 + $0x78] sm:$0xff]  }
  0x1b   : > { %6011 = vmatpush3.bf16.msra.mxu0 %v7286_v1 }
  0x1c   : > { %6012 = vmatprep.subr.bf16.mxu0 %v7545_v0 }
  0x1d   : > { %5989 = vmatpush3.bf16.msra.mxu1 %v7287_v2 }
  0x1e   : > { %6034 = vmatprep.subr.bf16.mxu1 %v7545_v0 }
  0x1f   : > { %6013 = vmatpush3.bf16.msra.mxu0 %v7287_v2 }
  0x20   : > { %5971 = vmatmul.mubr.msk.bf16.gmra.mrb[4].mxu0 %vm510_vm1, %v7290_v5  ;;  %5983 = vmatmul.mubr.msk.bf16.gmra.mrb[4].mxu1 %vm510_vm1, %v7291_v6 }
  0x21   : > { %5974 = vmatprep.mubr.msk.bf16.mxu0 %vm7546_vm0, %v7545_v0  ;;  %5990 = vmatprep.mubr.msk.bf16.mxu1 %vm7546_vm0, %v7545_v0 }
  0x22   : > { %6058 = vmatprep.subr.bf16.mxu0 %v7545_v0 }
  0x28   : > { %5975 = vmatmul.mubr.msk.bf16.gmra.mrb[8].mxu0 %vm510_vm1, %v7292_v7  ;;  %5991 = vmatmul.mubr.msk.bf16.vlgmr.msra.gmra.mrb[8].mxu1 %vm510_vm1, %v7293_v8 }
  0x29   : > { %6035 = vmatpush3.bf16.msra.mxu1 %v7286_v1  ;;  %5994 = vmatprep.mubr.msk.bf16.mxu1 %vm7546_vm0, %v7545_v0 }
  0x2a   : > { %6014 = vmatprep.mubr.msk.bf16.mxu0 %vm7546_vm0, %v7545_v0  ;;  %6036 = vmatprep.subr.bf16.mxu1 %v7545_v0 }
  0x2d   : > { %6037 = vmatpush3.bf16.msra.mxu1 %v7287_v2 }
  0x2e   : > { %6098 = vmatprep.subr.bf16.mxu1 %v7545_v0 }
  0x30   : > { %5995 = vmatmul.mubr.msk.bf16.gmra.mrb[12].mxu1 %vm510_vm1, %v7294_v9  ;;  %6015 = vmatmul.mubr.msk.bf16.vlgmr.msra.gmra.mrb[12].mxu0 %vm510_vm1, %v7295_v10 }
  0x31   : > { %5998 = vmatprep.mubr.msk.bf16.mxu1 %vm7546_vm0, %v7545_v0  ;;  %6018 = vmatprep.mubr.msk.bf16.mxu0 %vm7546_vm0, %v7545_v0 }
  0x32   : > { %6059 = vmatpush3.bf16.msra.mxu0 %v7308_v23 }
  0x33   : > { %6060 = vmatprep.subr.bf16.mxu0 %v7545_v0 }
  0x36   : > { %6061 = vmatpush3.bf16.msra.mxu0 %v7309_v24 }
  0x37   : > { %6062 = vmatprep.subr.bf16.mxu0 %v7545_v0 }
  0x38   : > { %5999 = vmatmul.mubr.msk.bf16.gmra.mrb[16].mxu1 %vm510_vm1, %v7296_v11  ;;  %6019 = vmatmul.mubr.msk.bf16.gmra.mrb[16].mxu0 %vm510_vm1, %v7297_v12 }
  0x39   : > { %6002 = vmatprep.mubr.msk.bf16.mxu1 %vm7546_vm0, %v7545_v0  ;;  %6022 = vmatprep.mubr.msk.bf16.mxu0 %vm7546_vm0, %v7545_v0 }
  0x3a   : > { %6063 = vmatpush3.bf16.msra.mxu0 %v7310_v25 }
  0x3b   : > { %6064 = vmatprep.subr.bf16.mxu0 %v7545_v0 }
  0x3e   : > { %6065 = vmatpush3.bf16.msra.mxu0 %v7311_v26 }
  0x3f   : > { %6066 = vmatprep.subr.bf16.mxu0 %v7545_v0 }
  0x40   : > { %6003 = vmatmul.mubr.msk.bf16.gmra.mrb[20].mxu1 %vm510_vm1, %v7298_v13  ;;  %6023 = vmatmul.mubr.msk.bf16.gmra.mrb[20].mxu0 %vm510_vm1, %v7299_v14 }
  0x41   : > { %6006 = vmatprep.mubr.msk.bf16.mxu1 %vm7546_vm0, %v7545_v0  ;;  %6026 = vmatprep.mubr.msk.bf16.mxu0 %vm7546_vm0, %v7545_v0 }
  0x42   : > { %6067 = vmatpush3.bf16.msra.mxu0 %v7312_v27 }
  0x43   : > { %6068 = vmatprep.subr.bf16.mxu0 %v7545_v0 }
  0x46   : > { %6069 = vmatpush3.bf16.msra.mxu0 %v7313_v28 }
  0x47   : > { %6070 = vmatprep.subr.bf16.mxu0 %v7545_v0 }
  0x48   : > { %6007 = vmatmul.mubr.msk.bf16.gmra.mrb[24].mxu1 %vm510_vm1, %v7300_v15  ;;  %6027 = vmatmul.mubr.msk.bf16.gmra.mrb[24].mxu0 %vm510_vm1, %v7301_v16 }
  0x49   : > { %6030 = vmatprep.mubr.msk.bf16.mxu0 %vm7546_vm0, %v7545_v0  ;;  %6038 = vmatprep.mubr.msk.bf16.mxu1 %vm7546_vm0, %v7545_v0 }
  0x4a   : > { %6071 = vmatpush3.bf16.msra.mxu0 %v7314_v29 }
  0x4b   : > { %6072 = vmatprep.subr.bf16.mxu0 %v7545_v0 }
  0x4e   : > { %6073 = vmatpush3.bf16.msra.mxu0 %v7315_v30 }
  0x4f   : > { %6078 = vmatprep.subr.bf16.mxu0 %v7545_v0 }
  0x50   : > { %6031 = vmatmul.mubr.msk.bf16.gmra.mrb[28].mxu0 %vm510_vm1, %v7302_v17  ;;  %6039 = vmatmul.mubr.msk.bf16.vlgmr.msra.gmra.mrb[28].mxu1 %vm510_vm1, %v7303_v18 }
  0x51   : > { %6042 = vmatprep.mubr.msk.bf16.mxu1 %vm7546_vm0, %v7545_v0  ;;  %6074 = vmatprep.mubr.msk.bf16.mxu0 %vm7546_vm0, %v7545_v0 }
  0x52   : > { %6099 = vmatpush3.bf16.msra.mxu1 %v7308_v23 }
  0x53   : > { %6100 = vmatprep.subr.bf16.mxu1 %v7545_v0 }
  0x56   : > { %6101 = vmatpush3.bf16.msra.mxu1 %v7309_v24 }
  0x57   : > { %6102 = vmatprep.subr.bf16.mxu1 %v7545_v0 }
  0x58   : > { %6043 = vmatmul.mubr.msk.bf16.gmra.mrb[32].mxu1 %vm510_vm1, %v7304_v19 }
  0x59   : > { %6046 = vmatprep.mubr.msk.bf16.mxu1 %vm7546_vm0, %v7545_v0 }
  0x5a   : > { %6103 = vmatpush3.bf16.msra.mxu1 %v7310_v25 }
  0x5b   : > { %6104 = vmatprep.subr.bf16.mxu1 %v7545_v0 }
  0x5e   : > { %6105 = vmatpush3.bf16.msra.mxu1 %v7311_v26 }
  0x5f   : > { %6106 = vmatprep.subr.bf16.mxu1 %v7545_v0 }
  0x60   : > { %6047 = vmatmul.mubr.msk.bf16.gmra.mrb[36].mxu1 %vm510_vm1, %v7305_v20 }
  0x61   : > { %6050 = vmatprep.mubr.msk.bf16.mxu1 %vm7546_vm0, %v7545_v0 }
  0x62   : > { %6107 = vmatpush3.bf16.msra.mxu1 %v7312_v27 }
  0x63   : > { %6108 = vmatprep.subr.bf16.mxu1 %v7545_v0 }
  0x66   : > { %6109 = vmatpush3.bf16.msra.mxu1 %v7313_v28 }
  0x67   : > { %6110 = vmatprep.subr.bf16.mxu1 %v7545_v0 }
  0x68   : > { %6051 = vmatmul.mubr.msk.bf16.gmra.mrb[40].mxu1 %vm510_vm1, %v7306_v21 }
  0x69   : > { %6054 = vmatprep.mubr.msk.bf16.mxu1 %vm7546_vm0, %v7545_v0 }
  0x6a   : > { %6111 = vmatpush3.bf16.msra.mxu1 %v7314_v29 }
  0x6b   : > { %6112 = vmatprep.subr.bf16.mxu1 %v7545_v0 }
  0x6e   : > { %6113 = vmatpush3.bf16.msra.mxu1 %v7315_v30 }
  0x6f   : > { %6118 = vmatprep.subr.bf16.mxu1 %v7545_v0 }
  0x70   : > { %6055 = vmatmul.mubr.msk.bf16.gmra.mrb[44].mxu1 %vm510_vm1, %v7307_v22 }
  0x71   : > { %6114 = vmatprep.mubr.msk.bf16.mxu1 %vm7546_vm0, %v7545_v0 }
  0xeb   : > { %v7743_v31 = vpop.f32.mrb[0].mxu1  ;;  %v560_v32 = vpop.f32.mrb[0].mxu0 }
  0xec   : > { %v5980_v33 = vpop.f32.mrb[1].mxu1  ;;  %v5968_v34 = vpop.f32.mrb[1].mxu0 }
  0xed   : > { %v7745_v35 = vpop.f32.mrb[2].mxu1  ;;  %v563_v36 = vpop.f32.mrb[2].mxu0 }
  0xee   : > { %v5981_v37 = vpop.f32.mrb[3].mxu1  ;;  %v5969_v38 = vpop.f32.mrb[3].mxu0 }
  0xf3   : > { %v7747_v39 = vpop.f32.mrb[4].mxu1  ;;  %v568_v40 = vpop.f32.mrb[4].mxu0 }
  0xf4   : > { %v5984_v41 = vpop.f32.mrb[5].mxu1  ;;  %v5972_v42 = vpop.f32.mrb[5].mxu0 }
  0xf5   : > { %v595_v43 = vpop.f32.mrb[6].mxu1  ;;  %v571_v44 = vpop.f32.mrb[6].mxu0 }
  0xf6   : > { %v5985_v45 = vpop.f32.mrb[7].mxu1  ;;  %v5973_v46 = vpop.f32.mrb[7].mxu0  ;;  %v7764_v43 = vld [vmem:[%s434_s25] ss:$0 sm:$0xff] }
  0xfb   : > { %v679_v47 = vpop.f32.mrb[8].mxu1  ;;  %v576_v48 = vpop.f32.mrb[8].mxu0 }
  0xfc   : > { %v717_v49 = vmax.f32 %v560_v32, %v679_v47  ;;  %v5992_v50 = vpop.f32.mrb[9].mxu1  ;;  %v5976_v51 = vpop.f32.mrb[9].mxu0 }
  0xfd   : > { %v682_v52 = vpop.f32.mrb[10].mxu1  ;;  %v579_v53 = vpop.f32.mrb[10].mxu0 }
  0xfe   : > { %v718_v54 = vmax.f32 %v563_v36, %v682_v52  ;;  %v5993_v55 = vpop.f32.mrb[11].mxu1  ;;  %v5977_v56 = vpop.f32.mrb[11].mxu0 }
 0x103   : > { %v687_v57 = vpop.f32.mrb[12].mxu1  ;;  %v807_v58 = vpop.f32.mrb[12].mxu0 }
 0x104   : > { %v719_v59 = vmax.f32 %v568_v40, %v687_v57  ;;  %v845_v60 = vmax.f32 %v717_v49, %v807_v58  ;;  %v5996_v61 = vpop.f32.mrb[13].mxu1  ;;  %v6016_v62 = vpop.f32.mrb[13].mxu0 }
 0x105   : > { %v690_v63 = vpop.f32.mrb[14].mxu1  ;;  %v810_v1 = vpop.f32.mrb[14].mxu0 }
 0x106   : > { %v720_v2 = vmax.f32 %v571_v44, %v690_v63  ;;  %v846_v3 = vmax.f32 %v718_v54, %v810_v1  ;;  %v5997_v4 = vpop.f32.mrb[15].mxu1  ;;  %v6017_v5 = vpop.f32.mrb[15].mxu0 }
 0x10b   : > { %v695_v6 = vpop.f32.mrb[16].mxu1  ;;  %v815_v7 = vpop.f32.mrb[16].mxu0 }
 0x10c   : > { %v721_v8 = vmax.f32 %v576_v48, %v695_v6  ;;  %v847_v9 = vmax.f32 %v719_v59, %v815_v7  ;;  %v6000_v10 = vpop.f32.mrb[17].mxu1  ;;  %v6020_v11 = vpop.f32.mrb[17].mxu0  ;;  %v7768_v48 = vld [vmem:[%s437_s28] ss:$0 sm:$0xff] }
 0x10d   : > { %v698_v12 = vpop.f32.mrb[18].mxu1  ;;  %v818_v13 = vpop.f32.mrb[18].mxu0 }
 0x10e   : > { %v722_v14 = vmax.f32 %v579_v53, %v698_v12  ;;  %v848_v15 = vmax.f32 %v720_v2, %v818_v13  ;;  %v6001_v16 = vpop.f32.mrb[19].mxu1  ;;  %v6021_v17 = vpop.f32.mrb[19].mxu0 }
 0x113   : > { %v703_v18 = vpop.f32.mrb[20].mxu1  ;;  %v823_v19 = vpop.f32.mrb[20].mxu0 }
 0x114   : > { %v723_v20 = vmax.f32 %v7743_v31, %v703_v18  ;;  %v849_v21 = vmax.f32 %v721_v8, %v823_v19  ;;  %v6004_v22 = vpop.f32.mrb[21].mxu1  ;;  %v6024_v23 = vpop.f32.mrb[21].mxu0 }
 0x115   : > { %v706_v24 = vpop.f32.mrb[22].mxu1  ;;  %v826_v25 = vpop.f32.mrb[22].mxu0  ;;  %v7317_v22 = vld [vmem:[%s7650_s22] sm:$0xff]  }
 0x116   : > { %v724_v26 = vmax.f32 %v7745_v35, %v706_v24  ;;  %v850_v27 = vmax.f32 %v722_v14, %v826_v25  ;;  %v6005_v28 = vpop.f32.mrb[23].mxu1  ;;  %v6025_v29 = vpop.f32.mrb[23].mxu0 }
 0x117   : > { %v7318_v29 = vld [vmem:[%s7650_s22 + $0x8] sm:$0xff]  }
 0x11b   : > { %v711_v30 = vpop.f32.mrb[24].mxu1  ;;  %v831_v32 = vpop.f32.mrb[24].mxu0 }
 0x11c   : > { %v725_v33 = vmax.f32 %v7747_v39, %v711_v30  ;;  %v7752_v34 = vmax.f32 %v723_v20, %v831_v32  ;;  %v6008_v36 = vpop.f32.mrb[25].mxu1  ;;  %v6028_v31 = vpop.f32.mrb[25].mxu0 }
 0x11d   : > { %v714_v37 = vpop.f32.mrb[26].mxu1  ;;  %v834_v38 = vpop.f32.mrb[26].mxu0 }
 0x11e   : > { %v7754_v40 = vmax.f32 %v724_v26, %v834_v38  ;;  %v6009_v41 = vpop.f32.mrb[27].mxu1  ;;  %v6029_v42 = vpop.f32.mrb[27].mxu0 }
 0x11f   : > { %v7319_v41 = vld [vmem:[%s7650_s22 + $0x10] sm:$0xff]  }
 0x123   : > { %v839_v35 = vpop.f32.mrb[28].mxu0  ;;  %v935_v39 = vpop.f32.mrb[28].mxu1 }
 0x124   : > { %v7766_v44 = vmax.f32 %v725_v33, %v839_v35  ;;  %v973_v45 = vmax.f32 %v845_v60, %v935_v39  ;;  %v6040_v46 = vpop.f32.mrb[29].mxu1  ;;  %v6032_v47 = vpop.f32.mrb[29].mxu0 }
 0x125   : > { %v938_v49 = vpop.f32.mrb[30].mxu1  ;;  %v842_v50 = vpop.f32.mrb[30].mxu0 }
 0x126   : > { %v989_v51 = vmul.f32 %v7764_v43, %v973_v45  ;;  %v974_v52 = vmax.f32 %v846_v3, %v938_v49  ;;  %v6041_v53 = vpop.f32.mrb[31].mxu1  ;;  %v6033_v54 = vpop.f32.mrb[31].mxu0 }
 0x128   : > { %v1005_v55 = vadd.f32 %v7768_v48, %v989_v51  ;;  %v990_v56 = vmul.f32 %v7764_v43, %v974_v52 }
 0x12a   : > { %v1006_v57 = vadd.f32 %v7768_v48, %v990_v56  ;;  %v1014_v59 = vmax.f32 %v1005_v55, 0.0 }
 0x12b   : > { %v943_v58 = vpop.f32.mrb[32].mxu1 }
 0x12c   : > { %v1015_v60 = vmax.f32 %v1006_v57, 0.0  ;;  %v975_v61 = vmax.f32 %v847_v9, %v943_v58  ;;  %v6044_v62 = vpop.f32.mrb[33].mxu1  ;;  %v7325_v57 = vld [vmem:[%s7650_s22 + $0x38] sm:$0xff]   ;;  %v7326_v58 = vld [vmem:[%s7650_s22 + $0x80] sm:$0xff]  }
 0x12d   : > { %v946_v63 = vpop.f32.mrb[34].mxu1  ;;  %v7329_v62 = vld [vmem:[%s7650_s22 + $0x90] sm:$0xff]  }
 0x12e   : > { %v5455_v1 = vpack.c.bf16 %v1015_v60, %v1014_v59  ;;  %v991_v2 = vmul.f32 %v7764_v43, %v975_v61  ;;  %v976_v4 = vmax.f32 %v848_v15, %v946_v63  ;;  %v6045_v5 = vpop.f32.mrb[35].mxu1  ;;  %v7327_v60 = vld [vmem:[%s7650_s22 + $0x88] sm:$0xff]  }
 0x12f   : > { %v7333_v5 = vld [vmem:[%s7650_s22 + $0xb0] sm:$0xff]  }
 0x130   : > { %5456 = vst [vmem:[#allocation2] sm:$0xff] %v5455_v1   ;;  %v1007_v3 = vadd.f32 %v7768_v48, %v991_v2  ;;  %v992_v6 = vmul.f32 %v7764_v43, %v976_v4  ;;  %v7330_v1 = vld [vmem:[%s7650_s22 + $0x98] sm:$0xff]   ;;  %v7331_v2 = vld [vmem:[%s7650_s22 + $0xa0] sm:$0xff]   ;;  %v7332_v4 = vld [vmem:[%s7650_s22 + $0xa8] sm:$0xff]  }
 0x132   : > { %v1008_v7 = vadd.f32 %v7768_v48, %v992_v6  ;;  %v1016_v10 = vmax.f32 %v1007_v3, 0.0  ;;  %v7334_v3 = vld [vmem:[%s7650_s22 + $0xb8] sm:$0xff]  }
 0x133   : > { %v951_v8 = vpop.f32.mrb[36].mxu1 }
 0x134   : > { %v1017_v11 = vmax.f32 %v1008_v7, 0.0  ;;  %v977_v12 = vmax.f32 %v849_v21, %v951_v8  ;;  %v6048_v9 = vpop.f32.mrb[37].mxu1  ;;  %v7336_v7 = vld [vmem:[%s7650_s22 + $0xc0] sm:$0xff]  }
 0x135   : > { %v954_v13 = vpop.f32.mrb[38].mxu1  ;;  %v7339_v9 = vld [vmem:[%s7650_s22 + $0xd8] sm:$0xff]  }
 0x136   : > { %v5460_v14 = vpack.c.bf16 %v1017_v11, %v1016_v10  ;;  %v993_v16 = vmul.f32 %v7764_v43, %v977_v12  ;;  %v978_v17 = vmax.f32 %v850_v27, %v954_v13  ;;  %v6049_v15 = vpop.f32.mrb[39].mxu1  ;;  %v7337_v10 = vld [vmem:[%s7650_s22 + $0xc8] sm:$0xff]   ;;  %v7338_v11 = vld [vmem:[%s7650_s22 + $0xd0] sm:$0xff]   ;;  %v7340_v13 = vld [vmem:[%s7650_s22 + $0xe0] sm:$0xff]  }
 0x137   : > { %v7316_v18 = vld [vmem:[#allocation2] ss:$0 sps:$4 sm:$0x66]   ;;  %v7826_v61 = vld [vmem:[#allocation2 + $0x4] ss:$0 sps:$4 sm:$0xcc]  }
 0x138   : > { %5472 = vst [vmem:[#allocation2 + $0x8] sm:$0xff] %v5460_v14   ;;  %v1009_v19 = vadd.f32 %v7768_v48, %v993_v16  ;;  %v994_v20 = vmul.f32 %v7764_v43, %v978_v17  ;;  %v1109_v23 = vrot.slane %v7316_v18, 1  ;;  %v1085_v59 = vld [vmem:[#allocation2] sm:$0x3]  ;;  %v1337_v63 = vrot.slane %v7826_v61, 2  ;;  %v7341_v14 = vld [vmem:[%s7650_s22 + $0xe8] sm:$0xff]  }
 0x139   : > { %v7335_v6 = vld [vmem:[#allocation2] ss:$0 sps:$4 sm:$0xcc]   ;;  %v7342_v16 = vld [vmem:[%s7650_s22 + $0xf0] sm:$0xff]   ;;  %v7343_v17 = vld [vmem:[%s7650_s22 + $0xf8] sm:$0xff]  }
 0x13a   : > { %v1010_v24 = vadd.f32 %v7768_v48, %v994_v20  ;;  %6075 = vmatmul.mubr.bf16.vlgmr.msra.gmra.mrb[32].mxu0 %v1109_v23  ;;  %v1018_v21 = vmax.f32 %v1009_v19, 0.0  ;;  %v1400_v8 = vrot.slane %v7335_v6, 2  ;;  %v7344_v15 = vld [vmem:[#allocation2] sm:$0x18]   ;;  %v7346_v20 = vld [vmem:[%s7650_s22 + $0x108] sm:$0xff]   ;;  %v7348_v23 = vld [vmem:[%s7650_s22 + $0x110] sm:$0xff]  }
 0x13b   : > { %v959_v25 = vpop.f32.mrb[40].mxu1  ;;  %6079 = vmatpush3.bf16.msra.mxu0 %v7317_v22  ;;  %6094 = vmatprep.mubr.msk.bf16.mxu0 %vm7546_vm0, %v7545_v0  ;;  %v7345_v18 = vld [vmem:[%s7650_s22 + $0x100] sm:$0xff]   ;;  %v1556_v19 = vrot.slane %v7344_v15, 3  ;;  %v7399_v15 = vld [vmem:[%s7650_s22 + $0x288] sm:$0xff]  }
 0x13c   : > { %v1019_v26 = vmax.f32 %v1010_v24, 0.0  ;;  %v979_v28 = vmax.f32 %v7752_v34, %v959_v25  ;;  %v6052_v27 = vpop.f32.mrb[41].mxu1  ;;  %6080 = vmatprep.subr.bf16.mxu0 %v7545_v0  ;;  %v7349_v25 = vld [vmem:[%s7650_s22 + $0x118] sm:$0xff]   ;;  %v7389_v6 = vld [vmem:[%s7650_s22 + $0x240] sm:$0xff]  }
 0x13d   : > { %v962_v30 = vpop.f32.mrb[42].mxu1  ;;  %v7353_v27 = vld [vmem:[%s7650_s22 + $0x138] sm:$0xff]  }
 0x13e   : > { %v5465_v32 = vpack.c.bf16 %v1019_v26, %v1018_v21  ;;  %v995_v33 = vmul.f32 %v7764_v43, %v979_v28  ;;  %v980_v36 = vmax.f32 %v7754_v40, %v962_v30  ;;  %v6053_v31 = vpop.f32.mrb[43].mxu1  ;;  %v7321_v40 = vld [vmem:[%s7650_s22 + $0x18] sm:$0xff]   ;;  %v7350_v21 = vld [vmem:[%s7650_s22 + $0x120] sm:$0xff]   ;;  %v7351_v26 = vld [vmem:[%s7650_s22 + $0x128] sm:$0xff]  }
 0x13f   : > { %v7790_v37 = vld [vmem:[#allocation2 + $0x4] sm:$0x18]   ;;  %6081 = vmatpush3.bf16.msra.mxu0 %v7318_v29  ;;  %v7352_v28 = vld [vmem:[%s7650_s22 + $0x130] sm:$0xff]   ;;  %v1709_v30 = vld [vmem:[#allocation2 + $0x4] sm:$0x3] }
 0x140   : > { %5473 = vst [vmem:[#allocation2 + $0x10] sm:$0xff] %v5465_v32   ;;  %v1011_v34 = vadd.f32 %v7768_v48, %v995_v33  ;;  %v996_v38 = vmul.f32 %v7764_v43, %v980_v36  ;;  %6082 = vmatprep.subr.bf16.mxu0 %v7545_v0  ;;  %v1292_v42 = vrot.slane %v7790_v37, 3  ;;  %v7864_v12 = vld [vmem:[#allocation2 + $0x8] sm:$0x3]  ;;  %v7357_v36 = vld [vmem:[%s7650_s22 + $0x150] sm:$0xff]  }
 0x141   : > { %v7355_v32 = vld [vmem:[%s7650_s22 + $0x148] sm:$0xff]  }
 0x142   : > { %v1012_v35 = vadd.f32 %v7768_v48, %v996_v38  ;;  %v1020_v39 = vmax.f32 %v1011_v34, 0.0  ;;  %6115 = vmatmul.mubr.bf16.vlgmr.msra.gmra.mrb[48].mxu1 %v1292_v42  ;;  %v7923_v33 = vld [vmem:[#allocation2 + $0x8] ss:$0 sps:$4 sm:$0xcc]   ;;  %v7358_v34 = vld [vmem:[%s7650_s22 + $0x158] sm:$0xff]   ;;  %v7359_v38 = vld [vmem:[%s7650_s22 + $0x160] sm:$0xff]  }
 0x143   : > { %v967_v45 = vpop.f32.mrb[44].mxu1  ;;  %6083 = vmatpush3.bf16.msra.mxu0 %v7319_v41  ;;  %6119 = vmatpush3.bf16.msra.mxu1 %v7317_v22  ;;  %v7890_v22 = vld [vmem:[#allocation2 + $0x8] ss:$0 sps:$4 sm:$0x66]   ;;  %v1803_v31 = vrot.slane %v7923_v33, 2 }
 0x144   : > { %v1021_v46 = vmax.f32 %v1012_v35, 0.0  ;;  %v981_v47 = vmax.f32 %v7766_v44, %v967_v45  ;;  %v6056_v49 = vpop.f32.mrb[45].mxu1  ;;  %6084 = vmatprep.subr.bf16.mxu0 %v7545_v0  ;;  %6120 = vmatprep.subr.bf16.mxu1 %v7545_v0  ;;  %v7322_v44 = vld [vmem:[%s7650_s22 + $0x20] sm:$0xff]   ;;  %v1650_v24 = vrot.slane %v7890_v22, 1  ;;  %v7361_v35 = vld [vmem:[%s7650_s22 + $0x170] sm:$0xff]   ;;  %v7412_v33 = vld [vmem:[%s7650_s22 + $0x2e8] sm:$0xff]  }
 0x145   : > { %v970_v50 = vpop.f32.mrb[46].mxu1  ;;  %6134 = vmatprep.mubr.msk.bf16.mxu1 %vm7546_vm0, %v7545_v0  ;;  %v7363_v45 = vld [vmem:[%s7650_s22 + $0x180] sm:$0xff]   ;;  %v7366_v49 = vld [vmem:[%s7650_s22 + $0x198] sm:$0xff]   ;;  %v8025_v61 = vld [vmem:[#allocation2 + $0xc] ss:$0 sps:$4 sm:$0xcc]  }
 0x146   : > { %v5470_v51 = vpack.c.bf16 %v1021_v46, %v1020_v39  ;;  %v997_v52 = vmul.f32 %v7764_v43, %v981_v47  ;;  %v6057_v53 = vpop.f32.mrb[47].mxu1  ;;  %v7323_v43 = vld [vmem:[%s7650_s22 + $0x28] sm:$0xff]   ;;  %v7362_v39 = vld [vmem:[%s7650_s22 + $0x178] sm:$0xff]   ;;  %v7365_v46 = vld [vmem:[%s7650_s22 + $0x190] sm:$0xff]  }
 0x147   : > { %6085 = vmatpush3.bf16.msra.mxu0 %v7321_v40  ;;  %6121 = vmatpush3.bf16.msra.mxu1 %v7318_v29  ;;  %v7354_v29 = vld [vmem:[%s7650_s22 + $0x140] sm:$0xff]   ;;  %v7963_v47 = vld [vmem:[#allocation2 + $0xc] sm:$0x3]  ;;  %v7370_v53 = vld [vmem:[%s7650_s22 + $0x1b8] sm:$0xff]  }
 0x148   : > { %5474 = vst [vmem:[#allocation2 + $0x18] sm:$0xff] %v5470_v51   ;;  %v1013_v54 = vadd.f32 %v7768_v48, %v997_v52  ;;  %6086 = vmatprep.subr.bf16.mxu0 %v7545_v0  ;;  %6122 = vmatprep.subr.bf16.mxu1 %v7545_v0  ;;  %v7324_v48 = vld [vmem:[%s7650_s22 + $0x30] sm:$0xff]   ;;  %v7367_v50 = vld [vmem:[%s7650_s22 + $0x1a0] sm:$0xff]   ;;  %v7368_v51 = vld [vmem:[%s7650_s22 + $0x1a8] sm:$0xff]  }
 0x149   : > { %v7369_v52 = vld [vmem:[%s7650_s22 + $0x1b0] sm:$0xff]   ;;  %v7402_v22 = vld [vmem:[%s7650_s22 + $0x2a0] sm:$0xff]  }
 0x14a   : > { %v1022_v55 = vmax.f32 %v1013_v54, 0.0  ;;  %v7371_v54 = vld [vmem:[%s7650_s22 + $0x1c0] sm:$0xff]  }
 0x14b   : > { %6087 = vmatpush3.bf16.msra.mxu0 %v7322_v44  ;;  %6123 = vmatpush3.bf16.msra.mxu1 %v7319_v41  ;;  %v7360_v41 = vld [vmem:[%s7650_s22 + $0x168] sm:$0xff]  }
 0x14c   : > { %v5451_v56 = vpack.c.bf16 %v1022_v55, %v1022_v55  ;;  %6088 = vmatprep.subr.bf16.mxu0 %v7545_v0  ;;  %6124 = vmatprep.subr.bf16.mxu1 %v7545_v0  ;;  %v7991_v55 = vld [vmem:[#allocation2 + $0xc] ss:$0 sps:$4 sm:$0x66]  }
 0x14d   : > { %v2102_v37 = vrot.slane %v7991_v55, 1  ;;  %v7429_v55 = vld [vmem:[%s7650_s22 + $0x368] sm:$0xff]  }
 0x14e   : > { %1068 = vst [vmem:[#allocation2 + $0x20] sm:$0xf] %v5451_v56  ;;  %v7374_v56 = vld [vmem:[%s7650_s22 + $0x1d0] sm:$0xff]  }
 0x14f   : > { %6089 = vmatpush3.bf16.msra.mxu0 %v7323_v43  ;;  %6125 = vmatpush3.bf16.msra.mxu1 %v7321_v40  ;;  %v7364_v40 = vld [vmem:[%s7650_s22 + $0x188] sm:$0xff]  }
 0x150   : > { %6090 = vmatprep.subr.bf16.mxu0 %v7545_v0  ;;  %6126 = vmatprep.subr.bf16.mxu1 %v7545_v0 }
 0x153   : > { %6091 = vmatpush3.bf16.msra.mxu0 %v7324_v48  ;;  %6127 = vmatpush3.bf16.msra.mxu1 %v7322_v44  ;;  %v7372_v44 = vld [vmem:[%s7650_s22 + $0x1c8] sm:$0xff]  }
 0x154   : > { %6092 = vmatprep.subr.bf16.mxu0 %v7545_v0  ;;  %6128 = vmatprep.subr.bf16.mxu1 %v7545_v0 }
 0x157   : > { %6093 = vmatpush3.bf16.msra.mxu0 %v7325_v57  ;;  %6129 = vmatpush3.bf16.msra.mxu1 %v7323_v43  ;;  %v7376_v43 = vld [vmem:[%s7650_s22 + $0x1e0] sm:$0xff]  }
 0x158   : > { %6130 = vmatprep.subr.bf16.mxu1 %v7545_v0  ;;  %6138 = vmatprep.subr.bf16.mxu0 %v7545_v0 }
 0x15a   : > { %6095 = vmatmul.mubr.bf16.vlgmr.msra.gmra.mrb[32].mxu0 %v1085_v59  ;;  %v7380_v59 = vld [vmem:[%s7650_s22 + $0x200] sm:$0xff]  }
 0x15b   : > { %6131 = vmatpush3.bf16.msra.mxu1 %v7324_v48  ;;  %6139 = vmatpush3.bf16.msra.mxu0 %v7326_v58  ;;  %v7377_v48 = vld [vmem:[%s7650_s22 + $0x1e8] sm:$0xff]  }
 0x15c   : > { %6132 = vmatprep.subr.bf16.mxu1 %v7545_v0  ;;  %6140 = vmatprep.subr.bf16.mxu0 %v7545_v0 }
 0x15d   : > { %6154 = vmatprep.mubr.msk.bf16.mxu0 %vm7546_vm0, %v7545_v0 }
 0x15f   : > { %6133 = vmatpush3.bf16.msra.mxu1 %v7325_v57  ;;  %6141 = vmatpush3.bf16.msra.mxu0 %v7327_v60  ;;  %v7378_v57 = vld [vmem:[%s7650_s22 + $0x1f0] sm:$0xff]  }
 0x160   : > { %6142 = vmatprep.subr.bf16.mxu0 %v7545_v0  ;;  %6158 = vmatprep.subr.bf16.mxu1 %v7545_v0 }
 0x162   : > { %6135 = vmatmul.mubr.bf16.vlgmr.msra.gmra.mrb[48].mxu1 %v1337_v63 }
 0x163   : > { %6143 = vmatpush3.bf16.msra.mxu0 %v7329_v62  ;;  %6159 = vmatpush3.bf16.msra.mxu1 %v7326_v58  ;;  %v7379_v58 = vld [vmem:[%s7650_s22 + $0x1f8] sm:$0xff]  }
 0x164   : > { %6144 = vmatprep.subr.bf16.mxu0 %v7545_v0  ;;  %6160 = vmatprep.subr.bf16.mxu1 %v7545_v0 }
 0x165   : > { %6174 = vmatprep.mubr.msk.bf16.mxu1 %vm7546_vm0, %v7545_v0 }
 0x167   : > { %6145 = vmatpush3.bf16.msra.mxu0 %v7330_v1  ;;  %6161 = vmatpush3.bf16.msra.mxu1 %v7327_v60  ;;  %v7381_v60 = vld [vmem:[%s7650_s22 + $0x208] sm:$0xff]  }
 0x168   : > { %6146 = vmatprep.subr.bf16.mxu0 %v7545_v0  ;;  %6162 = vmatprep.subr.bf16.mxu1 %v7545_v0 }
 0x16b   : > { %6147 = vmatpush3.bf16.msra.mxu0 %v7331_v2  ;;  %6163 = vmatpush3.bf16.msra.mxu1 %v7329_v62  ;;  %v7383_v62 = vld [vmem:[%s7650_s22 + $0x210] sm:$0xff]  }
 0x16c   : > { %6148 = vmatprep.subr.bf16.mxu0 %v7545_v0  ;;  %6164 = vmatprep.subr.bf16.mxu1 %v7545_v0 }
 0x16f   : > { %6149 = vmatpush3.bf16.msra.mxu0 %v7332_v4  ;;  %6165 = vmatpush3.bf16.msra.mxu1 %v7330_v1  ;;  %v7384_v1 = vld [vmem:[%s7650_s22 + $0x218] sm:$0xff]  }
 0x170   : > { %6150 = vmatprep.subr.bf16.mxu0 %v7545_v0  ;;  %6166 = vmatprep.subr.bf16.mxu1 %v7545_v0 }
 0x173   : > { %6151 = vmatpush3.bf16.msra.mxu0 %v7333_v5  ;;  %6167 = vmatpush3.bf16.msra.mxu1 %v7331_v2  ;;  %v7385_v2 = vld [vmem:[%s7650_s22 + $0x220] sm:$0xff]  }
 0x174   : > { %6152 = vmatprep.subr.bf16.mxu0 %v7545_v0  ;;  %6168 = vmatprep.subr.bf16.mxu1 %v7545_v0 }
 0x177   : > { %6153 = vmatpush3.bf16.msra.mxu0 %v7334_v3  ;;  %6169 = vmatpush3.bf16.msra.mxu1 %v7332_v4  ;;  %v7386_v4 = vld [vmem:[%s7650_s22 + $0x228] sm:$0xff]  }
 0x178   : > { %6170 = vmatprep.subr.bf16.mxu1 %v7545_v0  ;;  %6178 = vmatprep.subr.bf16.mxu0 %v7545_v0 }
 0x17a   : > { %6155 = vmatmul.mubr.bf16.vlgmr.msra.gmra.mrb[32].mxu0 %v1400_v8  ;;  %v8060_v8 = vld [vmem:[#allocation2 + $0xc] sm:$0x18]  }
 0x17b   : > { %6171 = vmatpush3.bf16.msra.mxu1 %v7333_v5  ;;  %6179 = vmatpush3.bf16.msra.mxu0 %v7336_v7  ;;  %v7387_v5 = vld [vmem:[%s7650_s22 + $0x230] sm:$0xff]  }
 0x17c   : > { %6172 = vmatprep.subr.bf16.mxu1 %v7545_v0  ;;  %6180 = vmatprep.subr.bf16.mxu0 %v7545_v0 }
 0x17d   : > { %6194 = vmatprep.mubr.msk.bf16.mxu0 %vm7546_vm0, %v7545_v0 }
 0x17f   : > { %6173 = vmatpush3.bf16.msra.mxu1 %v7334_v3  ;;  %6181 = vmatpush3.bf16.msra.mxu0 %v7337_v10  ;;  %v7388_v3 = vld [vmem:[%s7650_s22 + $0x238] sm:$0xff]  }
 0x180   : > { %6182 = vmatprep.subr.bf16.mxu0 %v7545_v0  ;;  %6198 = vmatprep.subr.bf16.mxu1 %v7545_v0 }
 0x182   : > { %6175 = vmatmul.mubr.bf16.vlgmr.msra.gmra.mrb[48].mxu1 %v7864_v12 }
 0x183   : > { %6183 = vmatpush3.bf16.msra.mxu0 %v7338_v11  ;;  %6199 = vmatpush3.bf16.msra.mxu1 %v7336_v7  ;;  %v7390_v7 = vld [vmem:[%s7650_s22 + $0x248] sm:$0xff]  }
 0x184   : > { %6184 = vmatprep.subr.bf16.mxu0 %v7545_v0  ;;  %6200 = vmatprep.subr.bf16.mxu1 %v7545_v0 }
 0x185   : > { %6214 = vmatprep.mubr.msk.bf16.mxu1 %vm7546_vm0, %v7545_v0 }
 0x187   : > { %6185 = vmatpush3.bf16.msra.mxu0 %v7339_v9  ;;  %6201 = vmatpush3.bf16.msra.mxu1 %v7337_v10  ;;  %v7392_v10 = vld [vmem:[%s7650_s22 + $0x250] sm:$0xff]  }
 0x188   : > { %6186 = vmatprep.subr.bf16.mxu0 %v7545_v0  ;;  %6202 = vmatprep.subr.bf16.mxu1 %v7545_v0 }
 0x18b   : > { %6187 = vmatpush3.bf16.msra.mxu0 %v7340_v13  ;;  %6203 = vmatpush3.bf16.msra.mxu1 %v7338_v11  ;;  %v2409_v11 = vrot.slane %v8060_v8, 3  ;;  %v7447_v8 = vld [vmem:[%s7650_s22 + $0x3e8] sm:$0xff]  }
 0x18c   : > { %6188 = vmatprep.subr.bf16.mxu0 %v7545_v0  ;;  %6204 = vmatprep.subr.bf16.mxu1 %v7545_v0 }
 0x18f   : > { %6189 = vmatpush3.bf16.msra.mxu0 %v7341_v14  ;;  %6205 = vmatpush3.bf16.msra.mxu1 %v7339_v9  ;;  %v7394_v9 = vld [vmem:[%s7650_s22 + $0x260] sm:$0xff]  }
 0x190   : > { %6190 = vmatprep.subr.bf16.mxu0 %v7545_v0  ;;  %6206 = vmatprep.subr.bf16.mxu1 %v7545_v0 }
 0x193   : > { %6191 = vmatpush3.bf16.msra.mxu0 %v7342_v16  ;;  %6207 = vmatpush3.bf16.msra.mxu1 %v7340_v13  ;;  %v7395_v13 = vld [vmem:[%s7650_s22 + $0x268] sm:$0xff]  }
 0x194   : > { %6192 = vmatprep.subr.bf16.mxu0 %v7545_v0  ;;  %6208 = vmatprep.subr.bf16.mxu1 %v7545_v0 }
 0x197   : > { %6193 = vmatpush3.bf16.msra.mxu0 %v7343_v17  ;;  %6209 = vmatpush3.bf16.msra.mxu1 %v7341_v14  ;;  %v7396_v14 = vld [vmem:[%s7650_s22 + $0x270] sm:$0xff]  }
 0x198   : > { %6210 = vmatprep.subr.bf16.mxu1 %v7545_v0  ;;  %6218 = vmatprep.subr.bf16.mxu0 %v7545_v0 }
 0x19a   : > { %6195 = vmatmul.mubr.bf16.vlgmr.msra.gmra.mrb[32].mxu0 %v1556_v19  ;;  %v8100_v19 = vld [vmem:[#allocation2 + $0x10] sm:$0x3] }
 0x19b   : > { %6211 = vmatpush3.bf16.msra.mxu1 %v7342_v16  ;;  %6219 = vmatpush3.bf16.msra.mxu0 %v7345_v18  ;;  %v7397_v16 = vld [vmem:[%s7650_s22 + $0x278] sm:$0xff]  }
 0x19c   : > { %6212 = vmatprep.subr.bf16.mxu1 %v7545_v0  ;;  %6220 = vmatprep.subr.bf16.mxu0 %v7545_v0 }
 0x19d   : > { %6234 = vmatprep.mubr.msk.bf16.mxu0 %vm7546_vm0, %v7545_v0 }
 0x19f   : > { %6213 = vmatpush3.bf16.msra.mxu1 %v7343_v17  ;;  %6221 = vmatpush3.bf16.msra.mxu0 %v7346_v20  ;;  %v7398_v17 = vld [vmem:[%s7650_s22 + $0x280] sm:$0xff]  }
 0x1a0   : > { %6222 = vmatprep.subr.bf16.mxu0 %v7545_v0  ;;  %6238 = vmatprep.subr.bf16.mxu1 %v7545_v0 }
 0x1a2   : > { %6215 = vmatmul.mubr.bf16.vlgmr.msra.gmra.mrb[48].mxu1 %v1650_v24 }
 0x1a3   : > { %6223 = vmatpush3.bf16.msra.mxu0 %v7348_v23  ;;  %6239 = vmatpush3.bf16.msra.mxu1 %v7345_v18  ;;  %v7400_v18 = vld [vmem:[%s7650_s22 + $0x290] sm:$0xff]  }
 0x1a4   : > { %6224 = vmatprep.subr.bf16.mxu0 %v7545_v0  ;;  %6240 = vmatprep.subr.bf16.mxu1 %v7545_v0 }
 0x1a5   : > { %6254 = vmatprep.mubr.msk.bf16.mxu1 %vm7546_vm0, %v7545_v0 }
 0x1a7   : > { %6225 = vmatpush3.bf16.msra.mxu0 %v7349_v25  ;;  %6241 = vmatpush3.bf16.msra.mxu1 %v7346_v20  ;;  %v7401_v20 = vld [vmem:[%s7650_s22 + $0x298] sm:$0xff]  }
 0x1a8   : > { %6226 = vmatprep.subr.bf16.mxu0 %v7545_v0  ;;  %6242 = vmatprep.subr.bf16.mxu1 %v7545_v0 }
 0x1ab   : > { %6227 = vmatpush3.bf16.msra.mxu0 %v7350_v21  ;;  %6243 = vmatpush3.bf16.msra.mxu1 %v7348_v23  ;;  %v7403_v23 = vld [vmem:[%s7650_s22 + $0x2a8] sm:$0xff]  }
 0x1ac   : > { %6228 = vmatprep.subr.bf16.mxu0 %v7545_v0  ;;  %6244 = vmatprep.subr.bf16.mxu1 %v7545_v0 }
 0x1af   : > { %6229 = vmatpush3.bf16.msra.mxu0 %v7351_v26  ;;  %6245 = vmatpush3.bf16.msra.mxu1 %v7349_v25  ;;  %v7405_v25 = vld [vmem:[%s7650_s22 + $0x2b8] sm:$0xff]  }
 0x1b0   : > { %6230 = vmatprep.subr.bf16.mxu0 %v7545_v0  ;;  %6246 = vmatprep.subr.bf16.mxu1 %v7545_v0 }
 0x1b3   : > { %6231 = vmatpush3.bf16.msra.mxu0 %v7352_v28  ;;  %6247 = vmatpush3.bf16.msra.mxu1 %v7350_v21  ;;  %v7406_v21 = vld [vmem:[%s7650_s22 + $0x2c0] sm:$0xff]  }
 0x1b4   : > { %6232 = vmatprep.subr.bf16.mxu0 %v7545_v0  ;;  %6248 = vmatprep.subr.bf16.mxu1 %v7545_v0 }
 0x1b7   : > { %6233 = vmatpush3.bf16.msra.mxu0 %v7353_v27  ;;  %6249 = vmatpush3.bf16.msra.mxu1 %v7351_v26  ;;  %v7407_v26 = vld [vmem:[%s7650_s22 + $0x2c8] sm:$0xff]  }
 0x1b8   : > { %6250 = vmatprep.subr.bf16.mxu1 %v7545_v0  ;;  %6258 = vmatprep.subr.bf16.mxu0 %v7545_v0 }
 0x1ba   : > { %6235 = vmatmul.mubr.bf16.vlgmr.msra.gmra.mrb[32].mxu0 %v1709_v30  ;;  %v7410_v30 = vld [vmem:[%s7650_s22 + $0x2d8] sm:$0xff]  }
 0x1bb   : > { %6251 = vmatpush3.bf16.msra.mxu1 %v7352_v28  ;;  %6259 = vmatpush3.bf16.msra.mxu0 %v7354_v29  ;;  %v8127_v28 = vld [vmem:[#allocation2 + $0x10] ss:$0 sps:$4 sm:$0xcc]  }
 0x1bc   : > { %6252 = vmatprep.subr.bf16.mxu1 %v7545_v0  ;;  %6260 = vmatprep.subr.bf16.mxu0 %v7545_v0 }
 0x1bd   : > { %6274 = vmatprep.mubr.msk.bf16.mxu0 %vm7546_vm0, %v7545_v0 }
 0x1bf   : > { %6253 = vmatpush3.bf16.msra.mxu1 %v7353_v27  ;;  %6261 = vmatpush3.bf16.msra.mxu0 %v7355_v32  ;;  %v7409_v27 = vld [vmem:[%s7650_s22 + $0x2d0] sm:$0xff]  }
 0x1c0   : > { %6262 = vmatprep.subr.bf16.mxu0 %v7545_v0  ;;  %6278 = vmatprep.subr.bf16.mxu1 %v7545_v0 }
 0x1c2   : > { %6255 = vmatmul.mubr.bf16.vlgmr.msra.gmra.mrb[48].mxu1 %v1803_v31 }
 0x1c3   : > { %6263 = vmatpush3.bf16.msra.mxu0 %v7357_v36  ;;  %6279 = vmatpush3.bf16.msra.mxu1 %v7354_v29  ;;  %v2708_v29 = vrot.slane %v8127_v28, 2  ;;  %v7464_v28 = vld [vmem:[%s7650_s22 + $0x468] sm:$0xff]  }
 0x1c4   : > { %6264 = vmatprep.subr.bf16.mxu0 %v7545_v0  ;;  %6280 = vmatprep.subr.bf16.mxu1 %v7545_v0 }
 0x1c5   : > { %6294 = vmatprep.mubr.msk.bf16.mxu1 %vm7546_vm0, %v7545_v0 }
 0x1c7   : > { %6265 = vmatpush3.bf16.msra.mxu0 %v7358_v34  ;;  %6281 = vmatpush3.bf16.msra.mxu1 %v7355_v32  ;;  %v7411_v32 = vld [vmem:[%s7650_s22 + $0x2e0] sm:$0xff]  }
 0x1c8   : > { %6266 = vmatprep.subr.bf16.mxu0 %v7545_v0  ;;  %6282 = vmatprep.subr.bf16.mxu1 %v7545_v0 }
 0x1cb   : > { %6267 = vmatpush3.bf16.msra.mxu0 %v7359_v38  ;;  %6283 = vmatpush3.bf16.msra.mxu1 %v7357_v36  ;;  %v7413_v36 = vld [vmem:[%s7650_s22 + $0x2f0] sm:$0xff]  }
 0x1cc   : > { %6268 = vmatprep.subr.bf16.mxu0 %v7545_v0  ;;  %6284 = vmatprep.subr.bf16.mxu1 %v7545_v0 }
 0x1cf   : > { %6269 = vmatpush3.bf16.msra.mxu0 %v7360_v41  ;;  %6285 = vmatpush3.bf16.msra.mxu1 %v7358_v34  ;;  %v7415_v34 = vld [vmem:[%s7650_s22 + $0x300] sm:$0xff]  }
 0x1d0   : > { %6270 = vmatprep.subr.bf16.mxu0 %v7545_v0  ;;  %6286 = vmatprep.subr.bf16.mxu1 %v7545_v0 }
 0x1d3   : > { %6271 = vmatpush3.bf16.msra.mxu0 %v7361_v35  ;;  %6287 = vmatpush3.bf16.msra.mxu1 %v7359_v38  ;;  %v7416_v38 = vld [vmem:[%s7650_s22 + $0x308] sm:$0xff]  }
 0x1d4   : > { %6272 = vmatprep.subr.bf16.mxu0 %v7545_v0  ;;  %6288 = vmatprep.subr.bf16.mxu1 %v7545_v0 }
 0x1d7   : > { %6273 = vmatpush3.bf16.msra.mxu0 %v7362_v39  ;;  %6289 = vmatpush3.bf16.msra.mxu1 %v7360_v41  ;;  %v8162_v41 = vld [vmem:[#allocation2 + $0x10] sm:$0x18]  }
 0x1d8   : > { %6290 = vmatprep.subr.bf16.mxu1 %v7545_v0  ;;  %6298 = vmatprep.subr.bf16.mxu0 %v7545_v0 }
 0x1da   : > { %6275 = vmatmul.mubr.bf16.vlgmr.msra.gmra.mrb[32].mxu0 %v1337_v63  ;;  %v2254_v63 = vrot.slane %v8025_v61, 2  ;;  %v7438_v61 = vld [vmem:[%s7650_s22 + $0x3a8] sm:$0xff]  }
 0x1db   : > { %6291 = vmatpush3.bf16.msra.mxu1 %v7361_v35  ;;  %6299 = vmatpush3.bf16.msra.mxu0 %v7363_v45  ;;  %v7418_v35 = vld [vmem:[%s7650_s22 + $0x310] sm:$0xff]  }
 0x1dc   : > { %6292 = vmatprep.subr.bf16.mxu1 %v7545_v0  ;;  %6300 = vmatprep.subr.bf16.mxu0 %v7545_v0 }
 0x1dd   : > { %6314 = vmatprep.mubr.msk.bf16.mxu0 %vm7546_vm0, %v7545_v0 }
 0x1df   : > { %6293 = vmatpush3.bf16.msra.mxu1 %v7362_v39  ;;  %6301 = vmatpush3.bf16.msra.mxu0 %v7364_v40  ;;  %v2863_v39 = vrot.slane %v8162_v41, 3  ;;  %v7473_v41 = vld [vmem:[%s7650_s22 + $0x4a8] sm:$0xff]  }
 0x1e0   : > { %6302 = vmatprep.subr.bf16.mxu0 %v7545_v0  ;;  %6318 = vmatprep.subr.bf16.mxu1 %v7545_v0 }
 0x1e2   : > { %6295 = vmatmul.mubr.bf16.vlgmr.msra.gmra.mrb[48].mxu1 %v7963_v47 }
 0x1e3   : > { %6303 = vmatpush3.bf16.msra.mxu0 %v7365_v46  ;;  %6319 = vmatpush3.bf16.msra.mxu1 %v7363_v45  ;;  %v7419_v45 = vld [vmem:[%s7650_s22 + $0x318] sm:$0xff]  }
 0x1e4   : > { %6304 = vmatprep.subr.bf16.mxu0 %v7545_v0  ;;  %6320 = vmatprep.subr.bf16.mxu1 %v7545_v0 }
 0x1e5   : > { %6334 = vmatprep.mubr.msk.bf16.mxu1 %vm7546_vm0, %v7545_v0 }
 0x1e7   : > { %6305 = vmatpush3.bf16.msra.mxu0 %v7366_v49  ;;  %6321 = vmatpush3.bf16.msra.mxu1 %v7364_v40  ;;  %v7420_v40 = vld [vmem:[%s7650_s22 + $0x320] sm:$0xff]  }
 0x1e8   : > { %6306 = vmatprep.subr.bf16.mxu0 %v7545_v0  ;;  %6322 = vmatprep.subr.bf16.mxu1 %v7545_v0 }
 0x1eb   : > { %6307 = vmatpush3.bf16.msra.mxu0 %v7367_v50  ;;  %6323 = vmatpush3.bf16.msra.mxu1 %v7365_v46  ;;  %v7421_v46 = vld [vmem:[%s7650_s22 + $0x328] sm:$0xff]  }
 0x1ec   : > { %6308 = vmatprep.subr.bf16.mxu0 %v7545_v0  ;;  %6324 = vmatprep.subr.bf16.mxu1 %v7545_v0 }
 0x1ef   : > { %6309 = vmatpush3.bf16.msra.mxu0 %v7368_v51  ;;  %6325 = vmatpush3.bf16.msra.mxu1 %v7366_v49  ;;  %v7423_v49 = vld [vmem:[%s7650_s22 + $0x338] sm:$0xff]  }
 0x1f0   : > { %6310 = vmatprep.subr.bf16.mxu0 %v7545_v0  ;;  %6326 = vmatprep.subr.bf16.mxu1 %v7545_v0 }
 0x1f3   : > { %6311 = vmatpush3.bf16.msra.mxu0 %v7369_v52  ;;  %6327 = vmatpush3.bf16.msra.mxu1 %v7367_v50  ;;  %v7424_v50 = vld [vmem:[%s7650_s22 + $0x340] sm:$0xff]  }
 0x1f4   : > { %6312 = vmatprep.subr.bf16.mxu0 %v7545_v0  ;;  %6328 = vmatprep.subr.bf16.mxu1 %v7545_v0 }
 0x1f7   : > { %6313 = vmatpush3.bf16.msra.mxu0 %v7370_v53  ;;  %6329 = vmatpush3.bf16.msra.mxu1 %v7368_v51  ;;  %v7425_v51 = vld [vmem:[%s7650_s22 + $0x348] sm:$0xff]  }
 0x1f8   : > { %6330 = vmatprep.subr.bf16.mxu1 %v7545_v0  ;;  %6338 = vmatprep.subr.bf16.mxu0 %v7545_v0 }
 0x1fa   : > { %6315 = vmatmul.mubr.bf16.vlgmr.msra.gmra.mrb[32].mxu0 %v1292_v42  ;;  %v7375_v42 = vld [vmem:[%s7650_s22 + $0x1d8] sm:$0xff]  }
 0x1fb   : > { %6331 = vmatpush3.bf16.msra.mxu1 %v7369_v52  ;;  %6339 = vmatpush3.bf16.msra.mxu0 %v7371_v54  ;;  %v7426_v52 = vld [vmem:[%s7650_s22 + $0x350] sm:$0xff]  }
 0x1fc   : > { %6332 = vmatprep.subr.bf16.mxu1 %v7545_v0  ;;  %6340 = vmatprep.subr.bf16.mxu0 %v7545_v0 }
 0x1fd   : > { %6354 = vmatprep.mubr.msk.bf16.mxu0 %vm7546_vm0, %v7545_v0 }
 0x1ff   : > { %6333 = vmatpush3.bf16.msra.mxu1 %v7370_v53  ;;  %6341 = vmatpush3.bf16.msra.mxu0 %v7372_v44  ;;  %v8202_v53 = vld [vmem:[#allocation2 + $0x14] sm:$0x3] }
 0x200   : > { %6342 = vmatprep.subr.bf16.mxu0 %v7545_v0  ;;  %6358 = vmatprep.subr.bf16.mxu1 %v7545_v0 }
 0x202   : > { %6335 = vmatmul.mubr.bf16.vlgmr.msra.gmra.mrb[48].mxu1 %v2102_v37 }
 0x203   : > { %6343 = vmatpush3.bf16.msra.mxu0 %v7374_v56  ;;  %6359 = vmatpush3.bf16.msra.mxu1 %v7371_v54  ;;  %v7427_v54 = vld [vmem:[%s7650_s22 + $0x358] sm:$0xff]  }
 0x204   : > { %6344 = vmatprep.subr.bf16.mxu0 %v7545_v0  ;;  %6360 = vmatprep.subr.bf16.mxu1 %v7545_v0 }
 0x205   : > { %6374 = vmatprep.mubr.msk.bf16.mxu1 %vm7546_vm0, %v7545_v0 }
 0x207   : > { %6345 = vmatpush3.bf16.msra.mxu0 %v7375_v42  ;;  %6361 = vmatpush3.bf16.msra.mxu1 %v7372_v44  ;;  %v7428_v44 = vld [vmem:[%s7650_s22 + $0x360] sm:$0xff]  }
 0x208   : > { %6346 = vmatprep.subr.bf16.mxu0 %v7545_v0  ;;  %6362 = vmatprep.subr.bf16.mxu1 %v7545_v0 }
 0x20b   : > { %6347 = vmatpush3.bf16.msra.mxu0 %v7376_v43  ;;  %6363 = vmatpush3.bf16.msra.mxu1 %v7374_v56  ;;  %v7430_v56 = vld [vmem:[%s7650_s22 + $0x370] sm:$0xff]  }
 0x20c   : > { %6348 = vmatprep.subr.bf16.mxu0 %v7545_v0  ;;  %6364 = vmatprep.subr.bf16.mxu1 %v7545_v0 }
 0x20f   : > { %6349 = vmatpush3.bf16.msra.mxu0 %v7377_v48  ;;  %6365 = vmatpush3.bf16.msra.mxu1 %v7375_v42  ;;  %v7432_v42 = vld [vmem:[%s7650_s22 + $0x380] sm:$0xff]  }
 0x210   : > { %6350 = vmatprep.subr.bf16.mxu0 %v7545_v0  ;;  %6366 = vmatprep.subr.bf16.mxu1 %v7545_v0 }
 0x213   : > { %6351 = vmatpush3.bf16.msra.mxu0 %v7378_v57  ;;  %6367 = vmatpush3.bf16.msra.mxu1 %v7376_v43  ;;  %v7433_v43 = vld [vmem:[%s7650_s22 + $0x388] sm:$0xff]  }
 0x214   : > { %6352 = vmatprep.subr.bf16.mxu0 %v7545_v0  ;;  %6368 = vmatprep.subr.bf16.mxu1 %v7545_v0 }
 0x217   : > { %6353 = vmatpush3.bf16.msra.mxu0 %v7379_v58  ;;  %6369 = vmatpush3.bf16.msra.mxu1 %v7377_v48  ;;  %v8230_v48 = vld [vmem:[#allocation2 + $0x14] ss:$0 sps:$4 sm:$0x66]  }
 0x218   : > { %6370 = vmatprep.subr.bf16.mxu1 %v7545_v0  ;;  %6378 = vmatprep.subr.bf16.mxu0 %v7545_v0 }
 0x21a   : > { %6355 = vmatmul.mubr.bf16.vlgmr.msra.gmra.mrb[32].mxu0 %v7864_v12  ;;  %v7393_v12 = vld [vmem:[%s7650_s22 + $0x258] sm:$0xff]  }
 0x21b   : > { %6371 = vmatpush3.bf16.msra.mxu1 %v7378_v57  ;;  %6379 = vmatpush3.bf16.msra.mxu0 %v7380_v59  ;;  %v7435_v57 = vld [vmem:[%s7650_s22 + $0x390] sm:$0xff]  }
 0x21c   : > { %6372 = vmatprep.subr.bf16.mxu1 %v7545_v0  ;;  %6380 = vmatprep.subr.bf16.mxu0 %v7545_v0 }
 0x21d   : > { %6394 = vmatprep.mubr.msk.bf16.mxu0 %vm7546_vm0, %v7545_v0 }
 0x21f   : > { %6373 = vmatpush3.bf16.msra.mxu1 %v7379_v58  ;;  %6381 = vmatpush3.bf16.msra.mxu0 %v7381_v60  ;;  %v3162_v58 = vrot.slane %v8230_v48, 1  ;;  %v7490_v48 = vld [vmem:[%s7650_s22 + $0x528] sm:$0xff]  }
 0x220   : > { %6382 = vmatprep.subr.bf16.mxu0 %v7545_v0  ;;  %6398 = vmatprep.subr.bf16.mxu1 %v7545_v0 }
 0x222   : > { %6375 = vmatmul.mubr.bf16.vlgmr.msra.gmra.mrb[48].mxu1 %v2254_v63 }
 0x223   : > { %6383 = vmatpush3.bf16.msra.mxu0 %v7383_v62  ;;  %6399 = vmatpush3.bf16.msra.mxu1 %v7380_v59  ;;  %v7436_v59 = vld [vmem:[%s7650_s22 + $0x398] sm:$0xff]  }
 0x224   : > { %6384 = vmatprep.subr.bf16.mxu0 %v7545_v0  ;;  %6400 = vmatprep.subr.bf16.mxu1 %v7545_v0 }
 0x225   : > { %6414 = vmatprep.mubr.msk.bf16.mxu1 %vm7546_vm0, %v7545_v0 }
 0x227   : > { %6385 = vmatpush3.bf16.msra.mxu0 %v7384_v1  ;;  %6401 = vmatpush3.bf16.msra.mxu1 %v7381_v60  ;;  %v7437_v60 = vld [vmem:[%s7650_s22 + $0x3a0] sm:$0xff]  }
 0x228   : > { %6386 = vmatprep.subr.bf16.mxu0 %v7545_v0  ;;  %6402 = vmatprep.subr.bf16.mxu1 %v7545_v0 }
 0x22b   : > { %6387 = vmatpush3.bf16.msra.mxu0 %v7385_v2  ;;  %6403 = vmatpush3.bf16.msra.mxu1 %v7383_v62  ;;  %v7439_v62 = vld [vmem:[%s7650_s22 + $0x3b0] sm:$0xff]  }
 0x22c   : > { %6388 = vmatprep.subr.bf16.mxu0 %v7545_v0  ;;  %6404 = vmatprep.subr.bf16.mxu1 %v7545_v0 }
 0x22f   : > { %6389 = vmatpush3.bf16.msra.mxu0 %v7386_v4  ;;  %6405 = vmatpush3.bf16.msra.mxu1 %v7384_v1  ;;  %v7441_v1 = vld [vmem:[%s7650_s22 + $0x3c0] sm:$0xff]  }
 0x230   : > { %6390 = vmatprep.subr.bf16.mxu0 %v7545_v0  ;;  %6406 = vmatprep.subr.bf16.mxu1 %v7545_v0 }
 0x233   : > { %6391 = vmatpush3.bf16.msra.mxu0 %v7387_v5  ;;  %6407 = vmatpush3.bf16.msra.mxu1 %v7385_v2  ;;  %v7442_v2 = vld [vmem:[%s7650_s22 + $0x3c8] sm:$0xff]  }
 0x234   : > { %6392 = vmatprep.subr.bf16.mxu0 %v7545_v0  ;;  %6408 = vmatprep.subr.bf16.mxu1 %v7545_v0 }
 0x237   : > { %6393 = vmatpush3.bf16.msra.mxu0 %v7388_v3  ;;  %6409 = vmatpush3.bf16.msra.mxu1 %v7386_v4  ;;  %v8264_v4 = vld [vmem:[#allocation2 + $0x14] ss:$0 sps:$4 sm:$0xcc]  }
 0x238   : > { %6410 = vmatprep.subr.bf16.mxu1 %v7545_v0  ;;  %6418 = vmatprep.subr.bf16.mxu0 %v7545_v0 }
 0x23a   : > { %6395 = vmatmul.mubr.bf16.vlgmr.msra.gmra.mrb[32].mxu0 %v1650_v24  ;;  %v7404_v24 = vld [vmem:[%s7650_s22 + $0x2b0] sm:$0xff]  }
 0x23b   : > { %6411 = vmatpush3.bf16.msra.mxu1 %v7387_v5  ;;  %6419 = vmatpush3.bf16.msra.mxu0 %v7389_v6  ;;  %v7444_v5 = vld [vmem:[%s7650_s22 + $0x3d0] sm:$0xff]  }
 0x23c   : > { %6412 = vmatprep.subr.bf16.mxu1 %v7545_v0  ;;  %6420 = vmatprep.subr.bf16.mxu0 %v7545_v0 }
 0x23d   : > { %6434 = vmatprep.mubr.msk.bf16.mxu0 %vm7546_vm0, %v7545_v0 }
 0x23f   : > { %6413 = vmatpush3.bf16.msra.mxu1 %v7388_v3  ;;  %6421 = vmatpush3.bf16.msra.mxu0 %v7390_v7  ;;  %v3314_v3 = vrot.slane %v8264_v4, 2  ;;  %v7499_v4 = vld [vmem:[%s7650_s22 + $0x568] sm:$0xff]  }
 0x240   : > { %6422 = vmatprep.subr.bf16.mxu0 %v7545_v0  ;;  %6438 = vmatprep.subr.bf16.mxu1 %v7545_v0 }
 0x242   : > { %6415 = vmatmul.mubr.bf16.vlgmr.msra.gmra.mrb[48].mxu1 %v2409_v11 }
 0x243   : > { %6423 = vmatpush3.bf16.msra.mxu0 %v7392_v10  ;;  %6439 = vmatpush3.bf16.msra.mxu1 %v7389_v6  ;;  %v7445_v6 = vld [vmem:[%s7650_s22 + $0x3d8] sm:$0xff]  }
 0x244   : > { %6424 = vmatprep.subr.bf16.mxu0 %v7545_v0  ;;  %6440 = vmatprep.subr.bf16.mxu1 %v7545_v0 }
 0x245   : > { %6454 = vmatprep.mubr.msk.bf16.mxu1 %vm7546_vm0, %v7545_v0 }
 0x247   : > { %6425 = vmatpush3.bf16.msra.mxu0 %v7393_v12  ;;  %6441 = vmatpush3.bf16.msra.mxu1 %v7390_v7  ;;  %v7446_v7 = vld [vmem:[%s7650_s22 + $0x3e0] sm:$0xff]  }
 0x248   : > { %6426 = vmatprep.subr.bf16.mxu0 %v7545_v0  ;;  %6442 = vmatprep.subr.bf16.mxu1 %v7545_v0 }
 0x24b   : > { %6427 = vmatpush3.bf16.msra.mxu0 %v7394_v9  ;;  %6443 = vmatpush3.bf16.msra.mxu1 %v7392_v10  ;;  %v7448_v10 = vld [vmem:[%s7650_s22 + $0x3f0] sm:$0xff]  }
 0x24c   : > { %6428 = vmatprep.subr.bf16.mxu0 %v7545_v0  ;;  %6444 = vmatprep.subr.bf16.mxu1 %v7545_v0 }
 0x24f   : > { %6429 = vmatpush3.bf16.msra.mxu0 %v7395_v13  ;;  %6445 = vmatpush3.bf16.msra.mxu1 %v7393_v12  ;;  %v7450_v12 = vld [vmem:[%s7650_s22 + $0x400] sm:$0xff]  }
 0x250   : > { %6430 = vmatprep.subr.bf16.mxu0 %v7545_v0  ;;  %6446 = vmatprep.subr.bf16.mxu1 %v7545_v0 }
 0x253   : > { %6431 = vmatpush3.bf16.msra.mxu0 %v7396_v14  ;;  %6447 = vmatpush3.bf16.msra.mxu1 %v7394_v9  ;;  %v7451_v9 = vld [vmem:[%s7650_s22 + $0x408] sm:$0xff]  }
 0x254   : > { %6432 = vmatprep.subr.bf16.mxu0 %v7545_v0  ;;  %6448 = vmatprep.subr.bf16.mxu1 %v7545_v0 }
 0x257   : > { %6433 = vmatpush3.bf16.msra.mxu0 %v7397_v16  ;;  %6449 = vmatpush3.bf16.msra.mxu1 %v7395_v13  ;;  %v7452_v13 = vld [vmem:[%s7650_s22 + $0x410] sm:$0xff]  }
 0x258   : > { %6450 = vmatprep.subr.bf16.mxu1 %v7545_v0  ;;  %6458 = vmatprep.subr.bf16.mxu0 %v7545_v0 }
 0x25a   : > { %6435 = vmatmul.mubr.bf16.vlgmr.msra.gmra.mrb[32].mxu0 %v1803_v31  ;;  %v7414_v31 = vld [vmem:[%s7650_s22 + $0x2f8] sm:$0xff]  }
 0x25b   : > { %6451 = vmatpush3.bf16.msra.mxu1 %v7396_v14  ;;  %6459 = vmatpush3.bf16.msra.mxu0 %v7398_v17  ;;  %v8304_v14 = vld [vmem:[#allocation2 + $0x18] sm:$0x3] }
 0x25c   : > { %6452 = vmatprep.subr.bf16.mxu1 %v7545_v0  ;;  %6460 = vmatprep.subr.bf16.mxu0 %v7545_v0 }
 0x25d   : > { %6474 = vmatprep.mubr.msk.bf16.mxu0 %vm7546_vm0, %v7545_v0 }
 0x25f   : > { %6453 = vmatpush3.bf16.msra.mxu1 %v7397_v16  ;;  %6461 = vmatpush3.bf16.msra.mxu0 %v7399_v15  ;;  %v7453_v16 = vld [vmem:[%s7650_s22 + $0x418] sm:$0xff]  }
 0x260   : > { %6462 = vmatprep.subr.bf16.mxu0 %v7545_v0  ;;  %6478 = vmatprep.subr.bf16.mxu1 %v7545_v0 }
 0x262   : > { %6455 = vmatmul.mubr.bf16.vlgmr.msra.gmra.mrb[48].mxu1 %v8100_v19 }
 0x263   : > { %6463 = vmatpush3.bf16.msra.mxu0 %v7400_v18  ;;  %6479 = vmatpush3.bf16.msra.mxu1 %v7398_v17  ;;  %v7454_v17 = vld [vmem:[%s7650_s22 + $0x420] sm:$0xff]  }
 0x264   : > { %6464 = vmatprep.subr.bf16.mxu0 %v7545_v0  ;;  %6480 = vmatprep.subr.bf16.mxu1 %v7545_v0 }
 0x265   : > { %6494 = vmatprep.mubr.msk.bf16.mxu1 %vm7546_vm0, %v7545_v0 }
 0x267   : > { %6465 = vmatpush3.bf16.msra.mxu0 %v7401_v20  ;;  %6481 = vmatpush3.bf16.msra.mxu1 %v7399_v15  ;;  %v7455_v15 = vld [vmem:[%s7650_s22 + $0x428] sm:$0xff]  }
 0x268   : > { %6466 = vmatprep.subr.bf16.mxu0 %v7545_v0  ;;  %6482 = vmatprep.subr.bf16.mxu1 %v7545_v0 }
 0x26b   : > { %6467 = vmatpush3.bf16.msra.mxu0 %v7402_v22  ;;  %6483 = vmatpush3.bf16.msra.mxu1 %v7400_v18  ;;  %v7456_v18 = vld [vmem:[%s7650_s22 + $0x430] sm:$0xff]  }
 0x26c   : > { %6468 = vmatprep.subr.bf16.mxu0 %v7545_v0  ;;  %6484 = vmatprep.subr.bf16.mxu1 %v7545_v0 }
 0x26f   : > { %6469 = vmatpush3.bf16.msra.mxu0 %v7403_v23  ;;  %6485 = vmatpush3.bf16.msra.mxu1 %v7401_v20  ;;  %v7458_v20 = vld [vmem:[%s7650_s22 + $0x440] sm:$0xff]  }
 0x270   : > { %6470 = vmatprep.subr.bf16.mxu0 %v7545_v0  ;;  %6486 = vmatprep.subr.bf16.mxu1 %v7545_v0 }
 0x273   : > { %6471 = vmatpush3.bf16.msra.mxu0 %v7404_v24  ;;  %6487 = vmatpush3.bf16.msra.mxu1 %v7402_v22  ;;  %v7459_v22 = vld [vmem:[%s7650_s22 + $0x448] sm:$0xff]  }
 0x274   : > { %6472 = vmatprep.subr.bf16.mxu0 %v7545_v0  ;;  %6488 = vmatprep.subr.bf16.mxu1 %v7545_v0 }
 0x277   : > { %6473 = vmatpush3.bf16.msra.mxu0 %v7405_v25  ;;  %6489 = vmatpush3.bf16.msra.mxu1 %v7403_v23  ;;  %v8332_v23 = vld [vmem:[#allocation2 + $0x18] ss:$0 sps:$4 sm:$0x66]  }
 0x278   : > { %6490 = vmatprep.subr.bf16.mxu1 %v7545_v0  ;;  %6498 = vmatprep.subr.bf16.mxu0 %v7545_v0 }
 0x27a   : > { %6475 = vmatmul.mubr.bf16.vlgmr.msra.gmra.mrb[32].mxu0 %v7963_v47  ;;  %v7422_v47 = vld [vmem:[%s7650_s22 + $0x330] sm:$0xff]  }
 0x27b   : > { %6491 = vmatpush3.bf16.msra.mxu1 %v7404_v24  ;;  %6499 = vmatpush3.bf16.msra.mxu0 %v7406_v21  ;;  %v7461_v24 = vld [vmem:[%s7650_s22 + $0x450] sm:$0xff]  }
 0x27c   : > { %6492 = vmatprep.subr.bf16.mxu1 %v7545_v0  ;;  %6500 = vmatprep.subr.bf16.mxu0 %v7545_v0 }
 0x27d   : > { %6514 = vmatprep.mubr.msk.bf16.mxu0 %vm7546_vm0, %v7545_v0 }
 0x27f   : > { %6493 = vmatpush3.bf16.msra.mxu1 %v7405_v25  ;;  %6501 = vmatpush3.bf16.msra.mxu0 %v7407_v26  ;;  %v3613_v25 = vrot.slane %v8332_v23, 1  ;;  %v7516_v23 = vld [vmem:[%s7650_s22 + $0x5e8] sm:$0xff]  }
 0x280   : > { %6502 = vmatprep.subr.bf16.mxu0 %v7545_v0  ;;  %6518 = vmatprep.subr.bf16.mxu1 %v7545_v0 }
 0x282   : > { %6495 = vmatmul.mubr.bf16.vlgmr.msra.gmra.mrb[48].mxu1 %v2708_v29 }
 0x283   : > { %6503 = vmatpush3.bf16.msra.mxu0 %v7409_v27  ;;  %6519 = vmatpush3.bf16.msra.mxu1 %v7406_v21  ;;  %v7462_v21 = vld [vmem:[%s7650_s22 + $0x458] sm:$0xff]  }
 0x284   : > { %6504 = vmatprep.subr.bf16.mxu0 %v7545_v0  ;;  %6520 = vmatprep.subr.bf16.mxu1 %v7545_v0 }
 0x285   : > { %6534 = vmatprep.mubr.msk.bf16.mxu1 %vm7546_vm0, %v7545_v0 }
 0x287   : > { %6505 = vmatpush3.bf16.msra.mxu0 %v7410_v30  ;;  %6521 = vmatpush3.bf16.msra.mxu1 %v7407_v26  ;;  %v7463_v26 = vld [vmem:[%s7650_s22 + $0x460] sm:$0xff]  }
 0x288   : > { %6506 = vmatprep.subr.bf16.mxu0 %v7545_v0  ;;  %6522 = vmatprep.subr.bf16.mxu1 %v7545_v0 }
 0x28b   : > { %6507 = vmatpush3.bf16.msra.mxu0 %v7411_v32  ;;  %6523 = vmatpush3.bf16.msra.mxu1 %v7409_v27  ;;  %v7465_v27 = vld [vmem:[%s7650_s22 + $0x470] sm:$0xff]  }
 0x28c   : > { %6508 = vmatprep.subr.bf16.mxu0 %v7545_v0  ;;  %6524 = vmatprep.subr.bf16.mxu1 %v7545_v0 }
 0x28f   : > { %6509 = vmatpush3.bf16.msra.mxu0 %v7412_v33  ;;  %6525 = vmatpush3.bf16.msra.mxu1 %v7410_v30  ;;  %v7467_v30 = vld [vmem:[%s7650_s22 + $0x480] sm:$0xff]  }
 0x290   : > { %6510 = vmatprep.subr.bf16.mxu0 %v7545_v0  ;;  %6526 = vmatprep.subr.bf16.mxu1 %v7545_v0 }
 0x293   : > { %6511 = vmatpush3.bf16.msra.mxu0 %v7413_v36  ;;  %6527 = vmatpush3.bf16.msra.mxu1 %v7411_v32  ;;  %v7468_v32 = vld [vmem:[%s7650_s22 + $0x488] sm:$0xff]  }
 0x294   : > { %6512 = vmatprep.subr.bf16.mxu0 %v7545_v0  ;;  %6528 = vmatprep.subr.bf16.mxu1 %v7545_v0 }
 0x297   : > { %6513 = vmatpush3.bf16.msra.mxu0 %v7414_v31  ;;  %6529 = vmatpush3.bf16.msra.mxu1 %v7412_v33  ;;  %v8366_v33 = vld [vmem:[#allocation2 + $0x18] ss:$0 sps:$4 sm:$0xcc]  }
 0x298   : > { %6530 = vmatprep.subr.bf16.mxu1 %v7545_v0  ;;  %6538 = vmatprep.subr.bf16.mxu0 %v7545_v0 }
 0x29a   : > { %6515 = vmatmul.mubr.bf16.vlgmr.msra.gmra.mrb[32].mxu0 %v2102_v37  ;;  %v7431_v37 = vld [vmem:[%s7650_s22 + $0x378] sm:$0xff]  }
 0x29b   : > { %6531 = vmatpush3.bf16.msra.mxu1 %v7413_v36  ;;  %6539 = vmatpush3.bf16.msra.mxu0 %v7415_v34  ;;  %v7470_v36 = vld [vmem:[%s7650_s22 + $0x490] sm:$0xff]  }
 0x29c   : > { %6532 = vmatprep.subr.bf16.mxu1 %v7545_v0  ;;  %6540 = vmatprep.subr.bf16.mxu0 %v7545_v0 }
 0x29d   : > { %6554 = vmatprep.mubr.msk.bf16.mxu0 %vm7546_vm0, %v7545_v0 }
 0x29f   : > { %6533 = vmatpush3.bf16.msra.mxu1 %v7414_v31  ;;  %6541 = vmatpush3.bf16.msra.mxu0 %v7416_v38  ;;  %v3765_v31 = vrot.slane %v8366_v33, 2  ;;  %v7525_v33 = vld [vmem:[%s7650_s22 + $0x628] sm:$0xff]  }
 0x2a0   : > { %6542 = vmatprep.subr.bf16.mxu0 %v7545_v0  ;;  %6558 = vmatprep.subr.bf16.mxu1 %v7545_v0 }
 0x2a2   : > { %6535 = vmatmul.mubr.bf16.vlgmr.msra.gmra.mrb[48].mxu1 %v2863_v39 }
 0x2a3   : > { %6543 = vmatpush3.bf16.msra.mxu0 %v7418_v35  ;;  %6559 = vmatpush3.bf16.msra.mxu1 %v7415_v34  ;;  %v7471_v34 = vld [vmem:[%s7650_s22 + $0x498] sm:$0xff]  }
 0x2a4   : > { %6544 = vmatprep.subr.bf16.mxu0 %v7545_v0  ;;  %6560 = vmatprep.subr.bf16.mxu1 %v7545_v0 }
 0x2a5   : > { %6574 = vmatprep.mubr.msk.bf16.mxu1 %vm7546_vm0, %v7545_v0 }
 0x2a7   : > { %6545 = vmatpush3.bf16.msra.mxu0 %v7419_v45  ;;  %6561 = vmatpush3.bf16.msra.mxu1 %v7416_v38  ;;  %v7472_v38 = vld [vmem:[%s7650_s22 + $0x4a0] sm:$0xff]  }
 0x2a8   : > { %6546 = vmatprep.subr.bf16.mxu0 %v7545_v0  ;;  %6562 = vmatprep.subr.bf16.mxu1 %v7545_v0 }
 0x2ab   : > { %6547 = vmatpush3.bf16.msra.mxu0 %v7420_v40  ;;  %6563 = vmatpush3.bf16.msra.mxu1 %v7418_v35  ;;  %v7474_v35 = vld [vmem:[%s7650_s22 + $0x4b0] sm:$0xff]  }
 0x2ac   : > { %6548 = vmatprep.subr.bf16.mxu0 %v7545_v0  ;;  %6564 = vmatprep.subr.bf16.mxu1 %v7545_v0 }
 0x2af   : > { %6549 = vmatpush3.bf16.msra.mxu0 %v7421_v46  ;;  %6565 = vmatpush3.bf16.msra.mxu1 %v7419_v45  ;;  %v7476_v45 = vld [vmem:[%s7650_s22 + $0x4c0] sm:$0xff]  }
 0x2b0   : > { %6550 = vmatprep.subr.bf16.mxu0 %v7545_v0  ;;  %6566 = vmatprep.subr.bf16.mxu1 %v7545_v0 }
 0x2b3   : > { %6551 = vmatpush3.bf16.msra.mxu0 %v7422_v47  ;;  %6567 = vmatpush3.bf16.msra.mxu1 %v7420_v40  ;;  %v7477_v40 = vld [vmem:[%s7650_s22 + $0x4c8] sm:$0xff]  }
 0x2b4   : > { %6552 = vmatprep.subr.bf16.mxu0 %v7545_v0  ;;  %6568 = vmatprep.subr.bf16.mxu1 %v7545_v0 }
 0x2b7   : > { %6553 = vmatpush3.bf16.msra.mxu0 %v7423_v49  ;;  %6569 = vmatpush3.bf16.msra.mxu1 %v7421_v46  ;;  %v8401_v46 = vld [vmem:[#allocation2 + $0x18] sm:$0x18]  }
 0x2b8   : > { %6570 = vmatprep.subr.bf16.mxu1 %v7545_v0  ;;  %6578 = vmatprep.subr.bf16.mxu0 %v7545_v0 }
 0x2ba   : > { %6555 = vmatmul.mubr.bf16.vlgmr.msra.gmra.mrb[32].mxu0 %v2254_v63  ;;  %v7440_v63 = vld [vmem:[%s7650_s22 + $0x3b8] sm:$0xff]  }
 0x2bb   : > { %6571 = vmatpush3.bf16.msra.mxu1 %v7422_v47  ;;  %6579 = vmatpush3.bf16.msra.mxu0 %v7424_v50  ;;  %v7479_v47 = vld [vmem:[%s7650_s22 + $0x4d0] sm:$0xff]  }
 0x2bc   : > { %6572 = vmatprep.subr.bf16.mxu1 %v7545_v0  ;;  %6580 = vmatprep.subr.bf16.mxu0 %v7545_v0 }
 0x2bd   : > { %6594 = vmatprep.mubr.msk.bf16.mxu0 %vm7546_vm0, %v7545_v0 }
 0x2bf   : > { %6573 = vmatpush3.bf16.msra.mxu1 %v7423_v49  ;;  %6581 = vmatpush3.bf16.msra.mxu0 %v7425_v51  ;;  %v3920_v49 = vrot.slane %v8401_v46, 3  ;;  %v7534_v46 = vld [vmem:[%s8478_s13 + $0x28] sm:$0xff]  }
 0x2c0   : > { %6582 = vmatprep.subr.bf16.mxu0 %v7545_v0  ;;  %6598 = vmatprep.subr.bf16.mxu1 %v7545_v0 }
 0x2c2   : > { %6575 = vmatmul.mubr.bf16.vlgmr.msra.gmra.mrb[48].mxu1 %v8202_v53 }
 0x2c3   : > { %6583 = vmatpush3.bf16.msra.mxu0 %v7426_v52  ;;  %6599 = vmatpush3.bf16.msra.mxu1 %v7424_v50  ;;  %v7480_v50 = vld [vmem:[%s7650_s22 + $0x4d8] sm:$0xff]  }
 0x2c4   : > { %6584 = vmatprep.subr.bf16.mxu0 %v7545_v0  ;;  %6600 = vmatprep.subr.bf16.mxu1 %v7545_v0 }
 0x2c5   : > { %6614 = vmatprep.mubr.msk.bf16.mxu1 %vm7546_vm0, %v7545_v0 }
 0x2c7   : > { %6585 = vmatpush3.bf16.msra.mxu0 %v7427_v54  ;;  %6601 = vmatpush3.bf16.msra.mxu1 %v7425_v51  ;;  %v7481_v51 = vld [vmem:[%s7650_s22 + $0x4e0] sm:$0xff]  }
 0x2c8   : > { %6586 = vmatprep.subr.bf16.mxu0 %v7545_v0  ;;  %6602 = vmatprep.subr.bf16.mxu1 %v7545_v0 }
 0x2cb   : > { %6587 = vmatpush3.bf16.msra.mxu0 %v7428_v44  ;;  %6603 = vmatpush3.bf16.msra.mxu1 %v7426_v52  ;;  %v7482_v52 = vld [vmem:[%s7650_s22 + $0x4e8] sm:$0xff]  }
 0x2cc   : > { %6588 = vmatprep.subr.bf16.mxu0 %v7545_v0  ;;  %6604 = vmatprep.subr.bf16.mxu1 %v7545_v0 }
 0x2cf   : > { %6589 = vmatpush3.bf16.msra.mxu0 %v7429_v55  ;;  %6605 = vmatpush3.bf16.msra.mxu1 %v7427_v54  ;;  %v7484_v54 = vld [vmem:[%s7650_s22 + $0x4f8] sm:$0xff]  }
 0x2d0   : > { %6590 = vmatprep.subr.bf16.mxu0 %v7545_v0  ;;  %6606 = vmatprep.subr.bf16.mxu1 %v7545_v0 }
 0x2d3   : > { %6591 = vmatpush3.bf16.msra.mxu0 %v7430_v56  ;;  %6607 = vmatpush3.bf16.msra.mxu1 %v7428_v44  ;;  %v7485_v44 = vld [vmem:[%s7650_s22 + $0x500] sm:$0xff]  }
 0x2d4   : > { %6592 = vmatprep.subr.bf16.mxu0 %v7545_v0  ;;  %6608 = vmatprep.subr.bf16.mxu1 %v7545_v0 }
 0x2d7   : > { %6593 = vmatpush3.bf16.msra.mxu0 %v7431_v37  ;;  %6609 = vmatpush3.bf16.msra.mxu1 %v7429_v55  ;;  %v7486_v55 = vld [vmem:[%s7650_s22 + $0x508] sm:$0xff]  }
 0x2d8   : > { %6610 = vmatprep.subr.bf16.mxu1 %v7545_v0  ;;  %6618 = vmatprep.subr.bf16.mxu0 %v7545_v0 }
 0x2da   : > { %6595 = vmatmul.mubr.bf16.vlgmr.msra.gmra.mrb[32].mxu0 %v2409_v11  ;;  %v7449_v11 = vld [vmem:[%s7650_s22 + $0x3f8] sm:$0xff]  }
 0x2db   : > { %6611 = vmatpush3.bf16.msra.mxu1 %v7430_v56  ;;  %6619 = vmatpush3.bf16.msra.mxu0 %v7432_v42  ;;  %v7487_v56 = vld [vmem:[%s7650_s22 + $0x510] sm:$0xff]  }
 0x2dc   : > { %6612 = vmatprep.subr.bf16.mxu1 %v7545_v0  ;;  %6620 = vmatprep.subr.bf16.mxu0 %v7545_v0 }
 0x2dd   : > { %6634 = vmatprep.mubr.msk.bf16.mxu0 %vm7546_vm0, %v7545_v0 }
 0x2df   : > { %6613 = vmatpush3.bf16.msra.mxu1 %v7431_v37  ;;  %6621 = vmatpush3.bf16.msra.mxu0 %v7433_v43  ;;  %v8441_v37 = vld [vmem:[#allocation2 + $0x1c] sm:$0x3] }
 0x2e0   : > { %6622 = vmatprep.subr.bf16.mxu0 %v7545_v0  ;;  %6638 = vmatprep.subr.bf16.mxu1 %v7545_v0 }
 0x2e2   : > { %6615 = vmatmul.mubr.bf16.vlgmr.msra.gmra.mrb[48].mxu1 %v3162_v58 }
 0x2e3   : > { %6623 = vmatpush3.bf16.msra.mxu0 %v7435_v57  ;;  %6639 = vmatpush3.bf16.msra.mxu1 %v7432_v42  ;;  %v7488_v42 = vld [vmem:[%s7650_s22 + $0x518] sm:$0xff]  }
 0x2e4   : > { %6624 = vmatprep.subr.bf16.mxu0 %v7545_v0  ;;  %6640 = vmatprep.subr.bf16.mxu1 %v7545_v0 }
 0x2e5   : > { %6654 = vmatprep.mubr.msk.bf16.mxu1 %vm7546_vm0, %v7545_v0 }
 0x2e7   : > { %6625 = vmatpush3.bf16.msra.mxu0 %v7436_v59  ;;  %6641 = vmatpush3.bf16.msra.mxu1 %v7433_v43  ;;  %v7489_v43 = vld [vmem:[%s7650_s22 + $0x520] sm:$0xff]  }
 0x2e8   : > { %6626 = vmatprep.subr.bf16.mxu0 %v7545_v0  ;;  %6642 = vmatprep.subr.bf16.mxu1 %v7545_v0 }
 0x2eb   : > { %6627 = vmatpush3.bf16.msra.mxu0 %v7437_v60  ;;  %6643 = vmatpush3.bf16.msra.mxu1 %v7435_v57  ;;  %v7491_v57 = vld [vmem:[%s7650_s22 + $0x530] sm:$0xff]  }
 0x2ec   : > { %6628 = vmatprep.subr.bf16.mxu0 %v7545_v0  ;;  %6644 = vmatprep.subr.bf16.mxu1 %v7545_v0 }
 0x2ef   : > { %6629 = vmatpush3.bf16.msra.mxu0 %v7438_v61  ;;  %6645 = vmatpush3.bf16.msra.mxu1 %v7436_v59  ;;  %v7493_v59 = vld [vmem:[%s7650_s22 + $0x540] sm:$0xff]  }
 0x2f0   : > { %6630 = vmatprep.subr.bf16.mxu0 %v7545_v0  ;;  %6646 = vmatprep.subr.bf16.mxu1 %v7545_v0 }
 0x2f3   : > { %6631 = vmatpush3.bf16.msra.mxu0 %v7439_v62  ;;  %6647 = vmatpush3.bf16.msra.mxu1 %v7437_v60  ;;  %v7494_v60 = vld [vmem:[%s7650_s22 + $0x548] sm:$0xff]  }
 0x2f4   : > { %6632 = vmatprep.subr.bf16.mxu0 %v7545_v0  ;;  %6648 = vmatprep.subr.bf16.mxu1 %v7545_v0 }
 0x2f7   : > { %6633 = vmatpush3.bf16.msra.mxu0 %v7440_v63  ;;  %6649 = vmatpush3.bf16.msra.mxu1 %v7438_v61  ;;  %v7495_v61 = vld [vmem:[#allocation2 + $0x1c] ss:$0 sps:$4 sm:$0xcc]  }
 0x2f8   : > { %6650 = vmatprep.subr.bf16.mxu1 %v7545_v0  ;;  %6658 = vmatprep.subr.bf16.mxu0 %v7545_v0 }
 0x2fa   : > { %6635 = vmatmul.mubr.bf16.vlgmr.msra.gmra.mrb[32].mxu0 %v8100_v19  ;;  %v7457_v19 = vld [vmem:[%s7650_s22 + $0x438] sm:$0xff]  }
 0x2fb   : > { %6651 = vmatpush3.bf16.msra.mxu1 %v7439_v62  ;;  %6659 = vmatpush3.bf16.msra.mxu0 %v7441_v1  ;;  %v7496_v62 = vld [vmem:[%s7650_s22 + $0x550] sm:$0xff]  }
 0x2fc   : > { %6652 = vmatprep.subr.bf16.mxu1 %v7545_v0  ;;  %6660 = vmatprep.subr.bf16.mxu0 %v7545_v0 }
 0x2fd   : > { %6674 = vmatprep.mubr.msk.bf16.mxu0 %vm7546_vm0, %v7545_v0 }
 0x2ff   : > { %6653 = vmatpush3.bf16.msra.mxu1 %v7440_v63  ;;  %6661 = vmatpush3.bf16.msra.mxu0 %v7442_v2  ;;  %v4219_v63 = vrot.slane %v7495_v61, 2 }
 0x300   : > { %6662 = vmatprep.subr.bf16.mxu0 %v7545_v0  ;;  %6678 = vmatprep.subr.bf16.mxu1 %v7545_v0 }
 0x302   : > { %6655 = vmatmul.mubr.bf16.vlgmr.msra.gmra.mrb[48].mxu1 %v3314_v3 }
 0x303   : > { %6663 = vmatpush3.bf16.msra.mxu0 %v7444_v5  ;;  %6679 = vmatpush3.bf16.msra.mxu1 %v7441_v1  ;;  %v7497_v1 = vld [vmem:[%s7650_s22 + $0x558] sm:$0xff]  }
 0x304   : > { %6664 = vmatprep.subr.bf16.mxu0 %v7545_v0  ;;  %6680 = vmatprep.subr.bf16.mxu1 %v7545_v0 }
 0x305   : > { %6694 = vmatprep.mubr.msk.bf16.mxu1 %vm7546_vm0, %v7545_v0 }
 0x307   : > { %6665 = vmatpush3.bf16.msra.mxu0 %v7445_v6  ;;  %6681 = vmatpush3.bf16.msra.mxu1 %v7442_v2  ;;  %v7498_v2 = vld [vmem:[%s7650_s22 + $0x560] sm:$0xff]  }
 0x308   : > { %6666 = vmatprep.subr.bf16.mxu0 %v7545_v0  ;;  %6682 = vmatprep.subr.bf16.mxu1 %v7545_v0 }
 0x30b   : > { %6667 = vmatpush3.bf16.msra.mxu0 %v7446_v7  ;;  %6683 = vmatpush3.bf16.msra.mxu1 %v7444_v5  ;;  %v7500_v5 = vld [vmem:[%s7650_s22 + $0x570] sm:$0xff]  }
 0x30c   : > { %6668 = vmatprep.subr.bf16.mxu0 %v7545_v0  ;;  %6684 = vmatprep.subr.bf16.mxu1 %v7545_v0 }
 0x30f   : > { %6669 = vmatpush3.bf16.msra.mxu0 %v7447_v8  ;;  %6685 = vmatpush3.bf16.msra.mxu1 %v7445_v6  ;;  %v7502_v6 = vld [vmem:[%s7650_s22 + $0x580] sm:$0xff]  }
 0x310   : > { %6670 = vmatprep.subr.bf16.mxu0 %v7545_v0  ;;  %6686 = vmatprep.subr.bf16.mxu1 %v7545_v0 }
 0x313   : > { %6671 = vmatpush3.bf16.msra.mxu0 %v7448_v10  ;;  %6687 = vmatpush3.bf16.msra.mxu1 %v7446_v7  ;;  %v7503_v7 = vld [vmem:[%s7650_s22 + $0x588] sm:$0xff]  }
 0x314   : > { %6672 = vmatprep.subr.bf16.mxu0 %v7545_v0  ;;  %6688 = vmatprep.subr.bf16.mxu1 %v7545_v0 }
 0x317   : > { %6673 = vmatpush3.bf16.msra.mxu0 %v7449_v11  ;;  %6689 = vmatpush3.bf16.msra.mxu1 %v7447_v8  ;;  %v7504_v8 = vld [vmem:[#allocation2 + $0x1c] sm:$0x18]  }
 0x318   : > { %6690 = vmatprep.subr.bf16.mxu1 %v7545_v0  ;;  %6698 = vmatprep.subr.bf16.mxu0 %v7545_v0 }
 0x31a   : > { %6675 = vmatmul.mubr.bf16.vlgmr.msra.gmra.mrb[32].mxu0 %v2708_v29  ;;  %v7466_v29 = vld [vmem:[%s7650_s22 + $0x478] sm:$0xff]  }
 0x31b   : > { %6691 = vmatpush3.bf16.msra.mxu1 %v7448_v10  ;;  %6699 = vmatpush3.bf16.msra.mxu0 %v7450_v12  ;;  %v7505_v10 = vld [vmem:[%s7650_s22 + $0x590] sm:$0xff]  }
 0x31c   : > { %6692 = vmatprep.subr.bf16.mxu1 %v7545_v0  ;;  %6700 = vmatprep.subr.bf16.mxu0 %v7545_v0 }
 0x31d   : > { %6714 = vmatprep.mubr.msk.bf16.mxu0 %vm7546_vm0, %v7545_v0 }
 0x31f   : > { %6693 = vmatpush3.bf16.msra.mxu1 %v7449_v11  ;;  %6701 = vmatpush3.bf16.msra.mxu0 %v7451_v9  ;;  %v4374_v11 = vrot.slane %v7504_v8, 3 }
 0x320   : > { %6702 = vmatprep.subr.bf16.mxu0 %v7545_v0  ;;  %6718 = vmatprep.subr.bf16.mxu1 %v7545_v0 }
 0x322   : > { %6695 = vmatmul.mubr.bf16.vlgmr.msra.gmra.mrb[48].mxu1 %v8304_v14 }
 0x323   : > { %6703 = vmatpush3.bf16.msra.mxu0 %v7452_v13  ;;  %6719 = vmatpush3.bf16.msra.mxu1 %v7450_v12  ;;  %v7506_v12 = vld [vmem:[%s7650_s22 + $0x598] sm:$0xff]  }
 0x324   : > { %6704 = vmatprep.subr.bf16.mxu0 %v7545_v0  ;;  %6720 = vmatprep.subr.bf16.mxu1 %v7545_v0 }
 0x325   : > { %6734 = vmatprep.mubr.msk.bf16.mxu1 %vm7546_vm0, %v7545_v0 }
 0x327   : > { %6705 = vmatpush3.bf16.msra.mxu0 %v7453_v16  ;;  %6721 = vmatpush3.bf16.msra.mxu1 %v7451_v9  ;;  %v7507_v9 = vld [vmem:[%s7650_s22 + $0x5a0] sm:$0xff]  }
 0x328   : > { %6706 = vmatprep.subr.bf16.mxu0 %v7545_v0  ;;  %6722 = vmatprep.subr.bf16.mxu1 %v7545_v0 }
 0x32b   : > { %6707 = vmatpush3.bf16.msra.mxu0 %v7454_v17  ;;  %6723 = vmatpush3.bf16.msra.mxu1 %v7452_v13  ;;  %v7508_v13 = vld [vmem:[%s7650_s22 + $0x5a8] sm:$0xff]  }
 0x32c   : > { %6708 = vmatprep.subr.bf16.mxu0 %v7545_v0  ;;  %6724 = vmatprep.subr.bf16.mxu1 %v7545_v0 }
 0x32f   : > { %6709 = vmatpush3.bf16.msra.mxu0 %v7455_v15  ;;  %6725 = vmatpush3.bf16.msra.mxu1 %v7453_v16  ;;  %v7510_v16 = vld [vmem:[%s7650_s22 + $0x5b8] sm:$0xff]  }
 0x330   : > { %6710 = vmatprep.subr.bf16.mxu0 %v7545_v0  ;;  %6726 = vmatprep.subr.bf16.mxu1 %v7545_v0 }
 0x333   : > { %6711 = vmatpush3.bf16.msra.mxu0 %v7456_v18  ;;  %6727 = vmatpush3.bf16.msra.mxu1 %v7454_v17  ;;  %v7511_v17 = vld [vmem:[%s7650_s22 + $0x5c0] sm:$0xff]  }
 0x334   : > { %6712 = vmatprep.subr.bf16.mxu0 %v7545_v0  ;;  %6728 = vmatprep.subr.bf16.mxu1 %v7545_v0 }
 0x337   : > { %6713 = vmatpush3.bf16.msra.mxu0 %v7457_v19  ;;  %6729 = vmatpush3.bf16.msra.mxu1 %v7455_v15  ;;  %v7512_v15 = vld [vmem:[%s7650_s22 + $0x5c8] sm:$0xff]  }
 0x338   : > { %6730 = vmatprep.subr.bf16.mxu1 %v7545_v0  ;;  %6738 = vmatprep.subr.bf16.mxu0 %v7545_v0 }
 0x33a   : > { %6715 = vmatmul.mubr.bf16.vlgmr.msra.gmra.mrb[32].mxu0 %v2863_v39  ;;  %v7475_v39 = vld [vmem:[%s7650_s22 + $0x4b8] sm:$0xff]  }
 0x33b   : > { %6731 = vmatpush3.bf16.msra.mxu1 %v7456_v18  ;;  %6739 = vmatpush3.bf16.msra.mxu0 %v7458_v20  ;;  %v7513_v18 = vld [vmem:[%s7650_s22 + $0x5d0] sm:$0xff]  }
 0x33c   : > { %6732 = vmatprep.subr.bf16.mxu1 %v7545_v0  ;;  %6740 = vmatprep.subr.bf16.mxu0 %v7545_v0 }
 0x33d   : > { %6754 = vmatprep.mubr.msk.bf16.mxu0 %vm7546_vm0, %v7545_v0 }
 0x33f   : > { %6733 = vmatpush3.bf16.msra.mxu1 %v7457_v19  ;;  %6741 = vmatpush3.bf16.msra.mxu0 %v7459_v22  ;;  %v4433_v19 = vld [vmem:[#allocation2 + $0x20] sm:$0x3] }
 0x340   : > { %6742 = vmatprep.subr.bf16.mxu0 %v7545_v0  ;;  %6758 = vmatprep.subr.bf16.mxu1 %v7545_v0 }
 0x342   : > { %6735 = vmatmul.mubr.bf16.vlgmr.msra.gmra.mrb[48].mxu1 %v3613_v25 }
 0x343   : > { %6743 = vmatpush3.bf16.msra.mxu0 %v7461_v24  ;;  %6759 = vmatpush3.bf16.msra.mxu1 %v7458_v20  ;;  %v7514_v20 = vld [vmem:[%s7650_s22 + $0x5d8] sm:$0xff]  }
 0x344   : > { %6744 = vmatprep.subr.bf16.mxu0 %v7545_v0  ;;  %6760 = vmatprep.subr.bf16.mxu1 %v7545_v0 }
 0x345   : > { %6774 = vmatprep.mubr.msk.bf16.mxu1 %vm7546_vm0, %v7545_v0 }
 0x347   : > { %6745 = vmatpush3.bf16.msra.mxu0 %v7462_v21  ;;  %6761 = vmatpush3.bf16.msra.mxu1 %v7459_v22  ;;  %v7515_v22 = vld [vmem:[%s7650_s22 + $0x5e0] sm:$0xff]  }
 0x348   : > { %6746 = vmatprep.subr.bf16.mxu0 %v7545_v0  ;;  %6762 = vmatprep.subr.bf16.mxu1 %v7545_v0 }
 0x34b   : > { %6747 = vmatpush3.bf16.msra.mxu0 %v7463_v26  ;;  %6763 = vmatpush3.bf16.msra.mxu1 %v7461_v24  ;;  %v7517_v24 = vld [vmem:[%s7650_s22 + $0x5f0] sm:$0xff]  }
 0x34c   : > { %6748 = vmatprep.subr.bf16.mxu0 %v7545_v0  ;;  %6764 = vmatprep.subr.bf16.mxu1 %v7545_v0 }
 0x34f   : > { %6749 = vmatpush3.bf16.msra.mxu0 %v7464_v28  ;;  %6765 = vmatpush3.bf16.msra.mxu1 %v7462_v21  ;;  %v7519_v21 = vld [vmem:[%s7650_s22 + $0x600] sm:$0xff]  }
 0x350   : > { %6750 = vmatprep.subr.bf16.mxu0 %v7545_v0  ;;  %6766 = vmatprep.subr.bf16.mxu1 %v7545_v0 }
 0x353   : > { %6751 = vmatpush3.bf16.msra.mxu0 %v7465_v27  ;;  %6767 = vmatpush3.bf16.msra.mxu1 %v7463_v26  ;;  %v7520_v26 = vld [vmem:[%s7650_s22 + $0x608] sm:$0xff]  }
 0x354   : > { %6752 = vmatprep.subr.bf16.mxu0 %v7545_v0  ;;  %6768 = vmatprep.subr.bf16.mxu1 %v7545_v0 }
 0x357   : > { %6753 = vmatpush3.bf16.msra.mxu0 %v7466_v29  ;;  %6769 = vmatpush3.bf16.msra.mxu1 %v7464_v28  ;;  %v7521_v28 = vld [vmem:[#allocation2 + $0x20] ss:$0 sps:$4 sm:$0x66]  }
 0x358   : > { %6770 = vmatprep.subr.bf16.mxu1 %v7545_v0  ;;  %6778 = vmatprep.subr.bf16.mxu0 %v7545_v0 }
 0x35a   : > { %6755 = vmatmul.mubr.bf16.vlgmr.msra.gmra.mrb[32].mxu0 %v8202_v53  ;;  %v7483_v53 = vld [vmem:[%s7650_s22 + $0x4f0] sm:$0xff]  }
 0x35b   : > { %6771 = vmatpush3.bf16.msra.mxu1 %v7465_v27  ;;  %6779 = vmatpush3.bf16.msra.mxu0 %v7467_v30  ;;  %v7522_v27 = vld [vmem:[%s7650_s22 + $0x610] sm:$0xff]  }
 0x35c   : > { %6772 = vmatprep.subr.bf16.mxu1 %v7545_v0  ;;  %6780 = vmatprep.subr.bf16.mxu0 %v7545_v0 }
 0x35d   : > { %6794 = vmatprep.mubr.msk.bf16.mxu0 %vm7546_vm0, %v7545_v0 }
 0x35f   : > { %6773 = vmatpush3.bf16.msra.mxu1 %v7466_v29  ;;  %6781 = vmatpush3.bf16.msra.mxu0 %v7468_v32  ;;  %v4673_v29 = vrot.slane %v7521_v28, 1 }
 0x360   : > { %6782 = vmatprep.subr.bf16.mxu0 %v7545_v0  ;;  %6798 = vmatprep.subr.bf16.mxu1 %v7545_v0 }
 0x362   : > { %6775 = vmatmul.mubr.bf16.vlgmr.msra.gmra.mrb[48].mxu1 %v3765_v31 }
 0x363   : > { %6783 = vmatpush3.bf16.msra.mxu0 %v7470_v36  ;;  %6799 = vmatpush3.bf16.msra.mxu1 %v7467_v30  ;;  %v7523_v30 = vld [vmem:[%s7650_s22 + $0x618] sm:$0xff]  }
 0x364   : > { %6784 = vmatprep.subr.bf16.mxu0 %v7545_v0  ;;  %6800 = vmatprep.subr.bf16.mxu1 %v7545_v0 }
 0x365   : > { %6814 = vmatprep.mubr.msk.bf16.mxu1 %vm7546_vm0, %v7545_v0 }
 0x367   : > { %6785 = vmatpush3.bf16.msra.mxu0 %v7471_v34  ;;  %6801 = vmatpush3.bf16.msra.mxu1 %v7468_v32  ;;  %v7524_v32 = vld [vmem:[%s7650_s22 + $0x620] sm:$0xff]  }
 0x368   : > { %6786 = vmatprep.subr.bf16.mxu0 %v7545_v0  ;;  %6802 = vmatprep.subr.bf16.mxu1 %v7545_v0 }
 0x36b   : > { %6787 = vmatpush3.bf16.msra.mxu0 %v7472_v38  ;;  %6803 = vmatpush3.bf16.msra.mxu1 %v7470_v36  ;;  %v7526_v36 = vld [vmem:[%s7650_s22 + $0x630] sm:$0xff]  }
 0x36c   : > { %6788 = vmatprep.subr.bf16.mxu0 %v7545_v0  ;;  %6804 = vmatprep.subr.bf16.mxu1 %v7545_v0 }
 0x36f   : > { %6789 = vmatpush3.bf16.msra.mxu0 %v7473_v41  ;;  %6805 = vmatpush3.bf16.msra.mxu1 %v7471_v34  ;;  %v7529_v34 = vld [vmem:[%s8478_s13] sm:$0xff]  }
 0x370   : > { %6790 = vmatprep.subr.bf16.mxu0 %v7545_v0  ;;  %6806 = vmatprep.subr.bf16.mxu1 %v7545_v0 }
 0x373   : > { %6791 = vmatpush3.bf16.msra.mxu0 %v7474_v35  ;;  %6807 = vmatpush3.bf16.msra.mxu1 %v7472_v38  ;;  %v7530_v38 = vld [vmem:[%s8478_s13 + $0x8] sm:$0xff]  }
 0x374   : > { %6792 = vmatprep.subr.bf16.mxu0 %v7545_v0  ;;  %6808 = vmatprep.subr.bf16.mxu1 %v7545_v0 }
 0x377   : > { %6793 = vmatpush3.bf16.msra.mxu0 %v7475_v39  ;;  %6809 = vmatpush3.bf16.msra.mxu1 %v7473_v41  ;;  %v7528_v41 = vld [vmem:[#allocation2 + $0x20] ss:$0 sps:$4 sm:$0xcc]  }
 0x378   : > { %6810 = vmatprep.subr.bf16.mxu1 %v7545_v0  ;;  %6818 = vmatprep.subr.bf16.mxu0 %v7545_v0 }
 0x37a   : > { %6795 = vmatmul.mubr.bf16.vlgmr.msra.gmra.mrb[32].mxu0 %v3162_v58  ;;  %v7492_v58 = vld [vmem:[%s7650_s22 + $0x538] sm:$0xff]  }
 0x37b   : > { %6811 = vmatpush3.bf16.msra.mxu1 %v7474_v35  ;;  %6819 = vmatpush3.bf16.msra.mxu0 %v7476_v45  ;;  %v4825_v35 = vrot.slane %v7528_v41, 2 }
 0x37c   : > { %6812 = vmatprep.subr.bf16.mxu1 %v7545_v0  ;;  %6820 = vmatprep.subr.bf16.mxu0 %v7545_v0 }
 0x37d   : > { %6834 = vmatprep.mubr.msk.bf16.mxu0 %vm7546_vm0, %v7545_v0 }
 0x37f   : > { %6813 = vmatpush3.bf16.msra.mxu1 %v7475_v39  ;;  %6821 = vmatpush3.bf16.msra.mxu0 %v7477_v40  ;;  %v7531_v39 = vld [vmem:[%s8478_s13 + $0x10] sm:$0xff]  }
 0x380   : > { %6822 = vmatprep.subr.bf16.mxu0 %v7545_v0  ;;  %6838 = vmatprep.subr.bf16.mxu1 %v7545_v0 }
 0x382   : > { %6815 = vmatmul.mubr.bf16.vlgmr.msra.gmra.mrb[48].mxu1 %v3920_v49 }
 0x383   : > { %6823 = vmatpush3.bf16.msra.mxu0 %v7479_v47  ;;  %6839 = vmatpush3.bf16.msra.mxu1 %v7476_v45  ;;  %v7532_v45 = vld [vmem:[%s8478_s13 + $0x18] sm:$0xff]  }
 0x384   : > { %6824 = vmatprep.subr.bf16.mxu0 %v7545_v0  ;;  %6840 = vmatprep.subr.bf16.mxu1 %v7545_v0 }
 0x385   : > { %6854 = vmatprep.mubr.msk.bf16.mxu1 %vm7546_vm0, %v7545_v0 }
 0x387   : > { %6825 = vmatpush3.bf16.msra.mxu0 %v7480_v50  ;;  %6841 = vmatpush3.bf16.msra.mxu1 %v7477_v40  ;;  %v7533_v40 = vld [vmem:[%s8478_s13 + $0x20] sm:$0xff]  }
 0x388   : > { %6826 = vmatprep.subr.bf16.mxu0 %v7545_v0  ;;  %6842 = vmatprep.subr.bf16.mxu1 %v7545_v0 }
 0x38b   : > { %6827 = vmatpush3.bf16.msra.mxu0 %v7481_v51  ;;  %6843 = vmatpush3.bf16.msra.mxu1 %v7479_v47  ;;  %v7535_v47 = vld [vmem:[%s8478_s13 + $0x30] sm:$0xff]  }
 0x38c   : > { %6828 = vmatprep.subr.bf16.mxu0 %v7545_v0  ;;  %6844 = vmatprep.subr.bf16.mxu1 %v7545_v0 }
 0x38f   : > { %6829 = vmatpush3.bf16.msra.mxu0 %v7482_v52  ;;  %6845 = vmatpush3.bf16.msra.mxu1 %v7480_v50 }
 0x390   : > { %6830 = vmatprep.subr.bf16.mxu0 %v7545_v0  ;;  %6846 = vmatprep.subr.bf16.mxu1 %v7545_v0 }
 0x393   : > { %6831 = vmatpush3.bf16.msra.mxu0 %v7483_v53  ;;  %6847 = vmatpush3.bf16.msra.mxu1 %v7481_v51 }
 0x394   : > { %6832 = vmatprep.subr.bf16.mxu0 %v7545_v0  ;;  %6848 = vmatprep.subr.bf16.mxu1 %v7545_v0 }
 0x397   : > { %6833 = vmatpush3.bf16.msra.mxu0 %v7484_v54  ;;  %6849 = vmatpush3.bf16.msra.mxu1 %v7482_v52 }
 0x398   : > { %6850 = vmatprep.subr.bf16.mxu1 %v7545_v0  ;;  %6858 = vmatprep.subr.bf16.mxu0 %v7545_v0 }
 0x39a   : > { %6835 = vmatmul.mubr.bf16.vlgmr.msra.gmra.mrb[32].mxu0 %v3314_v3  ;;  %v7501_v3 = vld [vmem:[%s7650_s22 + $0x578] sm:$0xff]  }
 0x39b   : > { %6851 = vmatpush3.bf16.msra.mxu1 %v7483_v53  ;;  %6859 = vmatpush3.bf16.msra.mxu0 %v7485_v44 }
 0x39c   : > { %6852 = vmatprep.subr.bf16.mxu1 %v7545_v0  ;;  %6860 = vmatprep.subr.bf16.mxu0 %v7545_v0 }
 0x39d   : > { %6874 = vmatprep.mubr.msk.bf16.mxu0 %vm7546_vm0, %v7545_v0 }
 0x39f   : > { %6853 = vmatpush3.bf16.msra.mxu1 %v7484_v54  ;;  %6861 = vmatpush3.bf16.msra.mxu0 %v7486_v55 }
 0x3a0   : > { %6862 = vmatprep.subr.bf16.mxu0 %v7545_v0  ;;  %6878 = vmatprep.subr.bf16.mxu1 %v7545_v0 }
 0x3a2   : > { %6855 = vmatmul.mubr.bf16.vlgmr.msra.gmra.mrb[48].mxu1 %v8441_v37 }
 0x3a3   : > { %6863 = vmatpush3.bf16.msra.mxu0 %v7487_v56  ;;  %6879 = vmatpush3.bf16.msra.mxu1 %v7485_v44 }
 0x3a4   : > { %6864 = vmatprep.subr.bf16.mxu0 %v7545_v0  ;;  %6880 = vmatprep.subr.bf16.mxu1 %v7545_v0 }
 0x3a5   : > { %6894 = vmatprep.mubr.msk.bf16.mxu1 %vm7546_vm0, %v7545_v0 }
 0x3a7   : > { %6865 = vmatpush3.bf16.msra.mxu0 %v7488_v42  ;;  %6881 = vmatpush3.bf16.msra.mxu1 %v7486_v55 }
 0x3a8   : > { %6866 = vmatprep.subr.bf16.mxu0 %v7545_v0  ;;  %6882 = vmatprep.subr.bf16.mxu1 %v7545_v0 }
 0x3ab   : > { %6867 = vmatpush3.bf16.msra.mxu0 %v7489_v43  ;;  %6883 = vmatpush3.bf16.msra.mxu1 %v7487_v56 }
 0x3ac   : > { %6868 = vmatprep.subr.bf16.mxu0 %v7545_v0  ;;  %6884 = vmatprep.subr.bf16.mxu1 %v7545_v0 }
 0x3af   : > { %6869 = vmatpush3.bf16.msra.mxu0 %v7490_v48  ;;  %6885 = vmatpush3.bf16.msra.mxu1 %v7488_v42 }
 0x3b0   : > { %6870 = vmatprep.subr.bf16.mxu0 %v7545_v0  ;;  %6886 = vmatprep.subr.bf16.mxu1 %v7545_v0 }
 0x3b3   : > { %6871 = vmatpush3.bf16.msra.mxu0 %v7491_v57  ;;  %6887 = vmatpush3.bf16.msra.mxu1 %v7489_v43 }
 0x3b4   : > { %6872 = vmatprep.subr.bf16.mxu0 %v7545_v0  ;;  %6888 = vmatprep.subr.bf16.mxu1 %v7545_v0 }
 0x3b7   : > { %6873 = vmatpush3.bf16.msra.mxu0 %v7492_v58  ;;  %6889 = vmatpush3.bf16.msra.mxu1 %v7490_v48  ;;  %v5428_v48 = vld [vmem:[%s445_s16] ss:$0 sm:$0xff] }
 0x3b8   : > { %6890 = vmatprep.subr.bf16.mxu1 %v7545_v0  ;;  %6898 = vmatprep.subr.bf16.mxu0 %v7545_v0 }
 0x3ba   : > { %6875 = vmatmul.mubr.bf16.vlgmr.msra.gmra.mrb[32].mxu0 %v8304_v14  ;;  %v7509_v14 = vld [vmem:[%s7650_s22 + $0x5b0] sm:$0xff]  }
 0x3bb   : > { %6891 = vmatpush3.bf16.msra.mxu1 %v7491_v57  ;;  %6899 = vmatpush3.bf16.msra.mxu0 %v7493_v59 }
 0x3bc   : > { %6892 = vmatprep.subr.bf16.mxu1 %v7545_v0  ;;  %6900 = vmatprep.subr.bf16.mxu0 %v7545_v0 }
 0x3bd   : > { %6914 = vmatprep.mubr.msk.bf16.mxu0 %vm7546_vm0, %v7545_v0 }
 0x3bf   : > { %6893 = vmatpush3.bf16.msra.mxu1 %v7492_v58  ;;  %6901 = vmatpush3.bf16.msra.mxu0 %v7494_v60  ;;  %v5429_v58 = vld [vmem:[%s448_s19] ss:$0 sm:$0xff] }
 0x3c0   : > { %6902 = vmatprep.subr.bf16.mxu0 %v7545_v0  ;;  %6918 = vmatprep.subr.bf16.mxu1 %v7545_v0 }
 0x3c2   : > { %6895 = vmatmul.mubr.bf16.vlgmr.msra.gmra.mrb[48].mxu1 %v4219_v63 }
 0x3c3   : > { %6903 = vmatpush3.bf16.msra.mxu0 %v7496_v62  ;;  %6919 = vmatpush3.bf16.msra.mxu1 %v7493_v59 }
 0x3c4   : > { %6904 = vmatprep.subr.bf16.mxu0 %v7545_v0  ;;  %6920 = vmatprep.subr.bf16.mxu1 %v7545_v0 }
 0x3c5   : > { %6934 = vmatprep.mubr.msk.bf16.mxu1 %vm7546_vm0, %v7545_v0 }
 0x3c7   : > { %6905 = vmatpush3.bf16.msra.mxu0 %v7497_v1  ;;  %6921 = vmatpush3.bf16.msra.mxu1 %v7494_v60 }
 0x3c8   : > { %6906 = vmatprep.subr.bf16.mxu0 %v7545_v0  ;;  %6922 = vmatprep.subr.bf16.mxu1 %v7545_v0 }
 0x3cb   : > { %6907 = vmatpush3.bf16.msra.mxu0 %v7498_v2  ;;  %6923 = vmatpush3.bf16.msra.mxu1 %v7496_v62 }
 0x3cc   : > { %6908 = vmatprep.subr.bf16.mxu0 %v7545_v0  ;;  %6924 = vmatprep.subr.bf16.mxu1 %v7545_v0 }
 0x3cf   : > { %6909 = vmatpush3.bf16.msra.mxu0 %v7499_v4  ;;  %6925 = vmatpush3.bf16.msra.mxu1 %v7497_v1 }
 0x3d0   : > { %6910 = vmatprep.subr.bf16.mxu0 %v7545_v0  ;;  %6926 = vmatprep.subr.bf16.mxu1 %v7545_v0 }
 0x3d3   : > { %6911 = vmatpush3.bf16.msra.mxu0 %v7500_v5  ;;  %6927 = vmatpush3.bf16.msra.mxu1 %v7498_v2 }
 0x3d4   : > { %6912 = vmatprep.subr.bf16.mxu0 %v7545_v0  ;;  %6928 = vmatprep.subr.bf16.mxu1 %v7545_v0 }
 0x3d7   : > { %6913 = vmatpush3.bf16.msra.mxu0 %v7501_v3  ;;  %6929 = vmatpush3.bf16.msra.mxu1 %v7499_v4 }
 0x3d8   : > { %6930 = vmatprep.subr.bf16.mxu1 %v7545_v0  ;;  %6938 = vmatprep.subr.bf16.mxu0 %v7545_v0 }
 0x3da   : > { %6915 = vmatmul.mubr.bf16.vlgmr.msra.gmra.mrb[32].mxu0 %v3613_v25  ;;  %v7518_v25 = vld [vmem:[%s7650_s22 + $0x5f8] sm:$0xff]  }
 0x3db   : > { %6931 = vmatpush3.bf16.msra.mxu1 %v7500_v5  ;;  %6939 = vmatpush3.bf16.msra.mxu0 %v7502_v6 }
 0x3dc   : > { %6932 = vmatprep.subr.bf16.mxu1 %v7545_v0  ;;  %6940 = vmatprep.subr.bf16.mxu0 %v7545_v0 }
 0x3dd   : > { %6954 = vmatprep.mubr.msk.bf16.mxu0 %vm7546_vm0, %v7545_v0 }
 0x3df   : > { %6933 = vmatpush3.bf16.msra.mxu1 %v7501_v3  ;;  %6941 = vmatpush3.bf16.msra.mxu0 %v7503_v7 }
 0x3e0   : > { %6942 = vmatprep.subr.bf16.mxu0 %v7545_v0  ;;  %6958 = vmatprep.subr.bf16.mxu1 %v7545_v0 }
 0x3e2   : > { %6935 = vmatmul.mubr.bf16.vlgmr.msra.gmra.mrb[48].mxu1 %v4374_v11 }
 0x3e3   : > { %6943 = vmatpush3.bf16.msra.mxu0 %v7505_v10  ;;  %6959 = vmatpush3.bf16.msra.mxu1 %v7502_v6 }
 0x3e4   : > { %6944 = vmatprep.subr.bf16.mxu0 %v7545_v0  ;;  %6960 = vmatprep.subr.bf16.mxu1 %v7545_v0 }
 0x3e5   : > { %6974 = vmatprep.mubr.msk.bf16.mxu1 %vm7546_vm0, %v7545_v0 }
 0x3e7   : > { %6945 = vmatpush3.bf16.msra.mxu0 %v7506_v12  ;;  %6961 = vmatpush3.bf16.msra.mxu1 %v7503_v7 }
 0x3e8   : > { %6946 = vmatprep.subr.bf16.mxu0 %v7545_v0  ;;  %6962 = vmatprep.subr.bf16.mxu1 %v7545_v0 }
 0x3eb   : > { %6947 = vmatpush3.bf16.msra.mxu0 %v7507_v9  ;;  %6963 = vmatpush3.bf16.msra.mxu1 %v7505_v10 }
 0x3ec   : > { %6948 = vmatprep.subr.bf16.mxu0 %v7545_v0  ;;  %6964 = vmatprep.subr.bf16.mxu1 %v7545_v0 }
 0x3ef   : > { %6949 = vmatpush3.bf16.msra.mxu0 %v7508_v13  ;;  %6965 = vmatpush3.bf16.msra.mxu1 %v7506_v12 }
 0x3f0   : > { %6950 = vmatprep.subr.bf16.mxu0 %v7545_v0  ;;  %6966 = vmatprep.subr.bf16.mxu1 %v7545_v0 }
 0x3f3   : > { %6951 = vmatpush3.bf16.msra.mxu0 %v7509_v14  ;;  %6967 = vmatpush3.bf16.msra.mxu1 %v7507_v9 }
 0x3f4   : > { %6952 = vmatprep.subr.bf16.mxu0 %v7545_v0  ;;  %6968 = vmatprep.subr.bf16.mxu1 %v7545_v0 }
 0x3f7   : > { %6953 = vmatpush3.bf16.msra.mxu0 %v7510_v16  ;;  %6969 = vmatpush3.bf16.msra.mxu1 %v7508_v13 }
 0x3f8   : > { %6970 = vmatprep.subr.bf16.mxu1 %v7545_v0  ;;  %6978 = vmatprep.subr.bf16.mxu0 %v7545_v0 }
 0x3fa   : > { %6955 = vmatmul.mubr.bf16.vlgmr.msra.gmra.mrb[32].mxu0 %v3765_v31  ;;  %v7527_v31 = vld [vmem:[%s7650_s22 + $0x638] sm:$0xff]   ;;  %s456_s22 = scalar_lea.vmem %s8634_s8, %s8637_s10 }
 0x3fb   : > { %6971 = vmatpush3.bf16.msra.mxu1 %v7509_v14  ;;  %6979 = vmatpush3.bf16.msra.mxu0 %v7511_v17  ;;  %v5430_v63 = vld [vmem:[%s456_s22] ss:$0 sm:$0xff] }
 0x3fc   : > { %6972 = vmatprep.subr.bf16.mxu1 %v7545_v0  ;;  %6980 = vmatprep.subr.bf16.mxu0 %v7545_v0 }
 0x3fd   : > { %6994 = vmatprep.mubr.msk.bf16.mxu0 %vm7546_vm0, %v7545_v0 }
 0x3ff   : > { %6973 = vmatpush3.bf16.msra.mxu1 %v7510_v16  ;;  %6981 = vmatpush3.bf16.msra.mxu0 %v7512_v15 }
 0x400   : > { %6982 = vmatprep.subr.bf16.mxu0 %v7545_v0  ;;  %6998 = vmatprep.subr.bf16.mxu1 %v7545_v0 }
 0x402   : > { %6975 = vmatmul.mubr.bf16.vlgmr.msra.gmra.mrb[48].mxu1 %v4433_v19 }
 0x403   : > { %6983 = vmatpush3.bf16.msra.mxu0 %v7513_v18  ;;  %6999 = vmatpush3.bf16.msra.mxu1 %v7511_v17 }
 0x404   : > { %6984 = vmatprep.subr.bf16.mxu0 %v7545_v0  ;;  %7000 = vmatprep.subr.bf16.mxu1 %v7545_v0 }
 0x405   : > { %7014 = vmatprep.mubr.msk.bf16.mxu1 %vm7546_vm0, %v7545_v0 }
 0x407   : > { %6985 = vmatpush3.bf16.msra.mxu0 %v7514_v20  ;;  %7001 = vmatpush3.bf16.msra.mxu1 %v7512_v15 }
 0x408   : > { %6986 = vmatprep.subr.bf16.mxu0 %v7545_v0  ;;  %7002 = vmatprep.subr.bf16.mxu1 %v7545_v0 }
 0x40b   : > { %6987 = vmatpush3.bf16.msra.mxu0 %v7515_v22  ;;  %7003 = vmatpush3.bf16.msra.mxu1 %v7513_v18 }
 0x40c   : > { %6988 = vmatprep.subr.bf16.mxu0 %v7545_v0  ;;  %7004 = vmatprep.subr.bf16.mxu1 %v7545_v0 }
 0x40f   : > { %6989 = vmatpush3.bf16.msra.mxu0 %v7516_v23  ;;  %7005 = vmatpush3.bf16.msra.mxu1 %v7514_v20 }
 0x410   : > { %6990 = vmatprep.subr.bf16.mxu0 %v7545_v0  ;;  %7006 = vmatprep.subr.bf16.mxu1 %v7545_v0 }
 0x413   : > { %6991 = vmatpush3.bf16.msra.mxu0 %v7517_v24  ;;  %7007 = vmatpush3.bf16.msra.mxu1 %v7515_v22 }
 0x414   : > { %6992 = vmatprep.subr.bf16.mxu0 %v7545_v0  ;;  %7008 = vmatprep.subr.bf16.mxu1 %v7545_v0 }
 0x417   : > { %6993 = vmatpush3.bf16.msra.mxu0 %v7518_v25  ;;  %7009 = vmatpush3.bf16.msra.mxu1 %v7516_v23 }
 0x418   : > { %7010 = vmatprep.subr.bf16.mxu1 %v7545_v0  ;;  %7018 = vmatprep.subr.bf16.mxu0 %v7545_v0 }
 0x41a   : > { %6995 = vmatmul.mubr.bf16.vlgmr.msra.gmra.mrb[32].mxu0 %v3920_v49  ;;  %v7536_v49 = vld [vmem:[%s8478_s13 + $0x38] sm:$0xff]  }
 0x41b   : > { %7011 = vmatpush3.bf16.msra.mxu1 %v7517_v24  ;;  %7019 = vmatpush3.bf16.msra.mxu0 %v7519_v21 }
 0x41c   : > { %7012 = vmatprep.subr.bf16.mxu1 %v7545_v0  ;;  %7020 = vmatprep.subr.bf16.mxu0 %v7545_v0 }
 0x41d   : > { %7034 = vmatprep.mubr.msk.bf16.mxu0 %vm7546_vm0, %v7545_v0 }
 0x41f   : > { %7013 = vmatpush3.bf16.msra.mxu1 %v7518_v25  ;;  %7021 = vmatpush3.bf16.msra.mxu0 %v7520_v26 }
 0x420   : > { %7022 = vmatprep.subr.bf16.mxu0 %v7545_v0  ;;  %7038 = vmatprep.subr.bf16.mxu1 %v7545_v0 }
 0x422   : > { %7015 = vmatmul.mubr.bf16.vlgmr.msra.gmra.mrb[48].mxu1 %v4673_v29 }
 0x423   : > { %7023 = vmatpush3.bf16.msra.mxu0 %v7522_v27  ;;  %7039 = vmatpush3.bf16.msra.mxu1 %v7519_v21 }
 0x424   : > { %7024 = vmatprep.subr.bf16.mxu0 %v7545_v0  ;;  %7040 = vmatprep.subr.bf16.mxu1 %v7545_v0 }
 0x425   : > { %7054 = vmatprep.mubr.msk.bf16.mxu1 %vm7546_vm0, %v7545_v0 }
 0x427   : > { %7025 = vmatpush3.bf16.msra.mxu0 %v7523_v30  ;;  %7041 = vmatpush3.bf16.msra.mxu1 %v7520_v26 }
 0x428   : > { %7026 = vmatprep.subr.bf16.mxu0 %v7545_v0  ;;  %7042 = vmatprep.subr.bf16.mxu1 %v7545_v0 }
 0x42b   : > { %7027 = vmatpush3.bf16.msra.mxu0 %v7524_v32  ;;  %7043 = vmatpush3.bf16.msra.mxu1 %v7522_v27 }
 0x42c   : > { %7028 = vmatprep.subr.bf16.mxu0 %v7545_v0  ;;  %7044 = vmatprep.subr.bf16.mxu1 %v7545_v0 }
 0x42f   : > { %7029 = vmatpush3.bf16.msra.mxu0 %v7525_v33  ;;  %7045 = vmatpush3.bf16.msra.mxu1 %v7523_v30 }
 0x430   : > { %7030 = vmatprep.subr.bf16.mxu0 %v7545_v0  ;;  %7046 = vmatprep.subr.bf16.mxu1 %v7545_v0 }
 0x433   : > { %7031 = vmatpush3.bf16.msra.mxu0 %v7526_v36  ;;  %7047 = vmatpush3.bf16.msra.mxu1 %v7524_v32 }
 0x434   : > { %7032 = vmatprep.subr.bf16.mxu0 %v7545_v0  ;;  %7048 = vmatprep.subr.bf16.mxu1 %v7545_v0 }
 0x437   : > { %7033 = vmatpush3.bf16.msra.mxu0 %v7527_v31  ;;  %7049 = vmatpush3.bf16.msra.mxu1 %v7525_v33 }
 0x438   : > { %7050 = vmatprep.subr.bf16.mxu1 %v7545_v0  ;;  %7058 = vmatprep.subr.bf16.mxu0 %v7545_v0 }
 0x43a   : > { %7035 = vmatmul.mubr.bf16.vlgmr.msra.gmra.mrb[32].mxu0 %v8441_v37 }
 0x43b   : > { %7051 = vmatpush3.bf16.msra.mxu1 %v7526_v36  ;;  %7059 = vmatpush3.bf16.msra.mxu0 %v7529_v34 }
 0x43c   : > { %7052 = vmatprep.subr.bf16.mxu1 %v7545_v0  ;;  %7060 = vmatprep.subr.bf16.mxu0 %v7545_v0 }
 0x43d   : > { %7074 = vmatprep.mubr.msk.bf16.mxu0 %vm7546_vm0, %v7545_v0 }
 0x43f   : > { %7053 = vmatpush3.bf16.msra.mxu1 %v7527_v31  ;;  %7061 = vmatpush3.bf16.msra.mxu0 %v7530_v38 }
 0x440   : > { %7062 = vmatprep.subr.bf16.mxu0 %v7545_v0 }
 0x442   : > { %7055 = vmatmul.mubr.bf16.vlgmr.msra.gmra.mrb[48].mxu1 %v4825_v35 }
 0x443   : > { %7063 = vmatpush3.bf16.msra.mxu0 %v7531_v39 }
 0x444   : > { %7064 = vmatprep.subr.bf16.mxu0 %v7545_v0 }
 0x447   : > { %7065 = vmatpush3.bf16.msra.mxu0 %v7532_v45 }
 0x448   : > { %7066 = vmatprep.subr.bf16.mxu0 %v7545_v0 }
 0x44b   : > { %7067 = vmatpush3.bf16.msra.mxu0 %v7533_v40 }
 0x44c   : > { %7068 = vmatprep.subr.bf16.mxu0 %v7545_v0 }
 0x44f   : > { %7069 = vmatpush3.bf16.msra.mxu0 %v7534_v46 }
 0x450   : > { %7070 = vmatprep.subr.bf16.mxu0 %v7545_v0 }
 0x453   : > { %7071 = vmatpush3.bf16.msra.mxu0 %v7535_v47 }
 0x454   : > { %7072 = vmatprep.subr.bf16.mxu0 %v7545_v0 }
 0x457   : > { %7073 = vmatpush3.bf16.msra.mxu0 %v7536_v49 }
 0x50d   : > { %v4815_v50 = vpop.f32.mrb[32].mxu0 }
 0x50e   : > { %v7036_v51 = vpop.f32.mrb[33].mxu0  ;;  %v4869_v54 = vrot.slane %v4815_v50, 2 }
 0x50f   : > { %v4818_v52 = vpop.f32.mrb[34].mxu0 }
 0x510   : > { %v7037_v53 = vpop.f32.mrb[35].mxu0  ;;  %v4871_v42 = vmax.f32 %v4815_v50, %v4869_v54 }
 0x515   : > { %v4861_v44 = vpop.f32.mrb[48].mxu1 }
 0x516   : > { %v4873_v55 = vrot.slane %v4861_v44, 2  ;;  %v7056_v56 = vpop.f32.mrb[49].mxu1 }
 0x517   : > { %v4864_v37 = vpop.f32.mrb[50].mxu1 }
 0x518   : > { %v4875_v0 = vmax.f32 %v4861_v44, %v4873_v55  ;;  %v7057_v43 = vpop.f32.mrb[51].mxu1 }
 0x51a   : > { %v4876_v57 = vmax.f32 %v4871_v42, %v4875_v0 }
 0x51c   : > { %v4884_v59 = vmul.f32 %v5428_v48, %v4876_v57 }
 0x51e   : > { %v4892_v60 = vadd.f32 %v5429_v58, %v4884_v59 }
 0x520   : > { %v4893_v61 = vmax.f32 %v4892_v60, 0.0 }
 0x522   : > { %v4894_v62 = vpack.c.bf16 %v4893_v61, %v4893_v61 }
 0x524   : > { %7075 = vmatmul.mubr.bf16.vlgmr.msra.gmra.mrb[36].mxu0 %v4894_v62 }
 0x5f7   : > { %v5000_v1 = vpop.f32.mrb[36].mxu0 }
 0x5f8   : > { %v5001_v2 = vadd.f32 %v5430_v63, %v5000_v1  ;;  %v7076_v4 = vpop.f32.mrb[37].mxu0 }
 0x5f9   : > { %v5003_v5 = vpop.f32.mrb[38].mxu0 }
 0x5fa   : > { %v5006_v3 = vmax.f32 %v5001_v2, 0.0  ;;  %v7077_v6 = vpop.f32.mrb[39].mxu0 }
 0x5fc   : > { %5007 = vst [vmem:[%s460_s26] sm:$0x3] %v5006_v3 }
 0x5fd PF: > { %s19_s30 = sadd.s32 1, %s7543_s30  }
 0x5fe   : > { %p16_p4 = scmp.ge.s32.totalorder %s19_s30, 6  }
 0x600   :  { %18 = sbr.rel (!%p16_p4) target bundleno = 1 (0x1), region = 110 }

</bundles_post_ra>
